<compile_context>
chip_gen: v7x
topology: tpu7x:2x2x1
jax: 0.10.0
libtpu: 0.0.40
codegen_flags: <defaults>
</compile_context>

<pallas_src>
import numpy as np
import jax
import jax.numpy as jnp
from jax.experimental import pallas as pl
from jax.experimental.pallas import tpu as pltpu


def round_up(x, m):
    return ((x + m - 1) // m) * m


# ----------------------------------------------------------------------------
# Fused kernel: per-view GGNN (all layers) + GRUCell + GlobalAttention pool,
# then (last grid step only) multi-layer LSTM over the pooled sequence + FC.
#   grid = (S+1,)  "arbitrary": pooled scratch accumulates across steps.
# ----------------------------------------------------------------------------
def gnn_encoder_kernel(adj_ref, x_ref, mt_ref, mbn_ref,
                       w_ref, gwih_ref, gwhh_ref, gbih_ref, gbhh_ref,
                       aw1_ref, ab1_ref, aw2_ref, ab2_ref,
                       lwih_ref, lwhh_ref, lbih_ref, lbhh_ref,
                       fwa_ref, fwb_ref, fb_ref,
                       out_ref, pooled_sc):
    f32 = jnp.float32
    bf16 = jnp.bfloat16
    Np, Dp = x_ref.shape
    Lg = w_ref.shape[0]
    Bp = mt_ref.shape[1]
    n_views = pooled_sc.shape[0]          # S subgraph views + 1 full-graph view
    s = pl.program_id(0)

    # ---------------- GGNN over this view's adjacency ----------------
    adj = adj_ref[0]                                       # bf16 [Np, Np]
    h = x_ref[...]                                         # f32  [Np, Dp]

    # weight loads / bias broadcasts hoisted out of the (tiny, unrolled) layer loop
    gwih = gwih_ref[...]                                   # bf16 [Dp, 3Dp]
    gwhh = gwhh_ref[...]                                   # bf16 [Dp, 3Dp]
    gbih = jnp.broadcast_to(gbih_ref[...], (Np, 3 * Dp))   # f32
    gbhh = jnp.broadcast_to(gbhh_ref[...], (Np, 3 * Dp))   # f32

    for l in range(Lg):                                    # static unroll
        hb = h.astype(bf16)
        m = jnp.dot(hb, w_ref[l], preferred_element_type=f32)          # X @ W_l
        m = jnp.dot(adj, m.astype(bf16), preferred_element_type=f32)   # aggregate @ tgt
        # torch.nn.GRUCell(m, h), gate order (r, z, n); gate slices 128-aligned
        gi = jnp.dot(m.astype(bf16), gwih, preferred_element_type=f32) + gbih
        gh = jnp.dot(hb, gwhh, preferred_element_type=f32) + gbhh
        r = jax.nn.sigmoid(gi[:, 0:Dp] + gh[:, 0:Dp])
        z = jax.nn.sigmoid(gi[:, Dp:2 * Dp] + gh[:, Dp:2 * Dp])
        n = jnp.tanh(gi[:, 2 * Dp:3 * Dp] + r * gh[:, 2 * Dp:3 * Dp])
        h = (1.0 - z) * n + z * h

    # ---------------- GlobalAttention pool (segment softmax, f32) ----------------
    mt = mt_ref[...]                                       # [Np, Bp] membership
    h1 = jax.nn.sigmoid(
        jnp.dot(h.astype(bf16), aw1_ref[...], preferred_element_type=f32)
        + ab1_ref[...])                                    # [Np, Gp]
    # second gate Linear as row-weight * lane-reduction (no [Gp,1] tile / matmul)
    gate = jax.nn.sigmoid(
        jnp.sum(h1 * aw2_ref[...], axis=1, keepdims=True) + ab2_ref[...])  # [Np, 1]

    masked = jnp.where(mt > 0.5, jnp.broadcast_to(gate, (Np, Bp)), -1e30)
    seg_max = jnp.max(masked, axis=0, keepdims=True)       # [1, Bp]
    e = jnp.exp(masked - seg_max) * mt                     # zeros on padded rows/cols
    seg_sum = jnp.sum(e, axis=0, keepdims=True)            # [1, Bp]
    inv = pl.reciprocal(jnp.maximum(seg_sum, 1e-20), approx=True)   # EUP, guarded
    p = jnp.sum(e * inv, axis=1, keepdims=True)            # [Np, 1] per-node softmax
    pooled = jnp.dot(mbn_ref[...], p * h, preferred_element_type=f32)  # [Bp, Dp]
    pooled_sc[s] = pooled

    # ------------- last view: fused LSTM over subgraph pools + final FC -------------
    @pl.when(s == n_views - 1)
    def _():
        Ll = lwih_ref.shape[0]
        Hp = lwhh_ref.shape[1]
        S = n_views - 1                  # number of subgraph views (LSTM length)

        wih = [lwih_ref[l] for l in range(Ll)]
        whh = [lwhh_ref[l] for l in range(Ll)]
        bias = [jnp.broadcast_to(lbih_ref[l] + lbhh_ref[l], (Bp, 4 * Hp))
                for l in range(Ll)]

        hs = [jnp.zeros((Bp, Hp), f32) for _ in range(Ll)]
        cs = [jnp.zeros((Bp, Hp), f32) for _ in range(Ll)]
        for t in range(S):               # static unroll: S tiny, full LLO visibility
            inp = pooled_sc[t]           # [Bp, Dp] f32
            for l in range(Ll):
                g = (jnp.dot(inp.astype(bf16), wih[l], preferred_element_type=f32)
                     + jnp.dot(hs[l].astype(bf16), whh[l], preferred_element_type=f32)
                     + bias[l])          # gate order (i, f, g, o); slices 128-aligned
                i_g = jax.nn.sigmoid(g[:, 0:Hp])
                f_g = jax.nn.sigmoid(g[:, Hp:2 * Hp])
                g_g = jnp.tanh(g[:, 2 * Hp:3 * Hp])
                o_g = jax.nn.sigmoid(g[:, 3 * Hp:4 * Hp])
                cs[l] = f_g * cs[l] + i_g * g_g
                hs[l] = o_g * jnp.tanh(cs[l])
                inp = hs[l]

        # fc(concat(lstm_last, graph_pool)) split into two matmuls; `pooled` here is
        # the full-graph pool (this is the last view).
        out_ref[...] = (
            jnp.dot(hs[Ll - 1].astype(bf16), fwa_ref[...], preferred_element_type=f32)
            + jnp.dot(pooled.astype(bf16), fwb_ref[...], preferred_element_type=f32)
            + fb_ref[...])


def run_gnn_encoder(adj_stack, x_emb, mt, m_bn, params):
    Sg, Np, _ = adj_stack.shape
    Dp = x_emb.shape[1]
    Bp = mt.shape[1]
    Op = params["fc_b"].shape[1]
    c2 = lambda s: (0, 0)
    c3 = lambda s: (0, 0, 0)
    in_specs = [
        pl.BlockSpec((1, Np, Np), lambda s: (s, 0, 0)),    # per-view adjacency slice
        pl.BlockSpec((Np, Dp), c2),                        # x_emb (resident)
        pl.BlockSpec((Np, Bp), c2),
        pl.BlockSpec((Bp, Np), c2),
        pl.BlockSpec(params["ggnn_w"].shape, c3),          # weights: constant maps
        pl.BlockSpec(params["gru_wih"].shape, c2),
        pl.BlockSpec(params["gru_whh"].shape, c2),
        pl.BlockSpec(params["gru_bih"].shape, c2),
        pl.BlockSpec(params["gru_bhh"].shape, c2),
        pl.BlockSpec(params["gate_w1"].shape, c2),
        pl.BlockSpec(params["gate_b1"].shape, c2),
        pl.BlockSpec(params["gate_w2"].shape, c2),
        pl.BlockSpec(params["gate_b2"].shape, c2),
        pl.BlockSpec(params["lstm_wih"].shape, c3),
        pl.BlockSpec(params["lstm_whh"].shape, c3),
        pl.BlockSpec(params["lstm_bih"].shape, c3),
        pl.BlockSpec(params["lstm_bhh"].shape, c3),
        pl.BlockSpec(params["fc_wa"].shape, c2),
        pl.BlockSpec(params["fc_wb"].shape, c2),
        pl.BlockSpec(params["fc_b"].shape, c2),
    ]
    return pl.pallas_call(
        gnn_encoder_kernel,
        grid=(Sg,),
        in_specs=in_specs,
        out_specs=pl.BlockSpec((Bp, Op), c2),
        out_shape=jax.ShapeDtypeStruct((Bp, Op), jnp.float32),
        scratch_shapes=[pltpu.VMEM((Sg, Bp, Dp), jnp.float32)],
        compiler_params=pltpu.CompilerParams(
            dimension_semantics=("arbitrary",)),
    )(adj_stack, x_emb, mt, m_bn,
      params["ggnn_w"], params["gru_wih"], params["gru_whh"],
      params["gru_bih"], params["gru_bhh"],
      params["gate_w1"], params["gate_b1"], params["gate_w2"], params["gate_b2"],
      params["lstm_wih"], params["lstm_whh"], params["lstm_bih"], params["lstm_bhh"],
      params["fc_wa"], params["fc_wb"], params["fc_b"])


# ----------------------------------------------------------------------------
# Host-side graph partitioning (data-dependent python, mirrors the module)
# ----------------------------------------------------------------------------
# TODO(synk): partition_graph is inherently data-dependent host python, exactly as
# in the torch module's .item() loops; it has no clean Pallas equivalent.
def partition_graph(num_nodes, edge_index, edge_attr, subgraph_node_num,
                    real_graph_num, ptr):
    subgraph_num = int(max(real_graph_num))
    batch_size = subgraph_node_num.shape[0]
    start_node_num = [1 for _ in range(batch_size)]
    nodes_list = []
    for i in range(subgraph_num):
        sub_nodes = []
        for j in range(batch_size):
            cnt = int(subgraph_node_num[j][i])
            if cnt != 0:
                base = int(ptr[j]) + start_node_num[j]
                for k in range(base, base + cnt):
                    sub_nodes.append(k)
                start_node_num[j] += cnt
        nodes_list.append(sub_nodes)
    node_subgraph_index = [0 for _ in range(num_nodes)]
    for i, nodes in enumerate(nodes_list):
        for node in nodes:
            node_subgraph_index[node] = i
    sub_src = [[] for _ in range(subgraph_num)]
    sub_tgt = [[] for _ in range(subgraph_num)]
    sub_attr = [[] for _ in range(subgraph_num)]
    for e in range(edge_index.shape[1]):
        src = int(edge_index[0, e])
        tgt = int(edge_index[1, e])
        g = node_subgraph_index[tgt]
        sub_src[g].append(src)
        sub_tgt[g].append(tgt)
        sub_attr[g].append(int(edge_attr[e]))
    edge_index_list = [np.array([sub_src[i], sub_tgt[i]], dtype=np.int32)
                       for i in range(subgraph_num)]
    edge_attr_list = [np.array(sub_attr[i], dtype=np.int32)
                      for i in range(subgraph_num)]
    return edge_index_list, edge_attr_list


def build_adjacency(n_pad, edge_index, edge_attr, edge_embed):
    A = jnp.zeros((n_pad, n_pad), jnp.float32)
    if edge_index.shape[1] == 0:
        return A
    src = jnp.asarray(edge_index[0], jnp.int32)
    tgt = jnp.asarray(edge_index[1], jnp.int32)
    w = edge_embed[jnp.asarray(edge_attr, jnp.int32), 0]            # [E]
    return A.at[tgt, src].add(w)


# ----------------------------------------------------------------------------
# Deterministic parameter init in padded, lane-aligned, bf16-weight layout
# ----------------------------------------------------------------------------
def init_params(key, vocab_len, D, Dp, G, Gp, gnn_layers, lstm_layers,
                H, Hp, O, Op):
    assert Dp == Hp, "stacked LSTM weights require padded D == padded H"
    bf16 = jnp.bfloat16
    keys = iter(jax.random.split(key, 128))

    def u(shape, scale=0.1):
        return jax.random.uniform(next(keys), shape, jnp.float32, -1.0, 1.0) * scale

    def pad2(a, rows, cols, dtype=jnp.float32):
        return (jnp.zeros((rows, cols), jnp.float32)
                .at[:a.shape[0], :a.shape[1]].set(a).astype(dtype))

    def gate_pack(blocks, rows_p, gate_p, dtype=jnp.float32):
        out = jnp.zeros((rows_p, len(blocks) * gate_p), jnp.float32)
        for k, b in enumerate(blocks):
            out = out.at[:b.shape[0], k * gate_p:k * gate_p + b.shape[1]].set(b)
        return out.astype(dtype)

    p = {
        "embed": pad2(u((vocab_len, D), 0.5), vocab_len, Dp),
        "edge_embed": u((4, 1), 0.5),
    }
    ggnn = jnp.zeros((gnn_layers, Dp, Dp), jnp.float32)
    for l in range(gnn_layers):
        ggnn = ggnn.at[l, :D, :D].set(u((D, D)))
    p["ggnn_w"] = ggnn.astype(bf16)
    # GRUCell, gate order (r, z, n), per-gate lane-padded blocks
    p["gru_wih"] = gate_pack([u((D, D)) for _ in range(3)], Dp, Dp, bf16)
    p["gru_whh"] = gate_pack([u((D, D)) for _ in range(3)], Dp, Dp, bf16)
    p["gru_bih"] = gate_pack([u((1, D)) for _ in range(3)], 1, Dp)
    p["gru_bhh"] = gate_pack([u((1, D)) for _ in range(3)], 1, Dp)
    # mlp_gate: Linear(D,300) -> Sigmoid -> Linear(300,1) -> Sigmoid
    p["gate_w1"] = pad2(u((D, G)), Dp, Gp, bf16)
    p["gate_b1"] = pad2(u((1, G)), 1, Gp)
    p["gate_w2"] = pad2(u((1, G)), 1, Gp)       # row layout for lane reduction
    p["gate_b2"] = u((1, 1))
    # LSTM, gate order (i, f, g, o), stacked over layers
    wih_l, whh_l, bih_l, bhh_l = [], [], [], []
    for l in range(lstm_layers):
        in_r = D if l == 0 else H
        wih_l.append(gate_pack([u((in_r, H)) for _ in range(4)], Dp, Hp))
        whh_l.append(gate_pack([u((H, H)) for _ in range(4)], Hp, Hp))
        bih_l.append(gate_pack([u((1, H)) for _ in range(4)], 1, Hp))
        bhh_l.append(gate_pack([u((1, H)) for _ in range(4)], 1, Hp))
    p["lstm_wih"] = jnp.stack(wih_l).astype(bf16)
    p["lstm_whh"] = jnp.stack(whh_l).astype(bf16)
    p["lstm_bih"] = jnp.stack(bih_l)
    p["lstm_bhh"] = jnp.stack(bhh_l)
    # fc(concat(lstm_last[H], graph_pool[D])) -> O, weight split in two
    p["fc_wa"] = pad2(u((H, O)), Hp, Op, bf16)
    p["fc_wb"] = pad2(u((D, O)), Dp, Op, bf16)
    p["fc_b"] = pad2(u((1, O)), 1, Op)
    return p


# ----------------------------------------------------------------------------
# Full GNNEncoder forward
# ----------------------------------------------------------------------------
def gnn_encoder_forward(params, x_ids, edge_index, edge_attr, subgraph_node_num,
                        real_graph_num, batch, ptr, out_dim):
    N = int(x_ids.shape[0])
    B = int(np.max(batch)) + 1
    Np = round_up(N, 8)
    Bp = round_up(B, 8)
    Dp = params["embed"].shape[1]

    edge_index_list, edge_attr_list = partition_graph(
        N, edge_index, edge_attr, subgraph_node_num, real_graph_num, ptr)

    # embedding gather (glue) + pad nodes to a sublane multiple
    ids = jnp.asarray(x_ids[:, 0], jnp.int32)
    x_emb = jnp.zeros((Np, Dp), jnp.float32).at[:N].set(
        jnp.take(params["embed"], ids, axis=0))

    # graph-membership matrices for pooling (padded nodes/graphs are zero rows/cols)
    mt_real = (jnp.asarray(batch, jnp.int32)[:, None]
               == jnp.arange(B, dtype=jnp.int32)[None, :]).astype(jnp.float32)
    mt = jnp.zeros((Np, Bp), jnp.float32).at[:N, :B].set(mt_real)
    m_bn = mt.T

    # stacked per-view dense adjacency (S subgraphs + full graph), stored bf16
    # TODO(synk): for large N, tile the A @ M aggregation over (row, k) blocks or keep
    # edges sparse (scalar-prefetch gather) instead of a dense [Np, Np] slice per view.
    adjs = [build_adjacency(Np, ei, ea, params["edge_embed"])
            for ei, ea in zip(edge_index_list, edge_attr_list)]
    adjs.append(build_adjacency(Np, edge_index, edge_attr, params["edge_embed"]))
    adj_stack = jnp.stack(adjs, axis=0).astype(jnp.bfloat16)        # [S+1, Np, Np]

    out_p = run_gnn_encoder(adj_stack, x_emb, mt, m_bn, params)     # [Bp, Op]
    return out_p[:B, :out_dim]


# ----------------------------------------------------------------------------
if __name__ == "__main__":
    vocab_len = 20
    D = 16                   # graph_embedding_size
    G = 300                  # mlp_gate hidden
    gnn_layers = 2
    lstm_layers = 2
    H = 32                   # lstm_hidden_size
    O = 24                   # decoder_input_size
    Dp = round_up(D, 128)
    Gp = round_up(G, 128)
    Hp = round_up(H, 128)
    Op = round_up(O, 128)

    # two graphs: 5 + 6 nodes
    node_counts = [5, 6]
    N = sum(node_counts)
    B = len(node_counts)
    ptr = np.array([0, 5, 11], dtype=np.int32)
    batch = np.array([0] * 5 + [1] * 6, dtype=np.int32)

    key = jax.random.PRNGKey(0)
    k_ids, k_par = jax.random.split(key)
    x_ids = np.asarray(jax.random.randint(k_ids, (N, 1), 0, vocab_len), np.int32)

    edge_index = np.array([
        [0, 1, 2, 3, 1, 5, 6, 7, 8, 9, 6],
        [1, 2, 3, 4, 4, 6, 7, 8, 9, 10, 10],
    ], dtype=np.int32)
    E = edge_index.shape[1]
    edge_attr = (np.arange(E, dtype=np.int32) % 4).astype(np.int32)

    subgraph_node_num = np.array([[2, 2], [3, 2]], dtype=np.int32)
    real_graph_num = [2, 2]

    params = init_params(k_par, vocab_len, D, Dp, G, Gp, gnn_layers,
                         lstm_layers, H, Hp, O, Op)

    out = gnn_encoder_forward(params, x_ids, edge_index, edge_attr,
                              subgraph_node_num, real_graph_num, batch, ptr, O)
    out = jax.block_until_ready(out)
    assert out.shape == (B, O), out.shape
    assert bool(jnp.all(jnp.isfinite(out)))
    print("KERNEL_OK")
</pallas_src>

<mosaic_0001>
module attributes {stable_mosaic.version = 11 : i64} {
  func.func @gnn_encoder_kernel(%arg0: i32, %arg1: memref<1x16x16xbf16, #tpu.memory_space<vmem>>, %arg2: memref<16x128xf32, #tpu.memory_space<vmem>>, %arg3: memref<16x8xf32, #tpu.memory_space<vmem>>, %arg4: memref<8x16xf32, #tpu.memory_space<vmem>>, %arg5: memref<2x128x128xbf16, #tpu.memory_space<vmem>>, %arg6: memref<128x384xbf16, #tpu.memory_space<vmem>>, %arg7: memref<128x384xbf16, #tpu.memory_space<vmem>>, %arg8: memref<1x384xf32, #tpu.memory_space<vmem>>, %arg9: memref<1x384xf32, #tpu.memory_space<vmem>>, %arg10: memref<128x384xbf16, #tpu.memory_space<vmem>>, %arg11: memref<1x384xf32, #tpu.memory_space<vmem>>, %arg12: memref<1x384xf32, #tpu.memory_space<vmem>>, %arg13: memref<1x1xf32, #tpu.memory_space<vmem>>, %arg14: memref<2x128x512xbf16, #tpu.memory_space<vmem>>, %arg15: memref<2x128x512xbf16, #tpu.memory_space<vmem>>, %arg16: memref<2x1x512xf32, #tpu.memory_space<vmem>>, %arg17: memref<2x1x512xf32, #tpu.memory_space<vmem>>, %arg18: memref<128x128xbf16, #tpu.memory_space<vmem>>, %arg19: memref<128x128xbf16, #tpu.memory_space<vmem>>, %arg20: memref<1x128xf32, #tpu.memory_space<vmem>>, %arg21: memref<8x128xf32, #tpu.memory_space<vmem>>, %arg22: memref<3x8x128xf32, #tpu.memory_space<vmem>>) attributes {dimension_semantics = [#tpu.dimension_semantics<arbitrary>], iteration_bounds = array<i64: 3>, scalar_prefetch = 0 : i64, scratch_operands = 1 : i64, tpu.core_type = #tpu.core_type<tc>, window_params = [{transform_indices = @transform_0, window_bounds = array<i64: 1, 16, 16>}, {pipeline_mode = #tpu.pipeline_mode<synchronous>, transform_indices = @transform_1, window_bounds = array<i64: 16, 128>}, {pipeline_mode = #tpu.pipeline_mode<synchronous>, transform_indices = @transform_2, window_bounds = array<i64: 16, 8>}, {pipeline_mode = #tpu.pipeline_mode<synchronous>, transform_indices = @transform_3, window_bounds = array<i64: 8, 16>}, {pipeline_mode = #tpu.pipeline_mode<synchronous>, transform_indices = @transform_4, window_bounds = array<i64: 2, 128, 128>}, {pipeline_mode = #tpu.pipeline_mode<synchronous>, transform_indices = @transform_5, window_bounds = array<i64: 128, 384>}, {pipeline_mode = #tpu.pipeline_mode<synchronous>, transform_indices = @transform_6, window_bounds = array<i64: 128, 384>}, {pipeline_mode = #tpu.pipeline_mode<synchronous>, transform_indices = @transform_7, window_bounds = array<i64: 1, 384>}, {pipeline_mode = #tpu.pipeline_mode<synchronous>, transform_indices = @transform_8, window_bounds = array<i64: 1, 384>}, {pipeline_mode = #tpu.pipeline_mode<synchronous>, transform_indices = @transform_9, window_bounds = array<i64: 128, 384>}, {pipeline_mode = #tpu.pipeline_mode<synchronous>, transform_indices = @transform_10, window_bounds = array<i64: 1, 384>}, {pipeline_mode = #tpu.pipeline_mode<synchronous>, transform_indices = @transform_11, window_bounds = array<i64: 1, 384>}, {pipeline_mode = #tpu.pipeline_mode<synchronous>, transform_indices = @transform_12, window_bounds = array<i64: 1, 1>}, {pipeline_mode = #tpu.pipeline_mode<synchronous>, transform_indices = @transform_13, window_bounds = array<i64: 2, 128, 512>}, {pipeline_mode = #tpu.pipeline_mode<synchronous>, transform_indices = @transform_14, window_bounds = array<i64: 2, 128, 512>}, {pipeline_mode = #tpu.pipeline_mode<synchronous>, transform_indices = @transform_15, window_bounds = array<i64: 2, 1, 512>}, {pipeline_mode = #tpu.pipeline_mode<synchronous>, transform_indices = @transform_16, window_bounds = array<i64: 2, 1, 512>}, {pipeline_mode = #tpu.pipeline_mode<synchronous>, transform_indices = @transform_17, window_bounds = array<i64: 128, 128>}, {pipeline_mode = #tpu.pipeline_mode<synchronous>, transform_indices = @transform_18, window_bounds = array<i64: 128, 128>}, {pipeline_mode = #tpu.pipeline_mode<synchronous>, transform_indices = @transform_19, window_bounds = array<i64: 1, 128>}, {pipeline_mode = #tpu.pipeline_mode<synchronous>, transform_indices = @transform_20, window_bounds = array<i64: 8, 128>}]} {
    %c0 = arith.constant 0 : index
    %c0_0 = arith.constant 0 : index
    %c0_1 = arith.constant 0 : index
    %0 = vector.load %arg1[%c0, %c0_0, %c0_1] : memref<1x16x16xbf16, #tpu.memory_space<vmem>>, vector<1x16x16xbf16>
    %1 = vector.shape_cast %0 : vector<1x16x16xbf16> to vector<16x16xbf16>
    %c0_2 = arith.constant 0 : index
    %c0_3 = arith.constant 0 : index
    %2 = vector.load %arg2[%c0_2, %c0_3] : memref<16x128xf32, #tpu.memory_space<vmem>>, vector<16x128xf32>
    %c0_4 = arith.constant 0 : index
    %c0_5 = arith.constant 0 : index
    %3 = vector.load %arg6[%c0_4, %c0_5] : memref<128x384xbf16, #tpu.memory_space<vmem>>, vector<128x384xbf16>
    %c0_6 = arith.constant 0 : index
    %c0_7 = arith.constant 0 : index
    %4 = vector.load %arg7[%c0_6, %c0_7] : memref<128x384xbf16, #tpu.memory_space<vmem>>, vector<128x384xbf16>
    %c0_8 = arith.constant 0 : index
    %c0_9 = arith.constant 0 : index
    %5 = vector.load %arg8[%c0_8, %c0_9] : memref<1x384xf32, #tpu.memory_space<vmem>>, vector<1x384xf32>
    %6 = vector.shape_cast %5 : vector<1x384xf32> to vector<1x384xf32>
    %7 = vector.broadcast %6 : vector<1x384xf32> to vector<16x384xf32>
    %c0_10 = arith.constant 0 : index
    %c0_11 = arith.constant 0 : index
    %8 = vector.load %arg9[%c0_10, %c0_11] : memref<1x384xf32, #tpu.memory_space<vmem>>, vector<1x384xf32>
    %9 = vector.shape_cast %8 : vector<1x384xf32> to vector<1x384xf32>
    %10 = vector.broadcast %9 : vector<1x384xf32> to vector<16x384xf32>
    %11 = arith.truncf %2 : vector<16x128xf32> to vector<16x128xbf16>
    %c0_12 = arith.constant 0 : index
    %c0_13 = arith.constant 0 : index
    %c0_14 = arith.constant 0 : index
    %12 = vector.load %arg5[%c0_12, %c0_13, %c0_14] : memref<2x128x128xbf16, #tpu.memory_space<vmem>>, vector<1x128x128xbf16>
    %13 = vector.shape_cast %12 : vector<1x128x128xbf16> to vector<128x128xbf16>
    %cst = arith.constant dense<0.000000e+00> : vector<16x128xf32>
    %14 = tpu.matmul %11, %13, %cst {dimension_numbers = #tpu.dot_dimension_numbers<[1], [0], [0], [1], [0, 0, 1, 1], [], []>} : vector<16x128xbf16>, vector<128x128xbf16>, vector<16x128xf32> -> vector<16x128xf32>
    %15 = arith.truncf %14 : vector<16x128xf32> to vector<16x128xbf16>
    %cst_15 = arith.constant dense<0.000000e+00> : vector<16x128xf32>
    %16 = tpu.matmul %1, %15, %cst_15 {dimension_numbers = #tpu.dot_dimension_numbers<[1], [0], [0], [1], [0, 0, 1, 1], [], []>} : vector<16x16xbf16>, vector<16x128xbf16>, vector<16x128xf32> -> vector<16x128xf32>
    %17 = arith.truncf %16 : vector<16x128xf32> to vector<16x128xbf16>
    %cst_16 = arith.constant dense<0.000000e+00> : vector<16x384xf32>
    %18 = tpu.matmul %17, %3, %cst_16 {dimension_numbers = #tpu.dot_dimension_numbers<[1], [0], [0], [1], [0, 0, 1, 1], [], []>} : vector<16x128xbf16>, vector<128x384xbf16>, vector<16x384xf32> -> vector<16x384xf32>
    %19 = arith.addf %18, %7 : vector<16x384xf32>
    %cst_17 = arith.constant dense<0.000000e+00> : vector<16x384xf32>
    %20 = tpu.matmul %11, %4, %cst_17 {dimension_numbers = #tpu.dot_dimension_numbers<[1], [0], [0], [1], [0, 0, 1, 1], [], []>} : vector<16x128xbf16>, vector<128x384xbf16>, vector<16x384xf32> -> vector<16x384xf32>
    %21 = arith.addf %20, %10 : vector<16x384xf32>
    %22 = vector.extract_strided_slice %19 {offsets = [0, 0], sizes = [16, 128], strides = [1, 1]} : vector<16x384xf32> to vector<16x128xf32>
    %23 = vector.extract_strided_slice %21 {offsets = [0, 0], sizes = [16, 128], strides = [1, 1]} : vector<16x384xf32> to vector<16x128xf32>
    %24 = arith.addf %22, %23 : vector<16x128xf32>
    %25 = arith.negf %24 : vector<16x128xf32>
    %26 = math.exp %25 : vector<16x128xf32>
    %cst_18 = arith.constant 1.000000e+00 : f32
    %27 = vector.broadcast %cst_18 : f32 to vector<16x128xf32>
    %28 = arith.addf %27, %26 : vector<16x128xf32>
    %29 = arith.divf %27, %28 : vector<16x128xf32>
    %30 = vector.extract_strided_slice %19 {offsets = [0, 128], sizes = [16, 128], strides = [1, 1]} : vector<16x384xf32> to vector<16x128xf32>
    %31 = vector.extract_strided_slice %21 {offsets = [0, 128], sizes = [16, 128], strides = [1, 1]} : vector<16x384xf32> to vector<16x128xf32>
    %32 = arith.addf %30, %31 : vector<16x128xf32>
    %33 = arith.negf %32 : vector<16x128xf32>
    %34 = math.exp %33 : vector<16x128xf32>
    %cst_19 = arith.constant 1.000000e+00 : f32
    %35 = vector.broadcast %cst_19 : f32 to vector<16x128xf32>
    %36 = arith.addf %35, %34 : vector<16x128xf32>
    %37 = arith.divf %35, %36 : vector<16x128xf32>
    %38 = vector.extract_strided_slice %19 {offsets = [0, 256], sizes = [16, 128], strides = [1, 1]} : vector<16x384xf32> to vector<16x128xf32>
    %39 = vector.extract_strided_slice %21 {offsets = [0, 256], sizes = [16, 128], strides = [1, 1]} : vector<16x384xf32> to vector<16x128xf32>
    %40 = arith.mulf %29, %39 : vector<16x128xf32>
    %41 = arith.addf %38, %40 : vector<16x128xf32>
    %42 = math.tanh %41 : vector<16x128xf32>
    %cst_20 = arith.constant 1.000000e+00 : f32
    %43 = vector.broadcast %cst_20 : f32 to vector<16x128xf32>
    %44 = arith.subf %43, %37 : vector<16x128xf32>
    %45 = arith.mulf %44, %42 : vector<16x128xf32>
    %46 = arith.mulf %37, %2 : vector<16x128xf32>
    %47 = arith.addf %45, %46 : vector<16x128xf32>
    %48 = arith.truncf %47 : vector<16x128xf32> to vector<16x128xbf16>
    %c1 = arith.constant 1 : index
    %c0_21 = arith.constant 0 : index
    %c0_22 = arith.constant 0 : index
    %49 = vector.load %arg5[%c1, %c0_21, %c0_22] : memref<2x128x128xbf16, #tpu.memory_space<vmem>>, vector<1x128x128xbf16>
    %50 = vector.shape_cast %49 : vector<1x128x128xbf16> to vector<128x128xbf16>
    %cst_23 = arith.constant dense<0.000000e+00> : vector<16x128xf32>
    %51 = tpu.matmul %48, %50, %cst_23 {dimension_numbers = #tpu.dot_dimension_numbers<[1], [0], [0], [1], [0, 0, 1, 1], [], []>} : vector<16x128xbf16>, vector<128x128xbf16>, vector<16x128xf32> -> vector<16x128xf32>
    %52 = arith.truncf %51 : vector<16x128xf32> to vector<16x128xbf16>
    %cst_24 = arith.constant dense<0.000000e+00> : vector<16x128xf32>
    %53 = tpu.matmul %1, %52, %cst_24 {dimension_numbers = #tpu.dot_dimension_numbers<[1], [0], [0], [1], [0, 0, 1, 1], [], []>} : vector<16x16xbf16>, vector<16x128xbf16>, vector<16x128xf32> -> vector<16x128xf32>
    %54 = arith.truncf %53 : vector<16x128xf32> to vector<16x128xbf16>
    %cst_25 = arith.constant dense<0.000000e+00> : vector<16x384xf32>
    %55 = tpu.matmul %54, %3, %cst_25 {dimension_numbers = #tpu.dot_dimension_numbers<[1], [0], [0], [1], [0, 0, 1, 1], [], []>} : vector<16x128xbf16>, vector<128x384xbf16>, vector<16x384xf32> -> vector<16x384xf32>
    %56 = arith.addf %55, %7 : vector<16x384xf32>
    %cst_26 = arith.constant dense<0.000000e+00> : vector<16x384xf32>
    %57 = tpu.matmul %48, %4, %cst_26 {dimension_numbers = #tpu.dot_dimension_numbers<[1], [0], [0], [1], [0, 0, 1, 1], [], []>} : vector<16x128xbf16>, vector<128x384xbf16>, vector<16x384xf32> -> vector<16x384xf32>
    %58 = arith.addf %57, %10 : vector<16x384xf32>
    %59 = vector.extract_strided_slice %56 {offsets = [0, 0], sizes = [16, 128], strides = [1, 1]} : vector<16x384xf32> to vector<16x128xf32>
    %60 = vector.extract_strided_slice %58 {offsets = [0, 0], sizes = [16, 128], strides = [1, 1]} : vector<16x384xf32> to vector<16x128xf32>
    %61 = arith.addf %59, %60 : vector<16x128xf32>
    %62 = arith.negf %61 : vector<16x128xf32>
    %63 = math.exp %62 : vector<16x128xf32>
    %cst_27 = arith.constant 1.000000e+00 : f32
    %64 = vector.broadcast %cst_27 : f32 to vector<16x128xf32>
    %65 = arith.addf %64, %63 : vector<16x128xf32>
    %66 = arith.divf %64, %65 : vector<16x128xf32>
    %67 = vector.extract_strided_slice %56 {offsets = [0, 128], sizes = [16, 128], strides = [1, 1]} : vector<16x384xf32> to vector<16x128xf32>
    %68 = vector.extract_strided_slice %58 {offsets = [0, 128], sizes = [16, 128], strides = [1, 1]} : vector<16x384xf32> to vector<16x128xf32>
    %69 = arith.addf %67, %68 : vector<16x128xf32>
    %70 = arith.negf %69 : vector<16x128xf32>
    %71 = math.exp %70 : vector<16x128xf32>
    %cst_28 = arith.constant 1.000000e+00 : f32
    %72 = vector.broadcast %cst_28 : f32 to vector<16x128xf32>
    %73 = arith.addf %72, %71 : vector<16x128xf32>
    %74 = arith.divf %72, %73 : vector<16x128xf32>
    %75 = vector.extract_strided_slice %56 {offsets = [0, 256], sizes = [16, 128], strides = [1, 1]} : vector<16x384xf32> to vector<16x128xf32>
    %76 = vector.extract_strided_slice %58 {offsets = [0, 256], sizes = [16, 128], strides = [1, 1]} : vector<16x384xf32> to vector<16x128xf32>
    %77 = arith.mulf %66, %76 : vector<16x128xf32>
    %78 = arith.addf %75, %77 : vector<16x128xf32>
    %79 = math.tanh %78 : vector<16x128xf32>
    %cst_29 = arith.constant 1.000000e+00 : f32
    %80 = vector.broadcast %cst_29 : f32 to vector<16x128xf32>
    %81 = arith.subf %80, %74 : vector<16x128xf32>
    %82 = arith.mulf %81, %79 : vector<16x128xf32>
    %83 = arith.mulf %74, %47 : vector<16x128xf32>
    %84 = arith.addf %82, %83 : vector<16x128xf32>
    %c0_30 = arith.constant 0 : index
    %c0_31 = arith.constant 0 : index
    %85 = vector.load %arg3[%c0_30, %c0_31] : memref<16x8xf32, #tpu.memory_space<vmem>>, vector<16x8xf32>
    %86 = arith.truncf %84 : vector<16x128xf32> to vector<16x128xbf16>
    %c0_32 = arith.constant 0 : index
    %c0_33 = arith.constant 0 : index
    %87 = vector.load %arg10[%c0_32, %c0_33] : memref<128x384xbf16, #tpu.memory_space<vmem>>, vector<128x384xbf16>
    %cst_34 = arith.constant dense<0.000000e+00> : vector<16x384xf32>
    %88 = tpu.matmul %86, %87, %cst_34 {dimension_numbers = #tpu.dot_dimension_numbers<[1], [0], [0], [1], [0, 0, 1, 1], [], []>} : vector<16x128xbf16>, vector<128x384xbf16>, vector<16x384xf32> -> vector<16x384xf32>
    %c0_35 = arith.constant 0 : index
    %c0_36 = arith.constant 0 : index
    %89 = vector.load %arg11[%c0_35, %c0_36] : memref<1x384xf32, #tpu.memory_space<vmem>>, vector<1x384xf32>
    %90 = vector.broadcast %89 : vector<1x384xf32> to vector<16x384xf32>
    %91 = arith.addf %88, %90 : vector<16x384xf32>
    %92 = arith.negf %91 : vector<16x384xf32>
    %93 = math.exp %92 : vector<16x384xf32>
    %cst_37 = arith.constant 1.000000e+00 : f32
    %94 = vector.broadcast %cst_37 : f32 to vector<16x384xf32>
    %95 = arith.addf %94, %93 : vector<16x384xf32>
    %96 = arith.divf %94, %95 : vector<16x384xf32>
    %c0_38 = arith.constant 0 : index
    %c0_39 = arith.constant 0 : index
    %97 = vector.load %arg12[%c0_38, %c0_39] : memref<1x384xf32, #tpu.memory_space<vmem>>, vector<1x384xf32>
    %98 = vector.broadcast %97 : vector<1x384xf32> to vector<16x384xf32>
    %99 = arith.mulf %96, %98 : vector<16x384xf32>
    %cst_40 = arith.constant dense<0.000000e+00> : vector<16xf32>
    %100 = vector.multi_reduction <add>, %99, %cst_40 [1] : vector<16x384xf32> to vector<16xf32>
    %101 = vector.shape_cast %100 : vector<16xf32> to vector<16x1xf32>
    %c0_41 = arith.constant 0 : index
    %c0_42 = arith.constant 0 : index
    %102 = vector.load %arg13[%c0_41, %c0_42] : memref<1x1xf32, #tpu.memory_space<vmem>>, vector<1x1xf32>
    %103 = vector.broadcast %102 : vector<1x1xf32> to vector<16x1xf32>
    %104 = arith.addf %101, %103 : vector<16x1xf32>
    %105 = arith.negf %104 : vector<16x1xf32>
    %106 = math.exp %105 : vector<16x1xf32>
    %cst_43 = arith.constant 1.000000e+00 : f32
    %107 = vector.broadcast %cst_43 : f32 to vector<16x1xf32>
    %108 = arith.addf %107, %106 : vector<16x1xf32>
    %109 = arith.divf %107, %108 : vector<16x1xf32>
    %cst_44 = arith.constant 5.000000e-01 : f32
    %110 = vector.broadcast %cst_44 : f32 to vector<16x8xf32>
    %111 = arith.cmpf ogt, %85, %110 : vector<16x8xf32>
    %112 = vector.shape_cast %109 : vector<16x1xf32> to vector<16x1xf32>
    %113 = vector.broadcast %112 : vector<16x1xf32> to vector<16x8xf32>
    %cst_45 = arith.constant -1.000000e+30 : f32
    %114 = vector.broadcast %cst_45 : f32 to vector<16x8xf32>
    %115 = arith.select %111, %113, %114 : vector<16x8xi1>, vector<16x8xf32>
    %cst_46 = arith.constant dense<0xFF800000> : vector<8xf32>
    %116 = vector.multi_reduction <maximumf>, %115, %cst_46 [0] : vector<16x8xf32> to vector<8xf32>
    %117 = vector.shape_cast %116 : vector<8xf32> to vector<1x8xf32>
    %118 = vector.broadcast %117 : vector<1x8xf32> to vector<16x8xf32>
    %119 = arith.subf %115, %118 : vector<16x8xf32>
    %120 = math.exp %119 : vector<16x8xf32>
    %121 = arith.mulf %120, %85 : vector<16x8xf32>
    %cst_47 = arith.constant dense<0.000000e+00> : vector<8xf32>
    %122 = vector.multi_reduction <add>, %121, %cst_47 [0] : vector<16x8xf32> to vector<8xf32>
    %123 = vector.shape_cast %122 : vector<8xf32> to vector<1x8xf32>
    %cst_48 = arith.constant 9.99999968E-21 : f32
    %124 = vector.broadcast %cst_48 : f32 to vector<1x8xf32>
    %125 = arith.maximumf %123, %124 : vector<1x8xf32>
    %126 = tpu.reciprocal %125 {approx = true} : vector<1x8xf32> -> vector<1x8xf32>
    %127 = vector.broadcast %126 : vector<1x8xf32> to vector<16x8xf32>
    %128 = arith.mulf %121, %127 : vector<16x8xf32>
    %cst_49 = arith.constant dense<0.000000e+00> : vector<16xf32>
    %129 = vector.multi_reduction <add>, %128, %cst_49 [1] : vector<16x8xf32> to vector<16xf32>
    %130 = vector.shape_cast %129 : vector<16xf32> to vector<16x1xf32>
    %c0_50 = arith.constant 0 : index
    %c0_51 = arith.constant 0 : index
    %131 = vector.load %arg4[%c0_50, %c0_51] : memref<8x16xf32, #tpu.memory_space<vmem>>, vector<8x16xf32>
    %132 = vector.broadcast %130 : vector<16x1xf32> to vector<16x128xf32>
    %133 = arith.mulf %132, %84 : vector<16x128xf32>
    %cst_52 = arith.constant dense<0.000000e+00> : vector<8x128xf32>
    %134 = tpu.matmul %131, %133, %cst_52 {dimension_numbers = #tpu.dot_dimension_numbers<[1], [0], [0], [1], [0, 0, 1, 1], [], []>} : vector<8x16xf32>, vector<16x128xf32>, vector<8x128xf32> -> vector<8x128xf32>
    %135 = arith.index_cast %arg0 : i32 to index
    %c0_53 = arith.constant 0 : index
    %c0_54 = arith.constant 0 : index
    %136 = vector.load %arg22[%135, %c0_53, %c0_54] : memref<3x8x128xf32, #tpu.memory_space<vmem>>, vector<1x8x128xf32>
    %137 = vector.shape_cast %136 : vector<1x8x128xf32> to vector<8x128xf32>
    %138 = vector.shape_cast %134 : vector<8x128xf32> to vector<1x8x128xf32>
    tpu.vector_store %arg22[%135, %c0_53, %c0_54], %138 {strides = array<i32>} : memref<3x8x128xf32, #tpu.memory_space<vmem>>, vector<1x8x128xf32>,
    %c2_i32 = arith.constant 2 : i32
    %139 = arith.cmpi eq, %arg0, %c2_i32 : i32
    %140 = arith.extui %139 : i1 to i32
    %c0_i32 = arith.constant 0 : i32
    %141 = arith.cmpi ne, %140, %c0_i32 : i32
    scf.if %141 {
      %c0_55 = arith.constant 0 : index
      %c0_56 = arith.constant 0 : index
      %c0_57 = arith.constant 0 : index
      %142 = vector.load %arg14[%c0_55, %c0_56, %c0_57] : memref<2x128x512xbf16, #tpu.memory_space<vmem>>, vector<1x128x512xbf16>
      %143 = vector.shape_cast %142 : vector<1x128x512xbf16> to vector<128x512xbf16>
      %c1_58 = arith.constant 1 : index
      %c0_59 = arith.constant 0 : index
      %c0_60 = arith.constant 0 : index
      %144 = vector.load %arg14[%c1_58, %c0_59, %c0_60] : memref<2x128x512xbf16, #tpu.memory_space<vmem>>, vector<1x128x512xbf16>
      %145 = vector.shape_cast %144 : vector<1x128x512xbf16> to vector<128x512xbf16>
      %c0_61 = arith.constant 0 : index
      %c0_62 = arith.constant 0 : index
      %c0_63 = arith.constant 0 : index
      %146 = vector.load %arg15[%c0_61, %c0_62, %c0_63] : memref<2x128x512xbf16, #tpu.memory_space<vmem>>, vector<1x128x512xbf16>
      %147 = vector.shape_cast %146 : vector<1x128x512xbf16> to vector<128x512xbf16>
      %c1_64 = arith.constant 1 : index
      %c0_65 = arith.constant 0 : index
      %c0_66 = arith.constant 0 : index
      %148 = vector.load %arg15[%c1_64, %c0_65, %c0_66] : memref<2x128x512xbf16, #tpu.memory_space<vmem>>, vector<1x128x512xbf16>
      %149 = vector.shape_cast %148 : vector<1x128x512xbf16> to vector<128x512xbf16>
      %c0_67 = arith.constant 0 : index
      %c0_68 = arith.constant 0 : index
      %c0_69 = arith.constant 0 : index
      %150 = vector.load %arg16[%c0_67, %c0_68, %c0_69] : memref<2x1x512xf32, #tpu.memory_space<vmem>>, vector<1x1x512xf32>
      %151 = vector.shape_cast %150 : vector<1x1x512xf32> to vector<1x512xf32>
      %c0_70 = arith.constant 0 : index
      %c0_71 = arith.constant 0 : index
      %c0_72 = arith.constant 0 : index
      %152 = vector.load %arg17[%c0_70, %c0_71, %c0_72] : memref<2x1x512xf32, #tpu.memory_space<vmem>>, vector<1x1x512xf32>
      %153 = vector.shape_cast %152 : vector<1x1x512xf32> to vector<1x512xf32>
      %154 = arith.addf %151, %153 : vector<1x512xf32>
      %155 = vector.shape_cast %154 : vector<1x512xf32> to vector<1x512xf32>
      %156 = vector.broadcast %155 : vector<1x512xf32> to vector<8x512xf32>
      %c1_73 = arith.constant 1 : index
      %c0_74 = arith.constant 0 : index
      %c0_75 = arith.constant 0 : index
      %157 = vector.load %arg16[%c1_73, %c0_74, %c0_75] : memref<2x1x512xf32, #tpu.memory_space<vmem>>, vector<1x1x512xf32>
      %158 = vector.shape_cast %157 : vector<1x1x512xf32> to vector<1x512xf32>
      %c1_76 = arith.constant 1 : index
      %c0_77 = arith.constant 0 : index
      %c0_78 = arith.constant 0 : index
      %159 = vector.load %arg17[%c1_76, %c0_77, %c0_78] : memref<2x1x512xf32, #tpu.memory_space<vmem>>, vector<1x1x512xf32>
      %160 = vector.shape_cast %159 : vector<1x1x512xf32> to vector<1x512xf32>
      %161 = arith.addf %158, %160 : vector<1x512xf32>
      %162 = vector.shape_cast %161 : vector<1x512xf32> to vector<1x512xf32>
      %163 = vector.broadcast %162 : vector<1x512xf32> to vector<8x512xf32>
      %cst_79 = arith.constant 0.000000e+00 : f32
      %164 = vector.broadcast %cst_79 : f32 to vector<8x128xf32>
      %cst_80 = arith.constant 0.000000e+00 : f32
      %165 = vector.broadcast %cst_80 : f32 to vector<8x128xf32>
      %cst_81 = arith.constant 0.000000e+00 : f32
      %166 = vector.broadcast %cst_81 : f32 to vector<8x128xf32>
      %cst_82 = arith.constant 0.000000e+00 : f32
      %167 = vector.broadcast %cst_82 : f32 to vector<8x128xf32>
      %c0_83 = arith.constant 0 : index
      %c0_84 = arith.constant 0 : index
      %c0_85 = arith.constant 0 : index
      %168 = vector.load %arg22[%c0_83, %c0_84, %c0_85] : memref<3x8x128xf32, #tpu.memory_space<vmem>>, vector<1x8x128xf32>
      %169 = vector.shape_cast %168 : vector<1x8x128xf32> to vector<8x128xf32>
      %170 = arith.truncf %169 : vector<8x128xf32> to vector<8x128xbf16>
      %cst_86 = arith.constant dense<0.000000e+00> : vector<8x512xf32>
      %171 = tpu.matmul %170, %143, %cst_86 {dimension_numbers = #tpu.dot_dimension_numbers<[1], [0], [0], [1], [0, 0, 1, 1], [], []>} : vector<8x128xbf16>, vector<128x512xbf16>, vector<8x512xf32> -> vector<8x512xf32>
      %172 = arith.truncf %164 : vector<8x128xf32> to vector<8x128xbf16>
      %cst_87 = arith.constant dense<0.000000e+00> : vector<8x512xf32>
      %173 = tpu.matmul %172, %147, %cst_87 {dimension_numbers = #tpu.dot_dimension_numbers<[1], [0], [0], [1], [0, 0, 1, 1], [], []>} : vector<8x128xbf16>, vector<128x512xbf16>, vector<8x512xf32> -> vector<8x512xf32>
      %174 = arith.addf %171, %173 : vector<8x512xf32>
      %175 = arith.addf %174, %156 : vector<8x512xf32>
      %176 = vector.extract_strided_slice %175 {offsets = [0, 0], sizes = [8, 128], strides = [1, 1]} : vector<8x512xf32> to vector<8x128xf32>
      %177 = arith.negf %176 : vector<8x128xf32>
      %178 = math.exp %177 : vector<8x128xf32>
      %cst_88 = arith.constant 1.000000e+00 : f32
      %179 = vector.broadcast %cst_88 : f32 to vector<8x128xf32>
      %180 = arith.addf %179, %178 : vector<8x128xf32>
      %181 = arith.divf %179, %180 : vector<8x128xf32>
      %182 = vector.extract_strided_slice %175 {offsets = [0, 128], sizes = [8, 128], strides = [1, 1]} : vector<8x512xf32> to vector<8x128xf32>
      %183 = arith.negf %182 : vector<8x128xf32>
      %184 = math.exp %183 : vector<8x128xf32>
      %cst_89 = arith.constant 1.000000e+00 : f32
      %185 = vector.broadcast %cst_89 : f32 to vector<8x128xf32>
      %186 = arith.addf %185, %184 : vector<8x128xf32>
      %187 = arith.divf %185, %186 : vector<8x128xf32>
      %188 = vector.extract_strided_slice %175 {offsets = [0, 256], sizes = [8, 128], strides = [1, 1]} : vector<8x512xf32> to vector<8x128xf32>
      %189 = math.tanh %188 : vector<8x128xf32>
      %190 = vector.extract_strided_slice %175 {offsets = [0, 384], sizes = [8, 128], strides = [1, 1]} : vector<8x512xf32> to vector<8x128xf32>
      %191 = arith.negf %190 : vector<8x128xf32>
      %192 = math.exp %191 : vector<8x128xf32>
      %cst_90 = arith.constant 1.000000e+00 : f32
      %193 = vector.broadcast %cst_90 : f32 to vector<8x128xf32>
      %194 = arith.addf %193, %192 : vector<8x128xf32>
      %195 = arith.divf %193, %194 : vector<8x128xf32>
      %196 = arith.mulf %187, %166 : vector<8x128xf32>
      %197 = arith.mulf %181, %189 : vector<8x128xf32>
      %198 = arith.addf %196, %197 : vector<8x128xf32>
      %199 = math.tanh %198 : vector<8x128xf32>
      %200 = arith.mulf %195, %199 : vector<8x128xf32>
      %201 = arith.truncf %200 : vector<8x128xf32> to vector<8x128xbf16>
      %cst_91 = arith.constant dense<0.000000e+00> : vector<8x512xf32>
      %202 = tpu.matmul %201, %145, %cst_91 {dimension_numbers = #tpu.dot_dimension_numbers<[1], [0], [0], [1], [0, 0, 1, 1], [], []>} : vector<8x128xbf16>, vector<128x512xbf16>, vector<8x512xf32> -> vector<8x512xf32>
      %203 = arith.truncf %165 : vector<8x128xf32> to vector<8x128xbf16>
      %cst_92 = arith.constant dense<0.000000e+00> : vector<8x512xf32>
      %204 = tpu.matmul %203, %149, %cst_92 {dimension_numbers = #tpu.dot_dimension_numbers<[1], [0], [0], [1], [0, 0, 1, 1], [], []>} : vector<8x128xbf16>, vector<128x512xbf16>, vector<8x512xf32> -> vector<8x512xf32>
      %205 = arith.addf %202, %204 : vector<8x512xf32>
      %206 = arith.addf %205, %163 : vector<8x512xf32>
      %207 = vector.extract_strided_slice %206 {offsets = [0, 0], sizes = [8, 128], strides = [1, 1]} : vector<8x512xf32> to vector<8x128xf32>
      %208 = arith.negf %207 : vector<8x128xf32>
      %209 = math.exp %208 : vector<8x128xf32>
      %cst_93 = arith.constant 1.000000e+00 : f32
      %210 = vector.broadcast %cst_93 : f32 to vector<8x128xf32>
      %211 = arith.addf %210, %209 : vector<8x128xf32>
      %212 = arith.divf %210, %211 : vector<8x128xf32>
      %213 = vector.extract_strided_slice %206 {offsets = [0, 128], sizes = [8, 128], strides = [1, 1]} : vector<8x512xf32> to vector<8x128xf32>
      %214 = arith.negf %213 : vector<8x128xf32>
      %215 = math.exp %214 : vector<8x128xf32>
      %cst_94 = arith.constant 1.000000e+00 : f32
      %216 = vector.broadcast %cst_94 : f32 to vector<8x128xf32>
      %217 = arith.addf %216, %215 : vector<8x128xf32>
      %218 = arith.divf %216, %217 : vector<8x128xf32>
      %219 = vector.extract_strided_slice %206 {offsets = [0, 256], sizes = [8, 128], strides = [1, 1]} : vector<8x512xf32> to vector<8x128xf32>
      %220 = math.tanh %219 : vector<8x128xf32>
      %221 = vector.extract_strided_slice %206 {offsets = [0, 384], sizes = [8, 128], strides = [1, 1]} : vector<8x512xf32> to vector<8x128xf32>
      %222 = arith.negf %221 : vector<8x128xf32>
      %223 = math.exp %222 : vector<8x128xf32>
      %cst_95 = arith.constant 1.000000e+00 : f32
      %224 = vector.broadcast %cst_95 : f32 to vector<8x128xf32>
      %225 = arith.addf %224, %223 : vector<8x128xf32>
      %226 = arith.divf %224, %225 : vector<8x128xf32>
      %227 = arith.mulf %218, %167 : vector<8x128xf32>
      %228 = arith.mulf %212, %220 : vector<8x128xf32>
      %229 = arith.addf %227, %228 : vector<8x128xf32>
      %230 = math.tanh %229 : vector<8x128xf32>
      %231 = arith.mulf %226, %230 : vector<8x128xf32>
      %c1_96 = arith.constant 1 : index
      %c0_97 = arith.constant 0 : index
      %c0_98 = arith.constant 0 : index
      %232 = vector.load %arg22[%c1_96, %c0_97, %c0_98] : memref<3x8x128xf32, #tpu.memory_space<vmem>>, vector<1x8x128xf32>
      %233 = vector.shape_cast %232 : vector<1x8x128xf32> to vector<8x128xf32>
      %234 = arith.truncf %233 : vector<8x128xf32> to vector<8x128xbf16>
      %cst_99 = arith.constant dense<0.000000e+00> : vector<8x512xf32>
      %235 = tpu.matmul %234, %143, %cst_99 {dimension_numbers = #tpu.dot_dimension_numbers<[1], [0], [0], [1], [0, 0, 1, 1], [], []>} : vector<8x128xbf16>, vector<128x512xbf16>, vector<8x512xf32> -> vector<8x512xf32>
      %236 = arith.truncf %200 : vector<8x128xf32> to vector<8x128xbf16>
      %cst_100 = arith.constant dense<0.000000e+00> : vector<8x512xf32>
      %237 = tpu.matmul %236, %147, %cst_100 {dimension_numbers = #tpu.dot_dimension_numbers<[1], [0], [0], [1], [0, 0, 1, 1], [], []>} : vector<8x128xbf16>, vector<128x512xbf16>, vector<8x512xf32> -> vector<8x512xf32>
      %238 = arith.addf %235, %237 : vector<8x512xf32>
      %239 = arith.addf %238, %156 : vector<8x512xf32>
      %240 = vector.extract_strided_slice %239 {offsets = [0, 0], sizes = [8, 128], strides = [1, 1]} : vector<8x512xf32> to vector<8x128xf32>
      %241 = arith.negf %240 : vector<8x128xf32>
      %242 = math.exp %241 : vector<8x128xf32>
      %cst_101 = arith.constant 1.000000e+00 : f32
      %243 = vector.broadcast %cst_101 : f32 to vector<8x128xf32>
      %244 = arith.addf %243, %242 : vector<8x128xf32>
      %245 = arith.divf %243, %244 : vector<8x128xf32>
      %246 = vector.extract_strided_slice %239 {offsets = [0, 128], sizes = [8, 128], strides = [1, 1]} : vector<8x512xf32> to vector<8x128xf32>
      %247 = arith.negf %246 : vector<8x128xf32>
      %248 = math.exp %247 : vector<8x128xf32>
      %cst_102 = arith.constant 1.000000e+00 : f32
      %249 = vector.broadcast %cst_102 : f32 to vector<8x128xf32>
      %250 = arith.addf %249, %248 : vector<8x128xf32>
      %251 = arith.divf %249, %250 : vector<8x128xf32>
      %252 = vector.extract_strided_slice %239 {offsets = [0, 256], sizes = [8, 128], strides = [1, 1]} : vector<8x512xf32> to vector<8x128xf32>
      %253 = math.tanh %252 : vector<8x128xf32>
      %254 = vector.extract_strided_slice %239 {offsets = [0, 384], sizes = [8, 128], strides = [1, 1]} : vector<8x512xf32> to vector<8x128xf32>
      %255 = arith.negf %254 : vector<8x128xf32>
      %256 = math.exp %255 : vector<8x128xf32>
      %cst_103 = arith.constant 1.000000e+00 : f32
      %257 = vector.broadcast %cst_103 : f32 to vector<8x128xf32>
      %258 = arith.addf %257, %256 : vector<8x128xf32>
      %259 = arith.divf %257, %258 : vector<8x128xf32>
      %260 = arith.mulf %251, %198 : vector<8x128xf32>
      %261 = arith.mulf %245, %253 : vector<8x128xf32>
      %262 = arith.addf %260, %261 : vector<8x128xf32>
      %263 = math.tanh %262 : vector<8x128xf32>
      %264 = arith.mulf %259, %263 : vector<8x128xf32>
      %265 = arith.truncf %264 : vector<8x128xf32> to vector<8x128xbf16>
      %cst_104 = arith.constant dense<0.000000e+00> : vector<8x512xf32>
      %266 = tpu.matmul %265, %145, %cst_104 {dimension_numbers = #tpu.dot_dimension_numbers<[1], [0], [0], [1], [0, 0, 1, 1], [], []>} : vector<8x128xbf16>, vector<128x512xbf16>, vector<8x512xf32> -> vector<8x512xf32>
      %267 = arith.truncf %231 : vector<8x128xf32> to vector<8x128xbf16>
      %cst_105 = arith.constant dense<0.000000e+00> : vector<8x512xf32>
      %268 = tpu.matmul %267, %149, %cst_105 {dimension_numbers = #tpu.dot_dimension_numbers<[1], [0], [0], [1], [0, 0, 1, 1], [], []>} : vector<8x128xbf16>, vector<128x512xbf16>, vector<8x512xf32> -> vector<8x512xf32>
      %269 = arith.addf %266, %268 : vector<8x512xf32>
      %270 = arith.addf %269, %163 : vector<8x512xf32>
      %271 = vector.extract_strided_slice %270 {offsets = [0, 0], sizes = [8, 128], strides = [1, 1]} : vector<8x512xf32> to vector<8x128xf32>
      %272 = arith.negf %271 : vector<8x128xf32>
      %273 = math.exp %272 : vector<8x128xf32>
      %cst_106 = arith.constant 1.000000e+00 : f32
      %274 = vector.broadcast %cst_106 : f32 to vector<8x128xf32>
      %275 = arith.addf %274, %273 : vector<8x128xf32>
      %276 = arith.divf %274, %275 : vector<8x128xf32>
      %277 = vector.extract_strided_slice %270 {offsets = [0, 128], sizes = [8, 128], strides = [1, 1]} : vector<8x512xf32> to vector<8x128xf32>
      %278 = arith.negf %277 : vector<8x128xf32>
      %279 = math.exp %278 : vector<8x128xf32>
      %cst_107 = arith.constant 1.000000e+00 : f32
      %280 = vector.broadcast %cst_107 : f32 to vector<8x128xf32>
      %281 = arith.addf %280, %279 : vector<8x128xf32>
      %282 = arith.divf %280, %281 : vector<8x128xf32>
      %283 = vector.extract_strided_slice %270 {offsets = [0, 256], sizes = [8, 128], strides = [1, 1]} : vector<8x512xf32> to vector<8x128xf32>
      %284 = math.tanh %283 : vector<8x128xf32>
      %285 = vector.extract_strided_slice %270 {offsets = [0, 384], sizes = [8, 128], strides = [1, 1]} : vector<8x512xf32> to vector<8x128xf32>
      %286 = arith.negf %285 : vector<8x128xf32>
      %287 = math.exp %286 : vector<8x128xf32>
      %cst_108 = arith.constant 1.000000e+00 : f32
      %288 = vector.broadcast %cst_108 : f32 to vector<8x128xf32>
      %289 = arith.addf %288, %287 : vector<8x128xf32>
      %290 = arith.divf %288, %289 : vector<8x128xf32>
      %291 = arith.mulf %282, %229 : vector<8x128xf32>
      %292 = arith.mulf %276, %284 : vector<8x128xf32>
      %293 = arith.addf %291, %292 : vector<8x128xf32>
      %294 = math.tanh %293 : vector<8x128xf32>
      %295 = arith.mulf %290, %294 : vector<8x128xf32>
      %296 = arith.truncf %295 : vector<8x128xf32> to vector<8x128xbf16>
      %c0_109 = arith.constant 0 : index
      %c0_110 = arith.constant 0 : index
      %297 = vector.load %arg18[%c0_109, %c0_110] : memref<128x128xbf16, #tpu.memory_space<vmem>>, vector<128x128xbf16>
      %cst_111 = arith.constant dense<0.000000e+00> : vector<8x128xf32>
      %298 = tpu.matmul %296, %297, %cst_111 {dimension_numbers = #tpu.dot_dimension_numbers<[1], [0], [0], [1], [0, 0, 1, 1], [], []>} : vector<8x128xbf16>, vector<128x128xbf16>, vector<8x128xf32> -> vector<8x128xf32>
      %299 = arith.truncf %134 : vector<8x128xf32> to vector<8x128xbf16>
      %c0_112 = arith.constant 0 : index
      %c0_113 = arith.constant 0 : index
      %300 = vector.load %arg19[%c0_112, %c0_113] : memref<128x128xbf16, #tpu.memory_space<vmem>>, vector<128x128xbf16>
      %cst_114 = arith.constant dense<0.000000e+00> : vector<8x128xf32>
      %301 = tpu.matmul %299, %300, %cst_114 {dimension_numbers = #tpu.dot_dimension_numbers<[1], [0], [0], [1], [0, 0, 1, 1], [], []>} : vector<8x128xbf16>, vector<128x128xbf16>, vector<8x128xf32> -> vector<8x128xf32>
      %302 = arith.addf %298, %301 : vector<8x128xf32>
      %c0_115 = arith.constant 0 : index
      %c0_116 = arith.constant 0 : index
      %303 = vector.load %arg20[%c0_115, %c0_116] : memref<1x128xf32, #tpu.memory_space<vmem>>, vector<1x128xf32>
      %304 = vector.broadcast %303 : vector<1x128xf32> to vector<8x128xf32>
      %305 = arith.addf %302, %304 : vector<8x128xf32>
      %c0_117 = arith.constant 0 : index
      %c0_118 = arith.constant 0 : index
      %306 = vector.load %arg21[%c0_117, %c0_118] : memref<8x128xf32, #tpu.memory_space<vmem>>, vector<8x128xf32>
      tpu.vector_store %arg21[%c0_117, %c0_118], %305 {strides = array<i32>} : memref<8x128xf32, #tpu.memory_space<vmem>>, vector<8x128xf32>,
    } else {
    }
    return
  }
  func.func @transform_0(%arg0: i32) -> (i32, i32, i32) {
    %c0_i32 = arith.constant 0 : i32
    %c0_i32_0 = arith.constant 0 : i32
    %c0_i32_1 = arith.constant 0 : i32
    return %arg0, %c0_i32, %c0_i32_0 : i32, i32, i32
  }
  func.func @transform_1(%arg0: i32) -> (i32, i32) {
    %c0_i32 = arith.constant 0 : i32
    %c0_i32_0 = arith.constant 0 : i32
    %c0_i32_1 = arith.constant 0 : i32
    return %c0_i32, %c0_i32_0 : i32, i32
  }
  func.func @transform_2(%arg0: i32) -> (i32, i32) {
    %c0_i32 = arith.constant 0 : i32
    %c0_i32_0 = arith.constant 0 : i32
    %c0_i32_1 = arith.constant 0 : i32
    return %c0_i32, %c0_i32_0 : i32, i32
  }
  func.func @transform_3(%arg0: i32) -> (i32, i32) {
    %c0_i32 = arith.constant 0 : i32
    %c0_i32_0 = arith.constant 0 : i32
    %c0_i32_1 = arith.constant 0 : i32
    return %c0_i32, %c0_i32_0 : i32, i32
  }
  func.func @transform_4(%arg0: i32) -> (i32, i32, i32) {
    %c0_i32 = arith.constant 0 : i32
    %c0_i32_0 = arith.constant 0 : i32
    %c0_i32_1 = arith.constant 0 : i32
    %c0_i32_2 = arith.constant 0 : i32
    return %c0_i32, %c0_i32_0, %c0_i32_1 : i32, i32, i32
  }
  func.func @transform_5(%arg0: i32) -> (i32, i32) {
    %c0_i32 = arith.constant 0 : i32
    %c0_i32_0 = arith.constant 0 : i32
    %c0_i32_1 = arith.constant 0 : i32
    return %c0_i32, %c0_i32_0 : i32, i32
  }
  func.func @transform_6(%arg0: i32) -> (i32, i32) {
    %c0_i32 = arith.constant 0 : i32
    %c0_i32_0 = arith.constant 0 : i32
    %c0_i32_1 = arith.constant 0 : i32
    return %c0_i32, %c0_i32_0 : i32, i32
  }
  func.func @transform_7(%arg0: i32) -> (i32, i32) {
    %c0_i32 = arith.constant 0 : i32
    %c0_i32_0 = arith.constant 0 : i32
    %c0_i32_1 = arith.constant 0 : i32
    return %c0_i32, %c0_i32_0 : i32, i32
  }
  func.func @transform_8(%arg0: i32) -> (i32, i32) {
    %c0_i32 = arith.constant 0 : i32
    %c0_i32_0 = arith.constant 0 : i32
    %c0_i32_1 = arith.constant 0 : i32
    return %c0_i32, %c0_i32_0 : i32, i32
  }
  func.func @transform_9(%arg0: i32) -> (i32, i32) {
    %c0_i32 = arith.constant 0 : i32
    %c0_i32_0 = arith.constant 0 : i32
    %c0_i32_1 = arith.constant 0 : i32
    return %c0_i32, %c0_i32_0 : i32, i32
  }
  func.func @transform_10(%arg0: i32) -> (i32, i32) {
    %c0_i32 = arith.constant 0 : i32
    %c0_i32_0 = arith.constant 0 : i32
    %c0_i32_1 = arith.constant 0 : i32
    return %c0_i32, %c0_i32_0 : i32, i32
  }
  func.func @transform_11(%arg0: i32) -> (i32, i32) {
    %c0_i32 = arith.constant 0 : i32
    %c0_i32_0 = arith.constant 0 : i32
    %c0_i32_1 = arith.constant 0 : i32
    return %c0_i32, %c0_i32_0 : i32, i32
  }
  func.func @transform_12(%arg0: i32) -> (i32, i32) {
    %c0_i32 = arith.constant 0 : i32
    %c0_i32_0 = arith.constant 0 : i32
    %c0_i32_1 = arith.constant 0 : i32
    return %c0_i32, %c0_i32_0 : i32, i32
  }
  func.func @transform_13(%arg0: i32) -> (i32, i32, i32) {
    %c0_i32 = arith.constant 0 : i32
    %c0_i32_0 = arith.constant 0 : i32
    %c0_i32_1 = arith.constant 0 : i32
    %c0_i32_2 = arith.constant 0 : i32
    return %c0_i32, %c0_i32_0, %c0_i32_1 : i32, i32, i32
  }
  func.func @transform_14(%arg0: i32) -> (i32, i32, i32) {
    %c0_i32 = arith.constant 0 : i32
    %c0_i32_0 = arith.constant 0 : i32
    %c0_i32_1 = arith.constant 0 : i32
    %c0_i32_2 = arith.constant 0 : i32
    return %c0_i32, %c0_i32_0, %c0_i32_1 : i32, i32, i32
  }
  func.func @transform_15(%arg0: i32) -> (i32, i32, i32) {
    %c0_i32 = arith.constant 0 : i32
    %c0_i32_0 = arith.constant 0 : i32
    %c0_i32_1 = arith.constant 0 : i32
    %c0_i32_2 = arith.constant 0 : i32
    return %c0_i32, %c0_i32_0, %c0_i32_1 : i32, i32, i32
  }
  func.func @transform_16(%arg0: i32) -> (i32, i32, i32) {
    %c0_i32 = arith.constant 0 : i32
    %c0_i32_0 = arith.constant 0 : i32
    %c0_i32_1 = arith.constant 0 : i32
    %c0_i32_2 = arith.constant 0 : i32
    return %c0_i32, %c0_i32_0, %c0_i32_1 : i32, i32, i32
  }
  func.func @transform_17(%arg0: i32) -> (i32, i32) {
    %c0_i32 = arith.constant 0 : i32
    %c0_i32_0 = arith.constant 0 : i32
    %c0_i32_1 = arith.constant 0 : i32
    return %c0_i32, %c0_i32_0 : i32, i32
  }
  func.func @transform_18(%arg0: i32) -> (i32, i32) {
    %c0_i32 = arith.constant 0 : i32
    %c0_i32_0 = arith.constant 0 : i32
    %c0_i32_1 = arith.constant 0 : i32
    return %c0_i32, %c0_i32_0 : i32, i32
  }
  func.func @transform_19(%arg0: i32) -> (i32, i32) {
    %c0_i32 = arith.constant 0 : i32
    %c0_i32_0 = arith.constant 0 : i32
    %c0_i32_1 = arith.constant 0 : i32
    return %c0_i32, %c0_i32_0 : i32, i32
  }
  func.func @transform_20(%arg0: i32) -> (i32, i32) {
    %c0_i32 = arith.constant 0 : i32
    %c0_i32_0 = arith.constant 0 : i32
    %c0_i32_1 = arith.constant 0 : i32
    return %c0_i32, %c0_i32_0 : i32, i32
  }
}

</mosaic_0001>

<bundles_post_ra>
// kernel: tpu_custom_call.1
= control target key start
LH: loop header
LB: loop body
LE: loop exit
PB: predicated region body
PF: predicated region fallthrough
CT: control target
= control target key end

     0   :  { %s7724_s0 = inlined_call_operand.vmem [shape: bf16[3,16,16], index: 0, kind: input, shape index: {}]   ;;  %s7725_s1 = inlined_call_operand.hbm [shape: f32[16,128], index: 1, kind: input, shape index: {}]   ;;  %s7726_s2 = inlined_call_operand.vmem [shape: f32[16,8], index: 2, kind: input, shape index: {}]   ;;  %s7727_s3 = inlined_call_operand.hbm [shape: f32[8,16], index: 3, kind: input, shape index: {}]   ;;  %s7728_s4 = inlined_call_operand.hbm [shape: bf16[2,128,128], index: 4, kind: input, shape index: {}]   ;;  %s7729_s5 = inlined_call_operand.hbm [shape: bf16[128,384], index: 5, kind: input, shape index: {}]   ;;  %s7730_s6 = inlined_call_operand.hbm [shape: bf16[128,384], index: 6, kind: input, shape index: {}]   ;;  %s7731_s7 = inlined_call_operand.hbm [shape: f32[1,384], index: 7, kind: input, shape index: {}]   ;;  %s7732_s8 = inlined_call_operand.hbm [shape: f32[1,384], index: 8, kind: input, shape index: {}]   ;;  %s7733_s9 = inlined_call_operand.hbm [shape: bf16[128,384], index: 9, kind: input, shape index: {}]   ;;  %s7734_s10 = inlined_call_operand.hbm [shape: f32[1,384], index: 10, kind: input, shape index: {}]   ;;  %s7735_s11 = inlined_call_operand.hbm [shape: f32[1,384], index: 11, kind: input, shape index: {}]   ;;  %s7736_s12 = inlined_call_operand.<no memory space> [shape: f32[1,1], index: 12, kind: input, shape index: {}]   ;;  %s7737_s13 = inlined_call_operand.hbm [shape: bf16[2,128,512], index: 13, kind: input, shape index: {}]   ;;  %s7738_s14 = inlined_call_operand.hbm [shape: bf16[2,128,512], index: 14, kind: input, shape index: {}]   ;;  %s7739_s15 = inlined_call_operand.hbm [shape: f32[2,1,512], index: 15, kind: input, shape index: {}]   ;;  %s7740_s16 = inlined_call_operand.hbm [shape: f32[2,1,512], index: 16, kind: input, shape index: {}]   ;;  %s7741_s17 = inlined_call_operand.vmem [shape: bf16[128,128], index: 17, kind: input, shape index: {}]   ;;  %s7742_s18 = inlined_call_operand.hbm [shape: bf16[128,128], index: 18, kind: input, shape index: {}]   ;;  %s7743_s19 = inlined_call_operand.vmem [shape: f32[1,128], index: 19, kind: input, shape index: {}]   ;;  %s7744_s20 = inlined_call_operand.hbm [shape: f32[8,128], index: 20, kind: output, shape index: {}]  }
   0x1   :  { %7882 = sst [smem:[#allocation143_spill]] %s7724_s0  ;;  %v25_v0 = vstv %s7736_s12 }
   0x2   :  { %7883 = sst [smem:[#allocation144_spill]] %s7725_s1  ;;  %26 = vst [vmem:[#allocation3] sm:$0x1] %v25_v0 }
   0x3   :  { %7884 = sst [smem:[#allocation145_spill]] %s7726_s2 }
   0x4   :  { %7885 = sst [smem:[#allocation146_spill]] %s7727_s3 }
   0x5   :  { %7886 = sst [smem:[#allocation147_spill]] %s7728_s4 }
   0x6   :  { %7887 = sst [smem:[#allocation148_spill]] %s7729_s5 }
   0x7   :  { %7888 = sst [smem:[#allocation149_spill]] %s7731_s7 }
   0x8   :  { %7889 = sst [smem:[#allocation150_spill]] %s7733_s9 }
   0x9   :  { %7890 = sst [smem:[#allocation151_spill]] %s7735_s11 }
   0xa   :  { %7891 = sst [smem:[#allocation152_spill]] %s7743_s19 }
   0xb   :  { %7892 = sst [smem:[#allocation153_spill]] %s7744_s20 }
   0xc   :  { %27 = vsyncpa [#allocation5], 0 }
   0xd   :  { %28 = vsyncpa [#allocation8], 0 }
   0xe   :  { %29 = vsyncpa [#allocation11], 0 }
   0xf   :  { %30 = vsyncpa [#allocation14], 0 }
  0x10   :  { %31 = vsyncpa [#allocation17], 0 }
  0x11   :  { %32 = vsyncpa [#allocation20], 0 }
  0x12   :  { %33 = vsyncpa [#allocation23], 0 }
  0x13   :  { %34 = vsyncpa [#allocation26], 0 }
  0x14   :  { %35 = vsyncpa [#allocation6], 0  ;;  %s6305_s23 = smov 0  }
  0x15 LB: > { %7893 = sst [smem:[#allocation38_spill]] %s6164_s23  ;;  %s6166_s12 = smov [#allocation7]   ;;  %s6164_s23 = sphi %s6305_s23, %s41_s23  }
  0x16   : > { %s521_s24 = sshll.u32 %s6166_s12, 4  ;;  %s6311_s2 = sadd.s32 4294967295, %s6164_s23   ;;  %s6316_s24 = int_to_ptr.vmem [resolvable:$true] %s521_s24 }
  0x17   : > { %p4408_p0 = scmp.ge.s32.totalorder %s6164_s23, 1  ;;  %p492_p1 = scmp.lt.s32.totalorder %s6164_s23, 4 }
  0x18   : > { %p7752_p2 = scmp.eq.s32.totalorder %s6311_s2, 0  ;;  %s6167_s3 = smov [#allocation10]  }
  0x19   : > { %p6318_p3 = pnand %p4408_p0, %p492_p1  ;;  %s544_s26 = sshll.u32 %s6167_s3, 4  ;;  %s6324_s26 = int_to_ptr.vmem [resolvable:$true] %s544_s26 }
  0x1a   : > { %s6168_s28 = smov [#allocation13]   ;;  %s6169_s29 = smov [#allocation16]  }
  0x1b   : > { %s7894_s25 = scalar_select %p6318_p3, 1, 0 }
  0x1c   : > { %p5094_p4 = pneg %p6318_p3  ;;  %s571_s4 = sshll.u32 %s6168_s28, 4  ;;  %s6332_s4 = int_to_ptr.vmem [resolvable:$true] %s571_s4 }
  0x1d   : > { %s6334_s30 = sshll.u32 %s6169_s29, 4  ;;  %s7896_s1 = sld [smem:[#allocation146_spill]]  ;;  %s593_s30 = int_to_ptr.vmem [resolvable:$true] %s6334_s30 }
  0x1e   : > { %p6328_p5 = pnand %p7752_p2, %p5094_p4 }
  0x20   : > { %p6344_p7 = pneg %p6328_p5 }
  0x23   : > { %s5676_s22 = scalar_lea.hbm %s7896_s1, 128 }
  0x24   : > { %p5677_p6 = scmp.ne.s32.totalorder %s7896_s1, %s5676_s22  ;;  %p5683_p10 = scmp.lt.u32.totalorder %s5676_s22, %s7896_s1 }
  0x26   : > { %p5679_p8 = pnand %p6344_p7, %p5677_p6 }
  0x28   : > { %p5680_p9 = pneg %p5679_p8 }
  0x2a   : > { %p5685_p11 = pnand %p5683_p10, %p5680_p9 }
  0x2c   : > { %5688 = shalt.err (!%p5685_p11)
}
  0x2d   : > { %s5689_s0 = scalar_lea.vmem %s6316_s24, 128  ;;  %p5697_p1 = scmp.lt.s32.totalorder %s6316_s24, %s6316_s24 }
  0x2e   : > { %p5690_p12 = scmp.ne.s32.totalorder %s6316_s24, %s5689_s0  ;;  %p5698_p4 = scmp.lt.s32.totalorder %s5689_s0, %s5689_s0 }
  0x30   : > { %p5692_p13 = pnand %p5690_p12, %p6344_p7  ;;  %p5699_p6 = por %p5698_p4, %p5697_p1 }
  0x32   : > { %p5693_p0 = pneg %p5692_p13 }
  0x34   : > { %p5700_p8 = pnand %p5699_p6, %p5693_p0 }
  0x36   : > { %5703 = shalt.err (!%p5700_p8)
}
  0x37   : > { %5100 = dma.hbm_to_vmem [thread:$0]  (!%p6328_p5), %s7896_s1, 128, %s6316_s24, [#allocation8]  }
  0x38   : > { %s7898_s5 = sld [smem:[#allocation148_spill]] }
  0x3e   : > { %s5704_s28 = scalar_lea.hbm %s7898_s5, 3072 }
  0x3f   : > { %p5705_p9 = scmp.ne.s32.totalorder %s7898_s5, %s5704_s28  ;;  %p5711_p12 = scmp.lt.u32.totalorder %s5704_s28, %s7898_s5 }
  0x41   : > { %p5707_p10 = pnand %p5705_p9, %p6344_p7 }
  0x43   : > { %p5708_p11 = pneg %p5707_p10 }
  0x45   : > { %p5713_p13 = pnand %p5711_p12, %p5708_p11 }
  0x47   : > { %5716 = shalt.err (!%p5713_p13)
}
  0x48   : > { %s5717_s24 = scalar_lea.vmem %s6324_s26, 3072  ;;  %p5725_p6 = scmp.lt.s32.totalorder %s6324_s26, %s6324_s26 }
  0x49   : > { %p5718_p0 = scmp.ne.s32.totalorder %s6324_s26, %s5717_s24  ;;  %p5726_p8 = scmp.lt.s32.totalorder %s5717_s24, %s5717_s24 }
  0x4b   : > { %p5720_p1 = pnand %p5718_p0, %p6344_p7  ;;  %p5727_p9 = por %p5726_p8, %p5725_p6 }
  0x4d   : > { %p5721_p4 = pneg %p5720_p1 }
  0x4f   : > { %p5728_p10 = pnand %p5727_p9, %p5721_p4 }
  0x51   : > { %5731 = shalt.err (!%p5728_p10)
}
  0x52   : > { %s7754_s20 = smov 192   ;;  %s7755_s19 = smov 12  }
  0x53   : > { %5106 = dma.hbm_to_vmem [thread:$0]  (!%p6328_p5), %s7898_s5, 3072, %s6324_s26, [#allocation11], %s7754_s20, %s7754_s20, %s7755_s19  }
  0x54   : > { %s7899_s7 = sld [smem:[#allocation149_spill]] }
  0x5a   : > { %s5732_s28 = scalar_lea.hbm %s7899_s7, 48 }
  0x5b   : > { %p5733_p11 = scmp.ne.s32.totalorder %s7899_s7, %s5732_s28  ;;  %p5739_p0 = scmp.lt.u32.totalorder %s5732_s28, %s7899_s7 }
  0x5d   : > { %p5735_p12 = pnand %p5733_p11, %p6344_p7 }
  0x5f   : > { %p5736_p13 = pneg %p5735_p12 }
  0x61   : > { %p5741_p1 = pnand %p5739_p0, %p5736_p13 }
  0x63   : > { %5744 = shalt.err (!%p5741_p1)
}
  0x64   : > { %s5745_s26 = scalar_lea.vmem %s6332_s4, 48  ;;  %s5752_s21 = scalar_lea.vmem %s6332_s4, 64 }
  0x65   : > { %p5746_p4 = scmp.ne.s32.totalorder %s6332_s4, %s5745_s26  ;;  %p5753_p9 = scmp.lt.s32.totalorder %s6332_s4, %s6332_s4 }
  0x66   : > { %p5754_p10 = scmp.lt.s32.totalorder %s5752_s21, %s5745_s26 }
  0x67   : > { %p5748_p6 = pnand %p5746_p4, %p6344_p7 }
  0x68   : > { %p5755_p11 = por %p5754_p10, %p5753_p9 }
  0x69   : > { %p5749_p8 = pneg %p5748_p6 }
  0x6b   : > { %p5756_p12 = pnand %p5755_p11, %p5749_p8 }
  0x6d   : > { %5759 = shalt.err (!%p5756_p12)
}
  0x6e   : > { %5112 = dma.hbm_to_vmem [thread:$0]  (!%p6328_p5), %s7899_s7, 48, %s6332_s4, [#allocation14]  }
  0x6f   : > { %s7900_s9 = sld [smem:[#allocation150_spill]] }
  0x75   : > { %s5760_s28 = scalar_lea.hbm %s7900_s9, 3072 }
  0x76   : > { %p5761_p13 = scmp.ne.s32.totalorder %s7900_s9, %s5760_s28  ;;  %p5767_p4 = scmp.lt.u32.totalorder %s5760_s28, %s7900_s9 }
  0x78   : > { %p5763_p0 = pnand %p5761_p13, %p6344_p7 }
  0x7a   : > { %p5764_p1 = pneg %p5763_p0 }
  0x7c   : > { %p5769_p6 = pnand %p5767_p4, %p5764_p1 }
  0x7e   : > { %5772 = shalt.err (!%p5769_p6)
}
  0x7f   : > { %s5773_s21 = scalar_lea.vmem %s593_s30, 3072  ;;  %p5781_p11 = scmp.lt.s32.totalorder %s593_s30, %s593_s30 }
  0x80   : > { %p5774_p8 = scmp.ne.s32.totalorder %s593_s30, %s5773_s21  ;;  %p5782_p12 = scmp.lt.s32.totalorder %s5773_s21, %s5773_s21 }
  0x82   : > { %p5776_p9 = pnand %p5774_p8, %p6344_p7  ;;  %p5783_p2 = por %p5782_p12, %p5781_p11 }
  0x84   : > { %p5777_p10 = pneg %p5776_p9 }
  0x86   : > { %p5784_p3 = pnand %p5783_p2, %p5777_p10 }
  0x88   : > { %5787 = shalt.err (!%p5784_p3)
}
  0x89   : > { %5118 = dma.hbm_to_vmem [thread:$0]  (!%p6328_p5), %s7900_s9, 3072, %s593_s30, [#allocation17], %s7754_s20, %s7754_s20, %s7755_s19  }
  0x8a   : > { %s6172_s22 = smov [#allocation19]   ;;  %s7901_s11 = sld [smem:[#allocation151_spill]] }
  0x8b   : > { %s617_s12 = sshll.u32 %s6172_s22, 4  ;;  %s618_s12 = int_to_ptr.vmem [resolvable:$true] %s617_s12 }
  0x90   : > { %s5788_s29 = scalar_lea.hbm %s7901_s11, 48 }
  0x91   : > { %p5789_p2 = scmp.ne.s32.totalorder %s7901_s11, %s5788_s29  ;;  %p5795_p0 = scmp.lt.u32.totalorder %s5788_s29, %s7901_s11 }
  0x93   : > { %p5791_p3 = pnand %p5789_p2, %p6344_p7 }
  0x95   : > { %p5792_p13 = pneg %p5791_p3 }
  0x97   : > { %p5797_p1 = pnand %p5795_p0, %p5792_p13 }
  0x99   : > { %5800 = shalt.err (!%p5797_p1)
}
  0x9a   : > { %s5801_s30 = scalar_lea.vmem %s618_s12, 48  ;;  %s5808_s4 = scalar_lea.vmem %s618_s12, 64 }
  0x9b   : > { %p5802_p4 = scmp.ne.s32.totalorder %s618_s12, %s5801_s30  ;;  %p5809_p9 = scmp.lt.s32.totalorder %s618_s12, %s618_s12 }
  0x9c   : > { %p5810_p10 = scmp.lt.s32.totalorder %s5808_s4, %s5801_s30 }
  0x9d   : > { %p5804_p6 = pnand %p5802_p4, %p6344_p7 }
  0x9e   : > { %p5811_p11 = por %p5810_p10, %p5809_p9 }
  0x9f   : > { %p5805_p8 = pneg %p5804_p6 }
  0xa1   : > { %p5812_p12 = pnand %p5811_p11, %p5805_p8 }
  0xa3   : > { %5815 = shalt.err (!%p5812_p12)
}
  0xa4   : > { %5124 = dma.hbm_to_vmem [thread:$0]  (!%p6328_p5), %s7901_s11, 48, %s618_s12, [#allocation20]  }
  0xa5   : > { %s6173_s3 = smov [#allocation22]   ;;  %s5816_s24 = scalar_lea.hbm %s7738_s14, 8192 }
  0xa6   : > { %s643_s28 = sshll.u32 %s6173_s3, 4  ;;  %p5817_p2 = scmp.ne.s32.totalorder %s7738_s14, %s5816_s24  ;;  %s644_s28 = int_to_ptr.vmem [resolvable:$true] %s643_s28 }
  0xa7   : > { %p5823_p0 = scmp.lt.u32.totalorder %s5816_s24, %s7738_s14 }
  0xa8   : > { %p5819_p3 = pnand %p5817_p2, %p6344_p7 }
  0xaa   : > { %p5820_p13 = pneg %p5819_p3 }
  0xac   : > { %p5825_p1 = pnand %p5823_p0, %p5820_p13 }
  0xae   : > { %5828 = shalt.err (!%p5825_p1)
}
  0xaf   : > { %s5829_s12 = scalar_lea.vmem %s644_s28, 8192  ;;  %p5837_p9 = scmp.lt.s32.totalorder %s644_s28, %s644_s28 }
  0xb0   : > { %p5830_p4 = scmp.ne.s32.totalorder %s644_s28, %s5829_s12  ;;  %p5838_p10 = scmp.lt.s32.totalorder %s5829_s12, %s5829_s12 }
  0xb2   : > { %p5832_p6 = pnand %p5830_p4, %p6344_p7  ;;  %p5839_p11 = por %p5838_p10, %p5837_p9 }
  0xb4   : > { %p5833_p8 = pneg %p5832_p6 }
  0xb6   : > { %p5840_p12 = pnand %p5839_p11, %p5833_p8 }
  0xb8   : > { %5843 = shalt.err (!%p5840_p12)
}
  0xb9   : > { %s7756_s1 = smov 256   ;;  %s7757_s22 = smov 16  }
  0xba   : > { %5130 = dma.hbm_to_vmem [thread:$0]  (!%p6328_p5), %s7738_s14, 8192, %s644_s28, [#allocation23], %s7756_s1, %s7756_s1, %s7757_s22  }
  0xbb   : > { %s6176_s0 = smov [#allocation25]   ;;  %s6177_s26 = smov [#allocation4]  }
  0xbc   : > { %s669_s24 = sshll.u32 %s6176_s0, 4  ;;  %s504_s21 = sshll.u32 %s6177_s26, 4  ;;  %s670_s24 = int_to_ptr.vmem [resolvable:$true] %s669_s24  ;;  %s505_s21 = int_to_ptr.vmem [resolvable:$true] %s504_s21 }
  0xbd   : > { %s5844_s12 = scalar_lea.hbm %s7740_s16, 128 }
  0xbe   : > { %p5845_p2 = scmp.ne.s32.totalorder %s7740_s16, %s5844_s12  ;;  %p5851_p0 = scmp.lt.u32.totalorder %s5844_s12, %s7740_s16 }
  0xc0   : > { %p5847_p3 = pnand %p5845_p2, %p6344_p7 }
  0xc2   : > { %p5848_p13 = pneg %p5847_p3 }
  0xc4   : > { %p5853_p1 = pnand %p5851_p0, %p5848_p13 }
  0xc6   : > { %5856 = shalt.err (!%p5853_p1)
}
  0xc7   : > { %s5857_s28 = scalar_lea.vmem %s670_s24, 128  ;;  %p5865_p9 = scmp.lt.s32.totalorder %s670_s24, %s670_s24 }
  0xc8   : > { %p5858_p4 = scmp.ne.s32.totalorder %s670_s24, %s5857_s28  ;;  %p5866_p10 = scmp.lt.s32.totalorder %s5857_s28, %s5857_s28 }
  0xca   : > { %p5860_p6 = pnand %p5858_p4, %p6344_p7  ;;  %p5867_p11 = por %p5866_p10, %p5865_p9 }
  0xcc   : > { %p5861_p8 = pneg %p5860_p6 }
  0xce   : > { %p5868_p12 = pnand %p5867_p11, %p5861_p8 }
  0xd0   : > { %5871 = shalt.err (!%p5868_p12)
}
  0xd1   : > { %s7758_s20 = smov 64   ;;  %s7760_s19 = smov 4  }
  0xd2   : > { %5136 = dma.hbm_to_vmem [thread:$0]  (!%p6328_p5), %s7740_s16, 128, %s670_s24, [#allocation26], %s7758_s20, %s7758_s20, %s7760_s19  }
  0xd3   : > { %s7902_s0 = sld [smem:[#allocation144_spill]] }
  0xd9   : > { %s5872_s26 = scalar_lea.hbm %s7902_s0, 256 }
  0xda   : > { %p5873_p2 = scmp.ne.s32.totalorder %s7902_s0, %s5872_s26  ;;  %p5879_p0 = scmp.lt.u32.totalorder %s5872_s26, %s7902_s0 }
  0xdc   : > { %p5875_p3 = pnand %p5873_p2, %p6344_p7 }
  0xde   : > { %p5876_p13 = pneg %p5875_p3 }
  0xe0   : > { %p5881_p1 = pnand %p5879_p0, %p5876_p13 }
  0xe2   : > { %5884 = shalt.err (!%p5881_p1)
}
  0xe3   : > { %s5885_s5 = scalar_lea.vmem %s505_s21, 256  ;;  %p5893_p9 = scmp.lt.s32.totalorder %s505_s21, %s505_s21 }
  0xe4   : > { %p5886_p4 = scmp.ne.s32.totalorder %s505_s21, %s5885_s5  ;;  %p5894_p10 = scmp.lt.s32.totalorder %s5885_s5, %s5885_s5 }
  0xe6   : > { %p5888_p6 = pnand %p5886_p4, %p6344_p7  ;;  %p5895_p11 = por %p5894_p10, %p5893_p9 }
  0xe8   : > { %p5889_p8 = pneg %p5888_p6 }
  0xea   : > { %p5896_p12 = pnand %p5895_p11, %p5889_p8 }
  0xec   : > { %5899 = shalt.err (!%p5896_p12)
}
  0xed   : > { %s6180_s24 = smov 128   ;;  %s6181_s7 = smov 8  }
  0xee   : > { %5097 = dma.hbm_to_vmem [thread:$0]  (!%p6328_p5), %s7902_s0, 256, %s505_s21, [#allocation5], %s6180_s24, %s6180_s24, %s6181_s7  }
  0xef   : > { %s6182_s26 = smov [#allocation9]   ;;  %s6183_s4 = smov [#allocation12]  }
  0xf0   : > { %s531_s30 = sshll.u32 %s6182_s26, 4  ;;  %s557_s12 = sshll.u32 %s6183_s4, 4  ;;  %s532_s30 = int_to_ptr.vmem [resolvable:$true] %s531_s30  ;;  %s558_s12 = int_to_ptr.vmem [resolvable:$true] %s557_s12 }
  0xf1   : > { %s7903_s5 = sld [smem:[#allocation147_spill]] }
  0xf7   : > { %s5900_s22 = scalar_lea.hbm %s7903_s5, 2048 }
  0xf8   : > { %p5901_p2 = scmp.ne.s32.totalorder %s7903_s5, %s5900_s22  ;;  %p5907_p0 = scmp.lt.u32.totalorder %s5900_s22, %s7903_s5 }
  0xfa   : > { %p5903_p3 = pnand %p5901_p2, %p6344_p7 }
  0xfc   : > { %p5904_p13 = pneg %p5903_p3 }
  0xfe   : > { %p5909_p1 = pnand %p5907_p0, %p5904_p13 }
 0x100   : > { %5912 = shalt.err (!%p5909_p1)
}
 0x101   : > { %s5913_s21 = scalar_lea.vmem %s532_s30, 2048  ;;  %p5921_p9 = scmp.lt.s32.totalorder %s532_s30, %s532_s30 }
 0x102   : > { %p5914_p4 = scmp.ne.s32.totalorder %s532_s30, %s5913_s21  ;;  %p5922_p10 = scmp.lt.s32.totalorder %s5913_s21, %s5913_s21 }
 0x104   : > { %p5916_p6 = pnand %p5914_p4, %p6344_p7  ;;  %p5923_p11 = por %p5922_p10, %p5921_p9 }
 0x106   : > { %p5917_p8 = pneg %p5916_p6 }
 0x108   : > { %p5924_p12 = pnand %p5923_p11, %p5917_p8 }
 0x10a   : > { %5927 = shalt.err (!%p5924_p12)
}
 0x10b   : > { %s7904_s1 = smov 4   ;;  %s7905_s20 = smov 64  }
 0x10c   : > { %5103 = dma.hbm_to_vmem [thread:$0]  (!%p6328_p5), %s7903_s5, 2048, %s532_s30, [#allocation8], %s7905_s20, %s7905_s20, %s7904_s1  }
 0x10d   : > { %s5928_s24 = scalar_lea.hbm %s7730_s6, 3072 }
 0x10e   : > { %p5929_p2 = scmp.ne.s32.totalorder %s7730_s6, %s5928_s24  ;;  %p5935_p0 = scmp.lt.u32.totalorder %s5928_s24, %s7730_s6 }
 0x110   : > { %p5931_p3 = pnand %p5929_p2, %p6344_p7 }
 0x112   : > { %p5932_p13 = pneg %p5931_p3 }
 0x114   : > { %p5937_p1 = pnand %p5935_p0, %p5932_p13 }
 0x116   : > { %5940 = shalt.err (!%p5937_p1)
}
 0x117   : > { %s5941_s4 = scalar_lea.vmem %s558_s12, 3072  ;;  %p5949_p9 = scmp.lt.s32.totalorder %s558_s12, %s558_s12 }
 0x118   : > { %p5942_p4 = scmp.ne.s32.totalorder %s558_s12, %s5941_s4  ;;  %p5950_p10 = scmp.lt.s32.totalorder %s5941_s4, %s5941_s4 }
 0x11a   : > { %p5944_p6 = pnand %p5942_p4, %p6344_p7  ;;  %p5951_p11 = por %p5950_p10, %p5949_p9 }
 0x11c   : > { %p5945_p8 = pneg %p5944_p6 }
 0x11e   : > { %p5952_p12 = pnand %p5951_p11, %p5945_p8 }
 0x120   : > { %5955 = shalt.err (!%p5952_p12)
}
 0x121   : > { %s7906_s30 = smov 12   ;;  %s7907_s28 = smov 192  }
 0x122   : > { %5109 = dma.hbm_to_vmem [thread:$0]  (!%p6328_p5), %s7730_s6, 3072, %s558_s12, [#allocation11], %s7907_s28, %s7907_s28, %s7906_s30  }
 0x123   : > { %s6184_s11 = smov [#allocation15]   ;;  %s6185_s19 = smov [#allocation18]  }
 0x124   : > { %s582_s22 = sshll.u32 %s6184_s11, 4  ;;  %s606_s24 = sshll.u32 %s6185_s19, 4  ;;  %s583_s22 = int_to_ptr.vmem [resolvable:$true] %s582_s22  ;;  %s607_s24 = int_to_ptr.vmem [resolvable:$true] %s606_s24 }
 0x125   : > { %s5956_s29 = scalar_lea.hbm %s7732_s8, 48 }
 0x126   : > { %p5957_p2 = scmp.ne.s32.totalorder %s7732_s8, %s5956_s29  ;;  %p5963_p0 = scmp.lt.u32.totalorder %s5956_s29, %s7732_s8 }
 0x128   : > { %p5959_p3 = pnand %p5957_p2, %p6344_p7 }
 0x12a   : > { %p5960_p13 = pneg %p5959_p3 }
 0x12c   : > { %p5965_p1 = pnand %p5963_p0, %p5960_p13 }
 0x12e   : > { %5968 = shalt.err (!%p5965_p1)
}
 0x12f   : > { %s5969_s12 = scalar_lea.vmem %s583_s22, 48  ;;  %s5976_s30 = scalar_lea.vmem %s583_s22, 64 }
 0x130   : > { %p5970_p4 = scmp.ne.s32.totalorder %s583_s22, %s5969_s12  ;;  %p5977_p9 = scmp.lt.s32.totalorder %s583_s22, %s583_s22 }
 0x131   : > { %p5978_p10 = scmp.lt.s32.totalorder %s5976_s30, %s5969_s12 }
 0x132   : > { %p5972_p6 = pnand %p5970_p4, %p6344_p7 }
 0x133   : > { %p5979_p11 = por %p5978_p10, %p5977_p9 }
 0x134   : > { %p5973_p8 = pneg %p5972_p6 }
 0x136   : > { %p5980_p12 = pnand %p5979_p11, %p5973_p8 }
 0x138   : > { %5983 = shalt.err (!%p5980_p12)
}
 0x139   : > { %5115 = dma.hbm_to_vmem [thread:$0]  (!%p6328_p5), %s7732_s8, 48, %s583_s22, [#allocation14]  }
 0x13a   : > { %s5984_s19 = scalar_lea.hbm %s7734_s10, 48 }
 0x13b   : > { %p5985_p2 = scmp.ne.s32.totalorder %s7734_s10, %s5984_s19  ;;  %p5991_p0 = scmp.lt.u32.totalorder %s5984_s19, %s7734_s10 }
 0x13d   : > { %p5987_p3 = pnand %p5985_p2, %p6344_p7 }
 0x13f   : > { %p5988_p13 = pneg %p5987_p3 }
 0x141   : > { %p5993_p1 = pnand %p5991_p0, %p5988_p13 }
 0x143   : > { %5996 = shalt.err (!%p5993_p1)
}
 0x144   : > { %s5997_s4 = scalar_lea.vmem %s607_s24, 48  ;;  %s6004_s22 = scalar_lea.vmem %s607_s24, 64 }
 0x145   : > { %p5998_p4 = scmp.ne.s32.totalorder %s607_s24, %s5997_s4  ;;  %p6005_p9 = scmp.lt.s32.totalorder %s607_s24, %s607_s24 }
 0x146   : > { %p6006_p10 = scmp.lt.s32.totalorder %s6004_s22, %s5997_s4 }
 0x147   : > { %p6000_p6 = pnand %p5998_p4, %p6344_p7 }
 0x148   : > { %p6007_p11 = por %p6006_p10, %p6005_p9 }
 0x149   : > { %p6001_p8 = pneg %p6000_p6 }
 0x14b   : > { %p6008_p12 = pnand %p6007_p11, %p6001_p8 }
 0x14d   : > { %6011 = shalt.err (!%p6008_p12)
}
 0x14e   : > { %5121 = dma.hbm_to_vmem [thread:$0]  (!%p6328_p5), %s7734_s10, 48, %s607_s24, [#allocation17]  }
 0x14f   : > { %s6186_s30 = smov [#allocation21]   ;;  %s6187_s9 = smov [#allocation24]  }
 0x150   : > { %s630_s28 = sshll.u32 %s6186_s30, 4  ;;  %s656_s0 = sshll.u32 %s6187_s9, 4  ;;  %s631_s28 = int_to_ptr.vmem [resolvable:$true] %s630_s28  ;;  %s657_s0 = int_to_ptr.vmem [resolvable:$true] %s656_s0 }
 0x151   : > { %s6012_s7 = scalar_lea.hbm %s7737_s13, 8192 }
 0x152   : > { %p6013_p2 = scmp.ne.s32.totalorder %s7737_s13, %s6012_s7  ;;  %p6019_p0 = scmp.lt.u32.totalorder %s6012_s7, %s7737_s13 }
 0x154   : > { %p6015_p3 = pnand %p6013_p2, %p6344_p7 }
 0x156   : > { %p6016_p13 = pneg %p6015_p3 }
 0x158   : > { %p6021_p1 = pnand %p6019_p0, %p6016_p13 }
 0x15a   : > { %6024 = shalt.err (!%p6021_p1)
}
 0x15b   : > { %s6025_s24 = scalar_lea.vmem %s631_s28, 8192  ;;  %p6033_p9 = scmp.lt.s32.totalorder %s631_s28, %s631_s28 }
 0x15c   : > { %p6026_p4 = scmp.ne.s32.totalorder %s631_s28, %s6025_s24  ;;  %p6034_p10 = scmp.lt.s32.totalorder %s6025_s24, %s6025_s24 }
 0x15e   : > { %p6028_p6 = pnand %p6026_p4, %p6344_p7  ;;  %p6035_p11 = por %p6034_p10, %p6033_p9 }
 0x160   : > { %p6029_p8 = pneg %p6028_p6 }
 0x162   : > { %p6036_p12 = pnand %p6035_p11, %p6029_p8 }
 0x164   : > { %6039 = shalt.err (!%p6036_p12)
}
 0x165   : > { %s7908_s22 = smov 16   ;;  %s7909_s21 = smov 256  }
 0x166   : > { %5127 = dma.hbm_to_vmem [thread:$0]  (!%p6328_p5), %s7737_s13, 8192, %s631_s28, [#allocation20], %s7909_s21, %s7909_s21, %s7908_s22  }
 0x167   : > { %s6040_s19 = scalar_lea.hbm %s7739_s15, 128 }
 0x168   : > { %p6041_p2 = scmp.ne.s32.totalorder %s7739_s15, %s6040_s19  ;;  %p6047_p0 = scmp.lt.u32.totalorder %s6040_s19, %s7739_s15 }
 0x16a   : > { %p6043_p3 = pnand %p6041_p2, %p6344_p7 }
 0x16c   : > { %p6044_p13 = pneg %p6043_p3 }
 0x16e   : > { %p6049_p1 = pnand %p6047_p0, %p6044_p13 }
 0x170   : > { %6052 = shalt.err (!%p6049_p1)
}
 0x171   : > { %s6053_s4 = scalar_lea.vmem %s657_s0, 128  ;;  %p6061_p9 = scmp.lt.s32.totalorder %s657_s0, %s657_s0 }
 0x172   : > { %p6054_p4 = scmp.ne.s32.totalorder %s657_s0, %s6053_s4  ;;  %p6062_p10 = scmp.lt.s32.totalorder %s6053_s4, %s6053_s4 }
 0x174   : > { %p6056_p6 = pnand %p6054_p4, %p6344_p7  ;;  %p6063_p11 = por %p6062_p10, %p6061_p9 }
 0x176   : > { %p6057_p8 = pneg %p6056_p6 }
 0x178   : > { %p6064_p12 = pnand %p6063_p11, %p6057_p8 }
 0x17a   : > { %6067 = shalt.err (!%p6064_p12)
}
 0x17b   : > { %5133 = dma.hbm_to_vmem [thread:$0]  (!%p6328_p5), %s7739_s15, 128, %s657_s0, [#allocation23], %s7905_s20, %s7905_s20, %s7904_s1  }
 0x17c   : > { %s6188_s22 = smov [#allocation27]   ;;  %s6068_s9 = scalar_lea.hbm %s7742_s18, 1024 }
 0x17d   : > { %s685_s21 = sshll.u32 %s6188_s22, 4  ;;  %p6069_p2 = scmp.ne.s32.totalorder %s7742_s18, %s6068_s9  ;;  %s686_s21 = int_to_ptr.vmem [resolvable:$true] %s685_s21 }
 0x17e   : > { %p6075_p0 = scmp.lt.u32.totalorder %s6068_s9, %s7742_s18 }
 0x17f   : > { %p6071_p3 = pnand %p6069_p2, %p6344_p7 }
 0x181   : > { %p6072_p13 = pneg %p6071_p3 }
 0x183   : > { %p6077_p1 = pnand %p6075_p0, %p6072_p13 }
 0x185   : > { %6080 = shalt.err (!%p6077_p1)
}
 0x186   : > { %s6081_s0 = scalar_lea.vmem %s686_s21, 1024  ;;  %p6089_p9 = scmp.lt.s32.totalorder %s686_s21, %s686_s21 }
 0x187   : > { %p6082_p4 = scmp.ne.s32.totalorder %s686_s21, %s6081_s0  ;;  %p6090_p10 = scmp.lt.s32.totalorder %s6081_s0, %s6081_s0 }
 0x189   : > { %p6084_p6 = pnand %p6082_p4, %p6344_p7  ;;  %p6091_p11 = por %p6090_p10, %p6089_p9 }
 0x18b   : > { %p6085_p8 = pneg %p6084_p6 }
 0x18d   : > { %p6092_p12 = pnand %p6091_p11, %p6085_p8 }
 0x18f   : > { %6095 = shalt.err (!%p6092_p12)
}
 0x190   : > { %5139 = dma.hbm_to_vmem [thread:$0]  (!%p6328_p5), %s7742_s18, 1024, %s686_s21, [#allocation26], %s7905_s20, %s7905_s20, %s7904_s1  }
 0x191   : > { %p7910_p2 = scmp.ne.s32.totalorder %s7894_s25, 0 }
 0x193   : > { %712 = sbr.rel (%p7910_p2) target bundleno = 4070 (0xfe6), region = 100 }
 0x19a   : > { %p7911_p7 = scmp.eq.s32.totalorder %s6311_s2, 0 }
 0x19c   : > { %6127 = dma.done.wait (%p7911_p7), [#allocation5], 256   ;;  %p7912_p3 = pmov %p7911_p7 }
 0x19e   : > { %6129 = vsyncadd (%p7912_p3), [#allocation5], 4294967040  ;;  %p7913_p13 = pmov %p7912_p3 }
 0x19f   : > { %p7914_p0 = pmov %p7912_p3 }
 0x1a0   : > { %6131 = dma.done.wait (%p7913_p13), [#allocation8], 2176  }
 0x1a1   : > { %6133 = vsyncadd (%p7914_p0), [#allocation8], 4294965120  ;;  %p7915_p1 = pmov %p7914_p0 }
 0x1a2   : > { %p7916_p5 = pmov %p7914_p0 }
 0x1a3   : > { %6135 = dma.done.wait (%p7915_p1), [#allocation11], 6144  }
 0x1a4   : > { %6137 = vsyncadd (%p7916_p5), [#allocation11], 4294961152  ;;  %p7917_p4 = pmov %p7914_p0 }
 0x1a5   : > { %p7918_p6 = pmov %p7914_p0 }
 0x1a6   : > { %6139 = dma.done.wait (%p7917_p4), [#allocation14], 96  }
 0x1a7   : > { %6141 = vsyncadd (%p7918_p6), [#allocation14], 4294967200  ;;  %p7919_p8 = pmov %p7914_p0 }
 0x1a8   : > { %p7920_p9 = pmov %p7914_p0 }
 0x1a9   : > { %6143 = dma.done.wait (%p7919_p8), [#allocation17], 3120  }
 0x1aa   : > { %6145 = vsyncadd (%p7920_p9), [#allocation17], 4294964176  ;;  %p7921_p10 = pmov %p7914_p0 }
 0x1ab   : > { %p7922_p11 = pmov %p7914_p0 }
 0x1ac   : > { %6147 = dma.done.wait (%p7921_p10), [#allocation20], 8240  }
 0x1ad   : > { %6149 = vsyncadd (%p7922_p11), [#allocation20], 4294959056  ;;  %p7923_p12 = pmov %p7914_p0 }
 0x1ae   : > { %p7924_p2 = pmov %p7914_p0 }
 0x1af   : > { %6151 = dma.done.wait (%p7923_p12), [#allocation23], 8320  }
 0x1b0   : > { %6153 = vsyncadd (%p7924_p2), [#allocation23], 4294958976  ;;  %p7925_p7 = pmov %p7914_p0 }
 0x1b1   : > { %p7926_p3 = pmov %p7914_p0 }
 0x1b2   : > { %6155 = dma.done.wait (%p7925_p7), [#allocation26], 1152  }
 0x1b3   : > { %6157 = vsyncadd (%p7926_p3), [#allocation26], 4294966144  ;;  %v7763_v1 = vmov 0.0   ;;  %vm6190_vm0 = vmmov 0   ;;  %v5213_v2 = vld [vmem:[#allocation9] sm:$0xff]   ;;  %v5214_v3 = vld [vmem:[#allocation9 + $0x8] sm:$0xff]  }
 0x1b4   : > { %4804 = vmatprep.subr.bf16.mxu0 %v7763_v1  ;;  %4820 = vmatprep.mubr.msk.bf16.mxu0 %vm6190_vm0, %v7763_v1  ;;  %v5215_v4 = vld [vmem:[#allocation9 + $0x10] sm:$0xff]   ;;  %v5216_v5 = vld [vmem:[#allocation9 + $0x18] sm:$0xff]   ;;  %v5217_v6 = vld [vmem:[#allocation9 + $0x20] sm:$0xff]   ;;  %p821_p13 = scmp.lt.s32.totalorder %s6311_s2, 2  ;;  %s7927_s20 = sld [smem:[#allocation143_spill]]  ;;  %vm1041_vm1 = vcmask 130048  }
 0x1b5   : > { %4824 = vmatprep.subr.bf16.mxu1 %v7763_v1  ;;  %4826 = vmatprep.mubr.msk.bf16.mxu1 %vm6190_vm0, %v7763_v1  ;;  %v5218_v7 = vld [vmem:[#allocation9 + $0x28] sm:$0xff]   ;;  %v5219_v8 = vld [vmem:[#allocation9 + $0x30] sm:$0xff]   ;;  %v5220_v9 = vld [vmem:[#allocation9 + $0x38] sm:$0xff]   ;;  %v7765_v44 = vmov 0   ;;  %s7959_s22 = sld [smem:[#allocation145_spill]]  ;;  %vm2279_vm4 = vcmask 64512  }
 0x1b6   : > { %4805 = vmatpush3.bf16.msra.mxu0 %v5213_v2  ;;  %v6702_v10 = vld [vmem:[#allocation4] sm:$0xff]  ;;  %v6704_v11 = vld [vmem:[#allocation4 + $0x8] sm:$0xff]  ;;  %s822_s23 = scalar_select %p821_p13, %s6311_s2, 2  ;;  %v6728_v15 = vld [vmem:[#allocation10 + $0x38] ss:$12 sps:$4 sm:$0xff]   ;;  %5211 = vset.pattern.permute.xlu1 %v7765_v44 }
 0x1b7   : > { %4806 = vmatprep.subr.bf16.mxu0 %v7763_v1  ;;  %v6709_v12 = vpack.c.bf16 %v6704_v11, %v6702_v10  ;;  %v6720_v13 = vld [vmem:[#allocation10 + $0x8] ss:$12 sps:$4 sm:$0xff]   ;;  %v6724_v14 = vld [vmem:[#allocation10 + $0x20] ss:$12 sps:$4 sm:$0xff]   ;;  %v6732_v16 = vld [vmem:[#allocation10 + $0x50] ss:$12 sps:$4 sm:$0xff]   ;;  %5212 = vset.pattern.permute.xlu0 %v7765_v44 }
 0x1b8   : > { %s4715_s25 = sshll.u32 %s822_s23, 3  ;;  %v6736_v17 = vld [vmem:[#allocation10 + $0x68] ss:$12 sps:$4 sm:$0xff]   ;;  %v6740_v18 = vld [vmem:[#allocation10 + $0x80] ss:$12 sps:$4 sm:$0xff]   ;;  %s4552_s30 = sshll.u32 %s6311_s2, 3 }
 0x1b9   : > { %v6744_v19 = vld [vmem:[#allocation10 + $0x98] ss:$12 sps:$4 sm:$0xff]   ;;  %v6752_v27 = vld [vmem:[#allocation10] ss:$12 sps:$4 sm:$0xff]   ;;  %v6755_v28 = vld [vmem:[#allocation10 + $0x1c] ss:$12 sps:$4 sm:$0xff]  }
 0x1ba   : > { %4807 = vmatpush3.bf16.msra.mxu0 %v5214_v3  ;;  %s825_s4 = scalar_lea.vmem %s7927_s20, %s4715_s25  ;;  %v6748_v23 = vld [vmem:[#allocation10 + $0x4] ss:$12 sps:$4 sm:$0xff]   ;;  %v6763_v30 = vld [vmem:[#allocation10 + $0x34] ss:$12 sps:$4 sm:$0xff]   ;;  %v6769_v32 = vld [vmem:[#allocation10 + $0x4c] ss:$12 sps:$4 sm:$0xff]  }
 0x1bb   : > { %4808 = vmatprep.subr.bf16.mxu0 %v7763_v1  ;;  %v6750_v26 = vld [vmem:[%s825_s4] sm:$0xff]   ;;  %v6760_v29 = vld [vmem:[#allocation10 + $0x18] ss:$12 sps:$4 sm:$0xff]   ;;  %v6781_v36 = vld [vmem:[#allocation10 + $0x7c] ss:$12 sps:$4 sm:$0xff]   ;;  %s2393_s9 = scalar_lea.vmem [#allocation2], %s4552_s30 }
 0x1bc   : > { %v6766_v31 = vld [vmem:[#allocation10 + $0x30] ss:$12 sps:$4 sm:$0xff]   ;;  %v6772_v33 = vld [vmem:[#allocation10 + $0x48] ss:$12 sps:$4 sm:$0xff]   ;;  %v6778_v35 = vld [vmem:[#allocation10 + $0x60] ss:$12 sps:$4 sm:$0xff]  }
 0x1bd   : > { %v6775_v34 = vld [vmem:[#allocation10 + $0x64] ss:$12 sps:$4 sm:$0xff]   ;;  %v6787_v38 = vld [vmem:[#allocation10 + $0x94] ss:$12 sps:$4 sm:$0xff]   ;;  %v6794_v40 = vld [vmem:[#allocation10 + $0xac] ss:$12 sps:$4 sm:$0xff]  }
 0x1be   : > { %4809 = vmatpush3.bf16.msra.mxu0 %v5215_v4  ;;  %v6784_v37 = vld [vmem:[#allocation10 + $0x78] ss:$12 sps:$4 sm:$0xff]   ;;  %v6790_v39 = vld [vmem:[#allocation10 + $0x90] ss:$12 sps:$4 sm:$0xff]   ;;  %v6796_v41 = vld [vmem:[#allocation10 + $0xa8] ss:$12 sps:$4 sm:$0xff]  }
 0x1bf   : > { %4810 = vmatprep.subr.bf16.mxu0 %v7763_v1  ;;  %v6799_v42 = vld [vmem:[#allocation10 + $0xb0] ss:$12 sps:$4 sm:$0xff]   ;;  %v6810_v48 = vld [vmem:[#allocation12] ss:$12 sps:$4 sm:$0xff]   ;;  %v6812_v49 = vld [vmem:[#allocation12 + $0x8] ss:$12 sps:$4 sm:$0xff]  }
 0x1c0   : > { %v6803_v43 = vld [vmem:[#allocation12 + $0x4] ss:$12 sps:$4 sm:$0xff]   ;;  %v6814_v52 = vld [vmem:[#allocation12 + $0x1c] ss:$12 sps:$4 sm:$0xff]   ;;  %v6820_v54 = vld [vmem:[#allocation12 + $0x20] ss:$12 sps:$4 sm:$0xff]  }
 0x1c1   : > { %v6817_v53 = vld [vmem:[#allocation12 + $0x18] ss:$12 sps:$4 sm:$0xff]   ;;  %v6823_v55 = vld [vmem:[#allocation12 + $0x34] ss:$12 sps:$4 sm:$0xff]   ;;  %v6830_v56 = vld [vmem:[#allocation12 + $0x30] ss:$12 sps:$4 sm:$0xff]  }
 0x1c2   : > { %4811 = vmatpush3.bf16.msra.mxu0 %v5216_v5  ;;  %v6833_v57 = vld [vmem:[#allocation12 + $0x38] ss:$12 sps:$4 sm:$0xff]   ;;  %v6840_v59 = vld [vmem:[#allocation12 + $0x48] ss:$12 sps:$4 sm:$0xff]   ;;  %v6843_v60 = vld [vmem:[#allocation12 + $0x50] ss:$12 sps:$4 sm:$0xff]  }
 0x1c3   : > { %4812 = vmatprep.subr.bf16.mxu0 %v7763_v1  ;;  %v6836_v58 = vld [vmem:[#allocation12 + $0x4c] ss:$12 sps:$4 sm:$0xff]   ;;  %v6846_v61 = vld [vmem:[#allocation12 + $0x64] ss:$12 sps:$4 sm:$0xff]   ;;  %v6853_v63 = vld [vmem:[#allocation12 + $0x68] ss:$12 sps:$4 sm:$0xff]  }
 0x1c4   : > { %v6850_v62 = vld [vmem:[#allocation12 + $0x60] ss:$12 sps:$4 sm:$0xff]   ;;  %7928 = vst [vmem:[#allocation39_spill] sm:$0xff] %v6853_v63  ;;  %v6856_v0 = vld [vmem:[#allocation12 + $0x7c] ss:$12 sps:$4 sm:$0xff]   ;;  %p4553_p0 = scmp.ne.s32.totalorder %s6311_s2, 2 }
 0x1c5   : > { %7929 = vst [vmem:[#allocation40_spill] sm:$0xff] %v6856_v0  ;;  %v6860_v2 = vld [vmem:[#allocation12 + $0x78] ss:$12 sps:$4 sm:$0xff]   ;;  %v6863_v3 = vld [vmem:[#allocation12 + $0x80] ss:$12 sps:$4 sm:$0xff]  }
 0x1c6   : > { %4813 = vmatpush3.bf16.msra.mxu0 %v5217_v6  ;;  %7930 = vst [vmem:[#allocation41_spill] sm:$0xff] %v6860_v2  ;;  %7931 = vst [vmem:[#allocation42_spill] sm:$0xff] %v6863_v3  ;;  %v6866_v4 = vld [vmem:[#allocation12 + $0x94] ss:$12 sps:$4 sm:$0xff]   ;;  %v6870_v5 = vld [vmem:[#allocation12 + $0x90] ss:$12 sps:$4 sm:$0xff]  }
 0x1c7   : > { %4814 = vmatprep.subr.bf16.mxu0 %v7763_v1  ;;  %7932 = vst [vmem:[#allocation43_spill] sm:$0xff] %v6866_v4  ;;  %7933 = vst [vmem:[#allocation44_spill] sm:$0xff] %v6870_v5  ;;  %v6873_v6 = vld [vmem:[#allocation12 + $0x98] ss:$12 sps:$4 sm:$0xff]  }
 0x1c8   : > { %7934 = vst [vmem:[#allocation45_spill] sm:$0xff] %v6873_v6 }
 0x1ca   : > { %4815 = vmatpush3.bf16.msra.mxu0 %v5218_v7  ;;  %v6876_v7 = vld [vmem:[#allocation12 + $0xac] ss:$12 sps:$4 sm:$0xff]  }
 0x1cb   : > { %4816 = vmatprep.subr.bf16.mxu0 %v7763_v1  ;;  %7935 = vst [vmem:[#allocation46_spill] sm:$0xff] %v6876_v7 }
 0x1ce   : > { %4817 = vmatpush3.bf16.msra.mxu0 %v5219_v8  ;;  %v6880_v8 = vld [vmem:[#allocation12 + $0xa8] ss:$12 sps:$4 sm:$0xff]  }
 0x1cf   : > { %4818 = vmatprep.subr.bf16.mxu0 %v7763_v1  ;;  %7936 = vst [vmem:[#allocation47_spill] sm:$0xff] %v6880_v8 }
 0x1d2   : > { %4819 = vmatpush3.bf16.msra.mxu0 %v5220_v9  ;;  %v6883_v9 = vld [vmem:[#allocation12 + $0xb0] ss:$12 sps:$4 sm:$0xff]  }
 0x1d3   : > { %4830 = vmatprep.subr.bf16.mxu0 %v7763_v1  ;;  %7937 = vst [vmem:[#allocation48_spill] sm:$0xff] %v6883_v9 }
 0x1d5   : > { %4821 = vmatmul.mubr.bf16.vlgmr.msra.gmra.mrb[0].mxu0 %v6709_v12 }
 0x1d6   : > { %4846 = vmatprep.mubr.msk.bf16.mxu0 %vm6190_vm0, %v7763_v1  ;;  %4831 = vmatpush3.bf16.msra.mxu0 %v6720_v13 }
 0x1d7   : > { %4832 = vmatprep.subr.bf16.mxu0 %v7763_v1 }
 0x1da   : > { %4833 = vmatpush3.bf16.msra.mxu0 %v6724_v14 }
 0x1db   : > { %4834 = vmatprep.subr.bf16.mxu0 %v7763_v1 }
 0x1de   : > { %4835 = vmatpush3.bf16.msra.mxu0 %v6728_v15 }
 0x1df   : > { %4836 = vmatprep.subr.bf16.mxu0 %v7763_v1 }
 0x1e2   : > { %4837 = vmatpush3.bf16.msra.mxu0 %v6732_v16 }
 0x1e3   : > { %4838 = vmatprep.subr.bf16.mxu0 %v7763_v1 }
 0x1e6   : > { %4839 = vmatpush3.bf16.msra.mxu0 %v6736_v17 }
 0x1e7   : > { %4840 = vmatprep.subr.bf16.mxu0 %v7763_v1 }
 0x1ea   : > { %4841 = vmatpush3.bf16.msra.mxu0 %v6740_v18 }
 0x1eb   : > { %4842 = vmatprep.subr.bf16.mxu0 %v7763_v1 }
 0x1ee   : > { %4843 = vmatpush3.bf16.msra.mxu0 %v6744_v19 }
 0x1ef   : > { %4844 = vmatprep.subr.bf16.mxu0 %v7763_v1 }
 0x1f2   : > { %4845 = vmatpush3.bf16.msra.mxu0 %v6799_v42 }
 0x1f3   : > { %4850 = vmatprep.subr.bf16.mxu0 %v7763_v1 }
 0x2a8   : > { %v1028_v20 = vpop.f32.mrb[0].mxu0 }
 0x2a9   : > { %v4822_v21 = vpop.f32.mrb[1].mxu0 }
 0x2aa   : > { %v1031_v22 = vpop.f32.mrb[2].mxu0  ;;  %v5287_v21 = vld [vmem:[#allocation9 + $0x48] sm:$0xff]  }
 0x2ab   : > { %v1035_v24 = vpack.c.bf16 %v1031_v22, %v1028_v20  ;;  %v4823_v25 = vpop.f32.mrb[3].mxu0  ;;  %v5286_v20 = vld [vmem:[#allocation9 + $0x40] sm:$0xff]   ;;  %v5288_v22 = vld [vmem:[#allocation9 + $0x50] sm:$0xff]  }
 0x2ac   : > { %v5291_v25 = vld [vmem:[#allocation9 + $0x68] sm:$0xff]  }
 0x2ad   : > { %4825 = vmatpush3.bf16.msra.mxu1 %v1035_v24  ;;  %v5289_v24 = vld [vmem:[#allocation9 + $0x58] sm:$0xff]  }
 0x2ae   : > { %1215 = vmatprep.subr.bf16.mxu1 %v6748_v23 }
 0x2b0   : > { %4827 = vmatmul.mubr.msk.bf16.vlgmr.msra.gmra.mrb[0].mxu1 %vm1041_vm1, %v6750_v26 }
 0x2b1   : > { %1216 = vmatpush1.bf16.msra.mxu1 %v6752_v27  ;;  %1247 = vmatprep.mubr.bf16.mxu1 %v7765_v44 }
 0x2b2   : > { %1217 = vmatprep.subr.bf16.mxu1 %v6755_v28 }
 0x2b5   : > { %1218 = vmatpush1.bf16.msra.mxu1 %v6760_v29 }
 0x2b6   : > { %1219 = vmatprep.subr.bf16.mxu1 %v6763_v30 }
 0x2b9   : > { %1220 = vmatpush1.bf16.msra.mxu1 %v6766_v31 }
 0x2ba   : > { %1221 = vmatprep.subr.bf16.mxu1 %v6769_v32 }
 0x2bd   : > { %1222 = vmatpush1.bf16.msra.mxu1 %v6772_v33 }
 0x2be   : > { %1223 = vmatprep.subr.bf16.mxu1 %v6775_v34 }
 0x2c1   : > { %1224 = vmatpush1.bf16.msra.mxu1 %v6778_v35 }
 0x2c2   : > { %1225 = vmatprep.subr.bf16.mxu1 %v6781_v36 }
 0x2c5   : > { %1226 = vmatpush1.bf16.msra.mxu1 %v6784_v37 }
 0x2c6   : > { %1227 = vmatprep.subr.bf16.mxu1 %v6787_v38 }
 0x2c9   : > { %1228 = vmatpush1.bf16.msra.mxu1 %v6790_v39 }
 0x2ca   : > { %1229 = vmatprep.subr.bf16.mxu1 %v6794_v40 }
 0x2cd   : > { %1230 = vmatpush1.bf16.msra.mxu1 %v6796_v41 }
 0x2ce   : > { %1427 = vmatprep.subr.bf16.mxu1 %v6803_v43 }
 0x383   : > { %v1079_v45 = vpop.f32.mrb[0].mxu1 }
 0x384   : > { %v4828_v46 = vpop.f32.mrb[1].mxu1 }
 0x385   : > { %v1082_v47 = vpop.f32.mrb[2].mxu1  ;;  %v5293_v46 = vld [vmem:[#allocation9 + $0x78] sm:$0xff]  }
 0x386   : > { %v1086_v50 = vpack.c.bf16 %v1082_v47, %v1079_v45  ;;  %v4829_v51 = vpop.f32.mrb[3].mxu1  ;;  %v5292_v45 = vld [vmem:[#allocation9 + $0x70] sm:$0xff]  }
 0x388   : > { %1248 = vmatmul.mubr.bf16.vlgmr.msra.gmra.mrb[4].mxu1 %v1086_v50  ;;  %4847 = vmatmul.mubr.bf16.vlgmr.msra.gmra.mrb[4].mxu0 %v1086_v50 }
 0x389   : > { %1428 = vmatpush1.bf16.msra.mxu1 %v6810_v48  ;;  %4851 = vmatpush3.bf16.msra.mxu0 %v6812_v49 }
 0x38a   : > { %1429 = vmatprep.subr.bf16.mxu1 %v6814_v52  ;;  %4852 = vmatprep.subr.bf16.mxu0 %v7763_v1 }
 0x38b   : > { %1459 = vmatprep.mubr.bf16.mxu1 %v7765_v44  ;;  %4866 = vmatprep.mubr.msk.bf16.mxu0 %vm6190_vm0, %v7763_v1 }
 0x38d   : > { %1430 = vmatpush1.bf16.msra.mxu1 %v6817_v53  ;;  %4853 = vmatpush3.bf16.msra.mxu0 %v6820_v54 }
 0x38e   : > { %1431 = vmatprep.subr.bf16.mxu1 %v6823_v55  ;;  %4854 = vmatprep.subr.bf16.mxu0 %v7763_v1 }
 0x391   : > { %1432 = vmatpush1.bf16.msra.mxu1 %v6830_v56  ;;  %4855 = vmatpush3.bf16.msra.mxu0 %v6833_v57 }
 0x392   : > { %1433 = vmatprep.subr.bf16.mxu1 %v6836_v58  ;;  %4856 = vmatprep.subr.bf16.mxu0 %v7763_v1 }
 0x395   : > { %1434 = vmatpush1.bf16.msra.mxu1 %v6840_v59  ;;  %4857 = vmatpush3.bf16.msra.mxu0 %v6843_v60 }
 0x396   : > { %1435 = vmatprep.subr.bf16.mxu1 %v6846_v61  ;;  %4858 = vmatprep.subr.bf16.mxu0 %v7763_v1 }
 0x399   : > { %1436 = vmatpush1.bf16.msra.mxu1 %v6850_v62  ;;  %4859 = vmatpush3.bf16.msra.mxu0 %v6853_v63 }
 0x39a   : > { %1437 = vmatprep.subr.bf16.mxu1 %v6856_v0  ;;  %4860 = vmatprep.subr.bf16.mxu0 %v7763_v1 }
 0x39d   : > { %1438 = vmatpush1.bf16.msra.mxu1 %v6860_v2  ;;  %4861 = vmatpush3.bf16.msra.mxu0 %v6863_v3 }
 0x39e   : > { %1439 = vmatprep.subr.bf16.mxu1 %v6866_v4  ;;  %4862 = vmatprep.subr.bf16.mxu0 %v7763_v1 }
 0x3a1   : > { %1440 = vmatpush1.bf16.msra.mxu1 %v6870_v5  ;;  %4863 = vmatpush3.bf16.msra.mxu0 %v6873_v6 }
 0x3a2   : > { %1441 = vmatprep.subr.bf16.mxu1 %v6876_v7  ;;  %4864 = vmatprep.subr.bf16.mxu0 %v7763_v1 }
 0x3a5   : > { %1442 = vmatpush1.bf16.msra.mxu1 %v6880_v8  ;;  %4865 = vmatpush3.bf16.msra.mxu0 %v6883_v9 }
 0x3a6   : > { %4870 = vmatprep.subr.bf16.mxu1 %v7763_v1  ;;  %4890 = vmatprep.subr.bf16.mxu0 %v7763_v1 }
 0x3a8   : > { %1460 = vmatmul.mubr.bf16.vlgmr.msra.gmra.mrb[4].mxu1 %v6709_v12  ;;  %4867 = vmatmul.mubr.bf16.vlgmr.msra.gmra.mrb[8].mxu0 %v6709_v12  ;;  %v5290_v12 = vld [vmem:[#allocation9 + $0x60] sm:$0xff]  }
 0x3a9   : > { %4886 = vmatprep.mubr.msk.bf16.mxu1 %vm6190_vm0, %v7763_v1  ;;  %4892 = vmatprep.mubr.msk.bf16.mxu0 %vm6190_vm0, %v7763_v1 }
 0x3aa   : > { %4871 = vmatpush3.bf16.msra.mxu1 %v5286_v20 }
 0x3ab   : > { %4872 = vmatprep.subr.bf16.mxu1 %v7763_v1 }
 0x3ae   : > { %4873 = vmatpush3.bf16.msra.mxu1 %v5287_v21  ;;  %v897_v21 = vlaneseq }
 0x3af   : > { %4874 = vmatprep.subr.bf16.mxu1 %v7763_v1 }
 0x3b2   : > { %4875 = vmatpush3.bf16.msra.mxu1 %v5288_v22  ;;  %v6905_v22 = vshrl.u32 %v897_v21, 7 }
 0x3b3   : > { %4876 = vmatprep.subr.bf16.mxu1 %v7763_v1 }
 0x3b4   : > { %7938 = vst [vmem:[#allocation49_spill] sm:$0xff] %v6905_v22 }
 0x3b6   : > { %4877 = vmatpush3.bf16.msra.mxu1 %v5289_v24  ;;  %v6908_v24 = vsub.s32 0, %v6905_v22 }
 0x3b7   : > { %4878 = vmatprep.subr.bf16.mxu1 %v7763_v1 }
 0x3b8   : > { %7939 = vst [vmem:[#allocation50_spill] sm:$0xff] %v6908_v24 }
 0x3ba   : > { %4879 = vmatpush3.bf16.msra.mxu1 %v5290_v12  ;;  %v912_v12 = vld [vmem:[#allocation15] sm:$0x7] }
 0x3bb   : > { %4880 = vmatprep.subr.bf16.mxu1 %v7763_v1 }
 0x3be   : > { %4881 = vmatpush3.bf16.msra.mxu1 %v5291_v25  ;;  %v895_v25 = vld [vmem:[#allocation13] sm:$0x7] }
 0x3bf   : > { %4882 = vmatprep.subr.bf16.mxu1 %v7763_v1 }
 0x3c2   : > { %4883 = vmatpush3.bf16.msra.mxu1 %v5292_v45  ;;  %v6911_v45 = vsub.s32 1, %v6905_v22 }
 0x3c3   : > { %4884 = vmatprep.subr.bf16.mxu1 %v7763_v1  ;;  %v900_v1 = vrot.slane %v895_v25, %v6908_v24 }
 0x3c4   : > { %7940 = vst [vmem:[#allocation51_spill] sm:$0xff] %v6911_v45 }
 0x3c6   : > { %4885 = vmatpush3.bf16.msra.mxu1 %v5293_v46  ;;  %v917_v46 = vrot.slane %v912_v12, %v6908_v24 }
 0x3c7   : > { %1703 = vmatprep.subr.bf16.mxu1 %v6748_v23  ;;  %v904_v23 = vrot.slane %v895_v25, %v6911_v45 }
 0x45b   : > { %v1292_v47 = vpop.f32.mrb[4].mxu0 }
 0x45c   : > { %v4848_v50 = vpop.f32.mrb[5].mxu0 }
 0x45d   : > { %v1295_v51 = vpop.f32.mrb[6].mxu0  ;;  %v921_v50 = vrot.slane %v912_v12, %v6911_v45 }
 0x45e   : > { %v4849_v20 = vpop.f32.mrb[7].mxu0 }
 0x45f   : > { %v6917_v20 = vadd.f32 %v917_v46, %v900_v1  ;;  %v6919_v44 = vadd.f32 %v921_v50, %v904_v23 }
 0x461   : > { %7941 = vst [vmem:[#allocation52_spill] sm:$0xff] %v6919_v44 }
 0x47b   : > { %v1461_v21 = vpop.f32.mrb[4].mxu1  ;;  %v1504_v9 = vpop.f32.mrb[8].mxu0 }
 0x47c   : > { %v5007_v8 = vadd.f32 %v6917_v20, %v1461_v21  ;;  %v1463_v7 = vpop.f32.mrb[5].mxu1  ;;  %v4868_v6 = vpop.f32.mrb[9].mxu0 }
 0x47d   : > { %v1465_v5 = vpop.f32.mrb[6].mxu1  ;;  %v1507_v4 = vpop.f32.mrb[10].mxu0  ;;  %v5009_v63 = vadd.f32 %v6919_v44, %v1463_v7 }
 0x47e   : > { %v4501_v3 = vmul.f32 -1.442695, %v5007_v8  ;;  %v5011_v2 = vadd.f32 %v6917_v20, %v1465_v5  ;;  %v1467_v24 = vpop.f32.mrb[7].mxu1  ;;  %v4869_v0 = vpop.f32.mrb[11].mxu0  ;;  %v6926_v5 = vsub.s32 2, %v6905_v22 }
 0x47f   : > { %v5013_v46 = vadd.f32 %v6919_v44, %v1467_v24  ;;  %v4503_v23 = vmul.f32 -1.442695, %v5009_v63 }
 0x480   : > { %5326 = vpow2.f32 %v4501_v3  ;;  %v4502_v1 = vmul.f32 -1.442695, %v5011_v2  ;;  %7942 = vst [vmem:[#allocation53_spill] sm:$0xff] %v6926_v5  ;;  %v6929_v0 = vrot.slane %v912_v12, %v6926_v5  ;;  %v6932_v7 = vrot.slane %v895_v25, %v6926_v5 }
 0x481   : > { %v4504_v50 = vmul.f32 -1.442695, %v5013_v46 }
 0x482   : > { %5328 = vpow2.f32 %v4502_v1  ;;  %v1505_v24 = vadd.f32 %v1504_v9, %v6929_v0  ;;  %v1296_v12 = vadd.f32 %v1295_v51, %v6932_v7 }
 0x483   : > { %5330 = vpow2.f32 %v4503_v23  ;;  %v1293_v23 = vadd.f32 %v1292_v47, %v6932_v7 }
 0x484   : > { %5332 = vpow2.f32 %v4504_v50  ;;  %v1508_v50 = vadd.f32 %v1507_v4, %v6929_v0 }
 0x48a   : > { %v5327_v21 = vpop.eup %5326 }
 0x48b   : > { %v1519_v6 = vadd.f32 1.0, %v5327_v21 }
 0x48c   : > { %v5329_v45 = vpop.eup %5328 }
 0x48d   : > { %5334 = vrcp.f32 %v1519_v6  ;;  %v1520_v8 = vadd.f32 1.0, %v5329_v45  ;;  %v5331_v2 = vpop.eup %5330 }
 0x48e   : > { %v5333_v3 = vpop.eup %5332  ;;  %v1533_v63 = vadd.f32 1.0, %v5331_v2 }
 0x48f   : > { %5336 = vrcp.f32 %v1520_v8  ;;  %v1534_v1 = vadd.f32 1.0, %v5333_v3 }
 0x490   : > { %5338 = vrcp.f32 %v1533_v63 }
 0x491   : > { %5340 = vrcp.f32 %v1534_v1 }
 0x497   : > { %v5335_v46 = vpop.eup %5334 }
 0x498   : > { %v1539_v45 = vmul.f32 %v5335_v46, %v1505_v24 }
 0x499   : > { %v5337_v21 = vpop.eup %5336 }
 0x49a   : > { %v1541_v6 = vadd.f32 %v1539_v45, %v1293_v23  ;;  %v1540_v8 = vmul.f32 %v5337_v21, %v1508_v50  ;;  %v5339_v2 = vpop.eup %5338  ;;  %v7943_v23 = vmov 0   ;;  %v5322_v45 = vld [vmem:[#allocation16 + $0xa8] ss:$12 sps:$4 sm:$0xff]   ;;  %v5325_v50 = vld [vmem:[#allocation16 + $0xb0] ss:$12 sps:$4 sm:$0xff]  }
 0x49b   : > { %v5341_v22 = vpop.eup %5340  ;;  %v1545_v9 = vsub.f32 1.0, %v5339_v2  ;;  %v1549_v47 = vmul.f32 %v5339_v2, %v6702_v10 }
 0x49c   : > { %5342 = vtanh.f32 %v1541_v6  ;;  %v1542_v25 = vadd.f32 %v1540_v8, %v1296_v12  ;;  %v1546_v5 = vsub.f32 1.0, %v5341_v22  ;;  %v1550_v4 = vmul.f32 %v5341_v22, %v6704_v11  ;;  %v5321_v22 = vld [vmem:[#allocation16 + $0x98] ss:$12 sps:$4 sm:$0xff]  }
 0x49e   : > { %5344 = vtanh.f32 %v1542_v25 }
 0x4a6   : > { %v5343_v3 = vpop.eup %5342 }
 0x4a7   : > { %v1547_v44 = vmul.f32 %v5343_v3, %v1545_v9 }
 0x4a8   : > { %v5345_v63 = vpop.eup %5344 }
 0x4a9   : > { %v1548_v24 = vmul.f32 %v5345_v63, %v1546_v5  ;;  %v6940_v46 = vadd.f32 %v1549_v47, %v1547_v44  ;;  %v5304_v44 = vld [vmem:[#allocation16 + $0x34] ss:$12 sps:$4 sm:$0xff]   ;;  %v5324_v5 = vld [vmem:[#allocation16 + $0xac] ss:$12 sps:$4 sm:$0xff]  }
 0x4ab   : > { %v6942_v51 = vadd.f32 %v1550_v4, %v1548_v24 }
 0x4ad   : > { %v6946_v1 = vpack.c.bf16 %v6942_v51, %v6940_v46 }
 0x4af   : > { %4887 = vmatmul.mubr.bf16.vlgmr.msra.gmra.mrb[8].mxu1 %v6946_v1 }
 0x4b0   : > { %1704 = vmatpush1.bf16.msra.mxu1 %v6752_v27  ;;  %1735 = vmatprep.mubr.bf16.mxu1 %v7943_v23 }
 0x4b1   : > { %1705 = vmatprep.subr.bf16.mxu1 %v6755_v28 }
 0x4b4   : > { %1706 = vmatpush1.bf16.msra.mxu1 %v6760_v29 }
 0x4b5   : > { %1707 = vmatprep.subr.bf16.mxu1 %v6763_v30  ;;  %v7944_v30 = vmov 0.0  }
 0x4b8   : > { %1708 = vmatpush1.bf16.msra.mxu1 %v6766_v31  ;;  %v7948_v31 = vld [vmem:[#allocation42_spill] sm:$0xff] }
 0x4b9   : > { %1709 = vmatprep.subr.bf16.mxu1 %v6769_v32  ;;  %v7949_v32 = vld [vmem:[#allocation43_spill] sm:$0xff] }
 0x4bc   : > { %1710 = vmatpush1.bf16.msra.mxu1 %v6772_v33  ;;  %v7950_v33 = vld [vmem:[#allocation44_spill] sm:$0xff] }
 0x4bd   : > { %1711 = vmatprep.subr.bf16.mxu1 %v6775_v34  ;;  %v7951_v34 = vld [vmem:[#allocation45_spill] sm:$0xff] }
 0x4c0   : > { %1712 = vmatpush1.bf16.msra.mxu1 %v6778_v35  ;;  %v7952_v35 = vld [vmem:[#allocation46_spill] sm:$0xff] }
 0x4c1   : > { %1713 = vmatprep.subr.bf16.mxu1 %v6781_v36  ;;  %v7953_v36 = vld [vmem:[#allocation47_spill] sm:$0xff] }
 0x4c4   : > { %1714 = vmatpush1.bf16.msra.mxu1 %v6784_v37  ;;  %v7954_v37 = vld [vmem:[#allocation48_spill] sm:$0xff] }
 0x4c5   : > { %1715 = vmatprep.subr.bf16.mxu1 %v6787_v38  ;;  %v5296_v38 = vld [vmem:[#allocation16 + $0x4] ss:$12 sps:$4 sm:$0xff]  }
 0x4c8   : > { %1716 = vmatpush1.bf16.msra.mxu1 %v6790_v39  ;;  %v5294_v39 = vld [vmem:[#allocation16] ss:$12 sps:$4 sm:$0xff]  }
 0x4c9   : > { %1717 = vmatprep.subr.bf16.mxu1 %v6794_v40  ;;  %v5297_v40 = vld [vmem:[#allocation16 + $0x8] ss:$12 sps:$4 sm:$0xff]  }
 0x4cc   : > { %1718 = vmatpush1.bf16.msra.mxu1 %v6796_v41  ;;  %v5300_v41 = vld [vmem:[#allocation16 + $0x1c] ss:$12 sps:$4 sm:$0xff]  }
 0x4cd   : > { %1787 = vmatprep.subr.bf16.mxu1 %v6803_v43  ;;  %v5301_v43 = vld [vmem:[#allocation16 + $0x20] ss:$12 sps:$4 sm:$0xff]  }
 0x582   : > { %v1653_v10 = vpop.f32.mrb[8].mxu1 }
 0x583   : > { %v4888_v11 = vpop.f32.mrb[9].mxu1 }
 0x584   : > { %v1656_v27 = vpop.f32.mrb[10].mxu1  ;;  %v7955_v11 = vld [vmem:[#allocation52_spill] sm:$0xff] }
 0x585   : > { %v1660_v28 = vpack.c.bf16 %v1656_v27, %v1653_v10  ;;  %v4889_v29 = vpop.f32.mrb[11].mxu1 }
 0x587   : > { %4891 = vmatpush3.bf16.msra.mxu0 %v1660_v28 }
 0x588   : > { %4896 = vmatprep.subr.bf16.mxu0 %v7944_v30 }
 0x58a   : > { %4893 = vmatmul.mubr.msk.bf16.vlgmr.msra.gmra.mrb[12].mxu0 %vm1041_vm1, %v6750_v26 }
 0x58b   : > { %4897 = vmatpush3.bf16.msra.mxu0 %v6720_v13  ;;  %4912 = vmatprep.mubr.msk.bf16.mxu0 %vm6190_vm0, %v7944_v30 }
 0x58c   : > { %4898 = vmatprep.subr.bf16.mxu0 %v7944_v30 }
 0x58f   : > { %4899 = vmatpush3.bf16.msra.mxu0 %v6724_v14 }
 0x590   : > { %4900 = vmatprep.subr.bf16.mxu0 %v7944_v30 }
 0x593   : > { %4901 = vmatpush3.bf16.msra.mxu0 %v6728_v15 }
 0x594   : > { %4902 = vmatprep.subr.bf16.mxu0 %v7944_v30 }
 0x597   : > { %4903 = vmatpush3.bf16.msra.mxu0 %v6732_v16 }
 0x598   : > { %4904 = vmatprep.subr.bf16.mxu0 %v7944_v30 }
 0x59b   : > { %4905 = vmatpush3.bf16.msra.mxu0 %v6736_v17  ;;  %v7945_v17 = vld [vmem:[#allocation39_spill] sm:$0xff] }
 0x59c   : > { %4906 = vmatprep.subr.bf16.mxu0 %v7944_v30 }
 0x59f   : > { %4907 = vmatpush3.bf16.msra.mxu0 %v6740_v18  ;;  %v7946_v18 = vld [vmem:[#allocation40_spill] sm:$0xff] }
 0x5a0   : > { %4908 = vmatprep.subr.bf16.mxu0 %v7944_v30 }
 0x5a3   : > { %4909 = vmatpush3.bf16.msra.mxu0 %v6744_v19  ;;  %v7947_v19 = vld [vmem:[#allocation41_spill] sm:$0xff] }
 0x5a4   : > { %4910 = vmatprep.subr.bf16.mxu0 %v7944_v30 }
 0x5a7   : > { %4911 = vmatpush3.bf16.msra.mxu0 %v6799_v42  ;;  %v5298_v42 = vld [vmem:[#allocation16 + $0x18] ss:$12 sps:$4 sm:$0xff]  }
 0x5a8   : > { %4916 = vmatprep.subr.bf16.mxu0 %v7944_v30 }
 0x65d   : > { %v1695_v13 = vpop.f32.mrb[12].mxu0 }
 0x65e   : > { %v4894_v14 = vpop.f32.mrb[13].mxu0 }
 0x65f   : > { %v1698_v15 = vpop.f32.mrb[14].mxu0 }
 0x660   : > { %v1702_v16 = vpack.c.bf16 %v1698_v15, %v1695_v13  ;;  %v4895_v26 = vpop.f32.mrb[15].mxu0 }
 0x662   : > { %1736 = vmatmul.mubr.bf16.vlgmr.msra.gmra.mrb[12].mxu1 %v1702_v16  ;;  %4913 = vmatmul.mubr.bf16.vlgmr.msra.gmra.mrb[16].mxu0 %v1702_v16 }
 0x663   : > { %1788 = vmatpush1.bf16.msra.mxu1 %v6810_v48  ;;  %4917 = vmatpush3.bf16.msra.mxu0 %v6812_v49  ;;  %v5302_v48 = vld [vmem:[#allocation16 + $0x30] ss:$12 sps:$4 sm:$0xff]   ;;  %v5305_v49 = vld [vmem:[#allocation16 + $0x38] ss:$12 sps:$4 sm:$0xff]  }
 0x664   : > { %1789 = vmatprep.subr.bf16.mxu1 %v6814_v52  ;;  %4918 = vmatprep.subr.bf16.mxu0 %v7944_v30  ;;  %v5308_v52 = vld [vmem:[#allocation16 + $0x4c] ss:$12 sps:$4 sm:$0xff]  }
 0x665   : > { %1819 = vmatprep.mubr.bf16.mxu1 %v7943_v23  ;;  %4932 = vmatprep.mubr.msk.bf16.mxu0 %vm6190_vm0, %v7944_v30 }
 0x667   : > { %1790 = vmatpush1.bf16.msra.mxu1 %v6817_v53  ;;  %4919 = vmatpush3.bf16.msra.mxu0 %v6820_v54  ;;  %v5306_v53 = vld [vmem:[#allocation16 + $0x48] ss:$12 sps:$4 sm:$0xff]   ;;  %v5309_v54 = vld [vmem:[#allocation16 + $0x50] ss:$12 sps:$4 sm:$0xff]  }
 0x668   : > { %1791 = vmatprep.subr.bf16.mxu1 %v6823_v55  ;;  %4920 = vmatprep.subr.bf16.mxu0 %v7944_v30  ;;  %v5312_v55 = vld [vmem:[#allocation16 + $0x64] ss:$12 sps:$4 sm:$0xff]  }
 0x66b   : > { %1792 = vmatpush1.bf16.msra.mxu1 %v6830_v56  ;;  %4921 = vmatpush3.bf16.msra.mxu0 %v6833_v57  ;;  %v5310_v56 = vld [vmem:[#allocation16 + $0x60] ss:$12 sps:$4 sm:$0xff]   ;;  %v5313_v57 = vld [vmem:[#allocation16 + $0x68] ss:$12 sps:$4 sm:$0xff]  }
 0x66c   : > { %1793 = vmatprep.subr.bf16.mxu1 %v6836_v58  ;;  %4922 = vmatprep.subr.bf16.mxu0 %v7944_v30  ;;  %v5316_v58 = vld [vmem:[#allocation16 + $0x7c] ss:$12 sps:$4 sm:$0xff]  }
 0x66f   : > { %1794 = vmatpush1.bf16.msra.mxu1 %v6840_v59  ;;  %4923 = vmatpush3.bf16.msra.mxu0 %v6843_v60  ;;  %v5314_v59 = vld [vmem:[#allocation16 + $0x78] ss:$12 sps:$4 sm:$0xff]   ;;  %v5317_v60 = vld [vmem:[#allocation16 + $0x80] ss:$12 sps:$4 sm:$0xff]  }
 0x670   : > { %1795 = vmatprep.subr.bf16.mxu1 %v6846_v61  ;;  %4924 = vmatprep.subr.bf16.mxu0 %v7944_v30  ;;  %v5320_v61 = vld [vmem:[#allocation16 + $0x94] ss:$12 sps:$4 sm:$0xff]  }
 0x673   : > { %1796 = vmatpush1.bf16.msra.mxu1 %v6850_v62  ;;  %4925 = vmatpush3.bf16.msra.mxu0 %v7945_v17  ;;  %v5318_v62 = vld [vmem:[#allocation16 + $0x90] ss:$12 sps:$4 sm:$0xff]  }
 0x674   : > { %1797 = vmatprep.subr.bf16.mxu1 %v7946_v18  ;;  %4926 = vmatprep.subr.bf16.mxu0 %v7944_v30 }
 0x677   : > { %1798 = vmatpush1.bf16.msra.mxu1 %v7947_v19  ;;  %4927 = vmatpush3.bf16.msra.mxu0 %v7948_v31 }
 0x678   : > { %1799 = vmatprep.subr.bf16.mxu1 %v7949_v32  ;;  %4928 = vmatprep.subr.bf16.mxu0 %v7944_v30 }
 0x67b   : > { %1800 = vmatpush1.bf16.msra.mxu1 %v7950_v33  ;;  %4929 = vmatpush3.bf16.msra.mxu0 %v7951_v34 }
 0x67c   : > { %1801 = vmatprep.subr.bf16.mxu1 %v7952_v35  ;;  %4930 = vmatprep.subr.bf16.mxu0 %v7944_v30 }
 0x67f   : > { %1802 = vmatpush1.bf16.msra.mxu1 %v7953_v36  ;;  %4931 = vmatpush3.bf16.msra.mxu0 %v7954_v37 }
 0x680   : > { %4936 = vmatprep.subr.bf16.mxu0 %v7944_v30  ;;  %2093 = vmatprep.subr.bf16.mxu1 %v5296_v38 }
 0x682   : > { %1820 = vmatmul.mubr.bf16.vlgmr.msra.gmra.mrb[12].mxu1 %v6946_v1  ;;  %4933 = vmatmul.mubr.bf16.vlgmr.msra.gmra.mrb[20].mxu0 %v6946_v1 }
 0x683   : > { %2125 = vmatprep.mubr.bf16.mxu1 %v7943_v23  ;;  %4952 = vmatprep.mubr.msk.bf16.mxu0 %vm6190_vm0, %v7944_v30 }
 0x684   : > { %2094 = vmatpush1.bf16.msra.mxu1 %v5294_v39  ;;  %4937 = vmatpush3.bf16.msra.mxu0 %v5297_v40 }
 0x685   : > { %4938 = vmatprep.subr.bf16.mxu0 %v7944_v30  ;;  %2095 = vmatprep.subr.bf16.mxu1 %v5300_v41 }
 0x688   : > { %2096 = vmatpush1.bf16.msra.mxu1 %v5298_v42  ;;  %4939 = vmatpush3.bf16.msra.mxu0 %v5301_v43 }
 0x689   : > { %4940 = vmatprep.subr.bf16.mxu0 %v7944_v30  ;;  %2097 = vmatprep.subr.bf16.mxu1 %v5304_v44 }
 0x68c   : > { %2098 = vmatpush1.bf16.msra.mxu1 %v5302_v48  ;;  %4941 = vmatpush3.bf16.msra.mxu0 %v5305_v49 }
 0x68d   : > { %4942 = vmatprep.subr.bf16.mxu0 %v7944_v30  ;;  %2099 = vmatprep.subr.bf16.mxu1 %v5308_v52 }
 0x690   : > { %2100 = vmatpush1.bf16.msra.mxu1 %v5306_v53  ;;  %4943 = vmatpush3.bf16.msra.mxu0 %v5309_v54 }
 0x691   : > { %4944 = vmatprep.subr.bf16.mxu0 %v7944_v30  ;;  %2101 = vmatprep.subr.bf16.mxu1 %v5312_v55 }
 0x694   : > { %2102 = vmatpush1.bf16.msra.mxu1 %v5310_v56  ;;  %4945 = vmatpush3.bf16.msra.mxu0 %v5313_v57 }
 0x695   : > { %2103 = vmatprep.subr.bf16.mxu1 %v5316_v58  ;;  %4946 = vmatprep.subr.bf16.mxu0 %v7944_v30  ;;  %v1948_v58 = vld [vmem:[#allocation18] sm:$0x7] }
 0x698   : > { %2104 = vmatpush1.bf16.msra.mxu1 %v5314_v59  ;;  %4947 = vmatpush3.bf16.msra.mxu0 %v5317_v60  ;;  %v7956_v59 = vld [vmem:[#allocation50_spill] sm:$0xff] }
 0x699   : > { %2105 = vmatprep.subr.bf16.mxu1 %v5320_v61  ;;  %4948 = vmatprep.subr.bf16.mxu0 %v7944_v30  ;;  %v1953_v60 = vrot.slane %v1948_v58, %v7956_v59 }
 0x69c   : > { %2106 = vmatpush1.bf16.msra.mxu1 %v5318_v62  ;;  %4949 = vmatpush3.bf16.msra.mxu0 %v5321_v22  ;;  %v7958_v62 = vld [vmem:[#allocation51_spill] sm:$0xff] }
 0x69d   : > { %2107 = vmatprep.subr.bf16.mxu1 %v5324_v5  ;;  %4950 = vmatprep.subr.bf16.mxu0 %v7944_v30  ;;  %v1957_v22 = vrot.slane %v1948_v58, %v7958_v62 }
 0x6a0   : > { %2108 = vmatpush1.bf16.msra.mxu1 %v5322_v45  ;;  %4951 = vmatpush3.bf16.msra.mxu0 %v5325_v50 }
 0x735   : > { %v1780_v21 = vpop.f32.mrb[16].mxu0 }
 0x736   : > { %v4914_v12 = vpop.f32.mrb[17].mxu0  ;;  %v1781_v34 = vadd.f32 %v1780_v21, %v6932_v7 }
 0x737   : > { %v1783_v6 = vpop.f32.mrb[18].mxu0 }
 0x738   : > { %v4915_v8 = vpop.f32.mrb[19].mxu0  ;;  %v1784_v38 = vadd.f32 %v1783_v6, %v6932_v7 }
 0x755   : > { %v1821_v25 = vpop.f32.mrb[12].mxu1  ;;  %v1864_v2 = vpop.f32.mrb[20].mxu0 }
 0x756   : > { %v5015_v9 = vadd.f32 %v6917_v20, %v1821_v25  ;;  %v1823_v3 = vpop.f32.mrb[13].mxu1  ;;  %v4934_v47 = vpop.f32.mrb[21].mxu0  ;;  %v1865_v31 = vadd.f32 %v1864_v2, %v6929_v0 }
 0x757   : > { %v1825_v63 = vpop.f32.mrb[14].mxu1  ;;  %v1867_v24 = vpop.f32.mrb[22].mxu0  ;;  %v5017_v27 = vadd.f32 %v7955_v11, %v1823_v3 }
 0x758   : > { %v4514_v4 = vmul.f32 -1.442695, %v5015_v9  ;;  %v5019_v1 = vadd.f32 %v6917_v20, %v1825_v63  ;;  %v1827_v23 = vpop.f32.mrb[15].mxu1  ;;  %v4935_v10 = vpop.f32.mrb[23].mxu0  ;;  %v1868_v36 = vadd.f32 %v1867_v24, %v6929_v0 }
 0x759   : > { %v5021_v29 = vadd.f32 %v7955_v11, %v1827_v23  ;;  %v4516_v13 = vmul.f32 -1.442695, %v5017_v27 }
 0x75a   : > { %5346 = vpow2.f32 %v4514_v4  ;;  %v4515_v28 = vmul.f32 -1.442695, %v5019_v1 }
 0x75b   : > { %v4517_v14 = vmul.f32 -1.442695, %v5021_v29 }
 0x75c   : > { %5348 = vpow2.f32 %v4515_v28 }
 0x75d   : > { %5350 = vpow2.f32 %v4516_v13 }
 0x75e   : > { %5352 = vpow2.f32 %v4517_v14 }
 0x764   : > { %v5347_v15 = vpop.eup %5346 }
 0x765   : > { %v1879_v16 = vadd.f32 1.0, %v5347_v15 }
 0x766   : > { %v5349_v26 = vpop.eup %5348 }
 0x767   : > { %5354 = vrcp.f32 %v1879_v16  ;;  %v1880_v17 = vadd.f32 1.0, %v5349_v26  ;;  %v5351_v20 = vpop.eup %5350 }
 0x768   : > { %v5353_v18 = vpop.eup %5352  ;;  %v1893_v19 = vadd.f32 1.0, %v5351_v20 }
 0x769   : > { %5356 = vrcp.f32 %v1880_v17  ;;  %v1894_v32 = vadd.f32 1.0, %v5353_v18 }
 0x76a   : > { %5358 = vrcp.f32 %v1893_v19  ;;  %v2213_v19 = vld [vmem:[#allocation19] sm:$0x7] }
 0x76b   : > { %5360 = vrcp.f32 %v1894_v32  ;;  %v2222_v32 = vrot.slane %v2213_v19, %v7958_v62 }
 0x771   : > { %v5355_v33 = vpop.eup %5354 }
 0x772   : > { %v1899_v35 = vmul.f32 %v5355_v33, %v1865_v31  ;;  %v2218_v31 = vrot.slane %v2213_v19, %v7956_v59 }
 0x773   : > { %v5357_v37 = vpop.eup %5356 }
 0x774   : > { %v1901_v39 = vadd.f32 %v1899_v35, %v1781_v34  ;;  %v1900_v40 = vmul.f32 %v5357_v37, %v1868_v36  ;;  %v5359_v42 = vpop.eup %5358 }
 0x775   : > { %v5361_v43 = vpop.eup %5360  ;;  %v1905_v44 = vsub.f32 1.0, %v5359_v42  ;;  %v1909_v53 = vmul.f32 %v5359_v42, %v6940_v46  ;;  %v7957_v46 = vld [vmem:[#allocation53_spill] sm:$0xff] }
 0x776   : > { %5362 = vtanh.f32 %v1901_v39  ;;  %v1902_v41 = vadd.f32 %v1900_v40, %v1784_v38  ;;  %v1906_v49 = vsub.f32 1.0, %v5361_v43  ;;  %v1910_v0 = vmul.f32 %v5361_v43, %v6942_v51 }
 0x777   : > { %v1961_v61 = vrot.slane %v1948_v58, %v7957_v46  ;;  %v2226_v35 = vrot.slane %v2213_v19, %v7957_v46 }
 0x778   : > { %5364 = vtanh.f32 %v1902_v41 }
 0x780   : > { %v5363_v48 = vpop.eup %5362 }
 0x781   : > { %v1907_v52 = vmul.f32 %v5363_v48, %v1905_v44 }
 0x782   : > { %v5365_v54 = vpop.eup %5364 }
 0x783   : > { %v1908_v55 = vmul.f32 %v5365_v54, %v1906_v49  ;;  %v7043_v56 = vadd.f32 %v1909_v53, %v1907_v52 }
 0x785   : > { %v7045_v7 = vadd.f32 %v1910_v0, %v1908_v55  ;;  %v4548_v55 = vld [vmem:[#allocation3] ss:$0 sm:$0xff] }
 0x787   : > { %v1915_v57 = vpack.c.bf16 %v7045_v7, %v7043_v56 }
 0x789   : > { %2126 = vmatmul.mubr.bf16.vlgmr.msra.gmra.mrb[16].mxu1 %v1915_v57  ;;  %4953 = vmatmul.mubr.bf16.vlgmr.msra.gmra.mrb[24].mxu0 %v1915_v57 }
 0x78a   : > { %4960 = vmatprep.mubr.msk.f32.mxu1 %vm6190_vm0, %v7944_v30 }
 0x85c   : > { %v2127_v51 = vpop.f32.mrb[16].mxu1  ;;  %v2170_v5 = vpop.f32.mrb[24].mxu0 }
 0x85d   : > { %v2128_v45 = vadd.f32 %v2127_v51, %v1953_v60  ;;  %v2171_v50 = vadd.f32 %v2170_v5, %v1961_v61  ;;  %v2129_v21 = vpop.f32.mrb[17].mxu1  ;;  %v4954_v12 = vpop.f32.mrb[25].mxu0 }
 0x85e   : > { %v2130_v6 = vadd.f32 %v2129_v21, %v1957_v22  ;;  %v2131_v8 = vpop.f32.mrb[18].mxu1  ;;  %v2173_v25 = vpop.f32.mrb[26].mxu0  ;;  %v1914_v21 = vld [vmem:[%s7959_s22 + $0x8] sm:$0xff] }
 0x85f   : > { %v4542_v2 = vmul.f32 -1.442695, %v2128_v45  ;;  %v4544_v9 = vmul.f32 -1.442695, %v2171_v50  ;;  %v2132_v3 = vadd.f32 %v2131_v8, %v1953_v60  ;;  %v2174_v30 = vadd.f32 %v2173_v25, %v1961_v61  ;;  %v2133_v47 = vpop.f32.mrb[19].mxu1  ;;  %v4955_v63 = vpop.f32.mrb[27].mxu0 }
 0x860   : > { %v4543_v24 = vmul.f32 -1.442695, %v2130_v6  ;;  %v2134_v4 = vadd.f32 %v2133_v47, %v1957_v22  ;;  %v1913_v50 = vld [vmem:[%s7959_s22] sm:$0xff]  ;;  %vm2266_vm3 = vcmp.gt.f32.partialorder %v1914_v21, 0.5 }
 0x861   : > { %5366 = vpow2.f32 %v4542_v2  ;;  %v4545_v1 = vmul.f32 -1.442695, %v2132_v3  ;;  %v4547_v23 = vmul.f32 -1.442695, %v2174_v30  ;;  %vm2265_vm2 = vcmp.gt.f32.partialorder %v1913_v50, 0.5 }
 0x862   : > { %5368 = vpow2.f32 %v4544_v9  ;;  %v4546_v10 = vmul.f32 -1.442695, %v2134_v4 }
 0x863   : > { %5370 = vpow2.f32 %v4543_v24 }
 0x864   : > { %5372 = vpow2.f32 %v4545_v1 }
 0x865   : > { %5374 = vpow2.f32 %v4547_v23 }
 0x866   : > { %5376 = vpow2.f32 %v4546_v10 }
 0x86b   : > { %v5367_v11 = vpop.eup %5366 }
 0x86c   : > { %v5369_v27 = vpop.eup %5368  ;;  %v2195_v28 = vadd.f32 1.0, %v5367_v11 }
 0x86d   : > { %v5371_v29 = vpop.eup %5370  ;;  %v2197_v13 = vadd.f32 1.0, %v5369_v27 }
 0x86e   : > { %v5373_v14 = vpop.eup %5372  ;;  %5378 = vrcp.f32 %v2195_v28  ;;  %v2196_v15 = vadd.f32 1.0, %v5371_v29 }
 0x86f   : > { %v5375_v16 = vpop.eup %5374  ;;  %5380 = vrcp.f32 %v2197_v13  ;;  %v2198_v26 = vadd.f32 1.0, %v5373_v14 }
 0x870   : > { %v5377_v17 = vpop.eup %5376  ;;  %5382 = vrcp.f32 %v2196_v15  ;;  %v2200_v20 = vadd.f32 1.0, %v5375_v16 }
 0x871   : > { %5384 = vrcp.f32 %v2198_v26  ;;  %v2199_v18 = vadd.f32 1.0, %v5377_v17 }
 0x872   : > { %5386 = vrcp.f32 %v2200_v20 }
 0x873   : > { %5388 = vrcp.f32 %v2199_v18 }
 0x878   : > { %v5379_v33 = vpop.eup %5378 }
 0x879   : > { %v5381_v34 = vpop.eup %5380  ;;  %v2230_v36 = vmul.f32 %v5379_v33, %v2218_v31 }
 0x87a   : > { %v5383_v37 = vpop.eup %5382  ;;  %v2232_v43 = vmul.f32 %v5381_v34, %v2226_v35 }
 0x87b   : > { %v5385_v38 = vpop.eup %5384  ;;  %v2231_v39 = vmul.f32 %v5383_v37, %v2222_v32 }
 0x87c   : > { %v5387_v40 = vpop.eup %5386  ;;  %v2233_v41 = vmul.f32 %v5385_v38, %v2218_v31 }
 0x87d   : > { %v5389_v42 = vpop.eup %5388  ;;  %v2236_v44 = vadd.f32 %v2231_v39, %v2230_v36  ;;  %v2235_v52 = vmul.f32 %v5387_v40, %v2226_v35  ;;  %v6192_v39 = vmov 0.0|0.0  }
 0x87e   : > { %v2234_v48 = vmul.f32 %v5389_v42, %v2222_v32  ;;  %5003 = vmatprep.subr.bf16.mxu1 %v6192_v39 }
 0x87f   : > { %v2237_v49 = vadd.f32 %v2236_v44, %v2232_v43 }
 0x880   : > { %v2240_v53 = vadd.f32 %v2234_v48, %v2233_v41  ;;  %v2316_v48 = vld [vmem:[#allocation7] sm:$0xff] }
 0x881   : > { %2238 = vadd.xlane.f32.xlu0 %v2237_v49 }
 0x882   : > { %v2241_v54 = vadd.f32 %v2240_v53, %v2235_v52 }
 0x885   : > { %2242 = vadd.xlane.f32.xlu0 %v2241_v54 }
 0x90e   : > { %v2239_v0 = vpop.xlane.xlu0 %2238 }
 0x90f   : > { %v2251_v57 = vadd.f32 %v4548_v55, %v2239_v0 }
 0x911   : > { %v4549_v58 = vmul.f32 -1.442695, %v2251_v57 }
 0x912   : > { %v2243_v59 = vpop.xlane.xlu0 %2242 }
 0x913   : > { %5390 = vpow2.f32 %v4549_v58  ;;  %v2252_v60 = vadd.f32 %v4548_v55, %v2243_v59 }
 0x915   : > { %v4550_v46 = vmul.f32 -1.442695, %v2252_v60 }
 0x917   : > { %5392 = vpow2.f32 %v4550_v46 }
 0x91d   : > { %v5391_v61 = vpop.eup %5390 }
 0x91e   : > { %v2259_v62 = vadd.f32 1.0, %v5391_v61 }
 0x920   : > { %5394 = vrcp.f32 %v2259_v62 }
 0x921   : > { %v5393_v22 = vpop.eup %5392 }
 0x922   : > { %v2260_v51 = vadd.f32 1.0, %v5393_v22 }
 0x924   : > { %5396 = vrcp.f32 %v2260_v51 }
 0x92a   : > { %v5395_v5 = vpop.eup %5394 }
 0x92b   : > { %2269 = vperm.xlu1 %5211, %v5395_v5  }
 0x92e   : > { %v5397_v45 = vpop.eup %5396 }
 0x92f   : > { %2274 = vperm.xlu1 %5211, %v5397_v45  }
 0x9aa   : > { %v2270_v12 = vpop.permute.xlu1 %2269 }
 0x9ab   : > { %v2277_v6 = vsel %vm2265_vm2, %v2270_v12, -1e+30 }
 0x9ac   : > { %v2280_v2 = vsel %vm2279_vm4, %v2277_v6, -inf }
 0x9ae   : > { %v2275_v8 = vpop.permute.xlu1 %2274 }
 0x9af   : > { %v2278_v25 = vsel %vm2266_vm3, %v2275_v8, -1e+30 }
 0x9b0   : > { %v2281_v9 = vsel %vm2279_vm4, %v2278_v25, -inf }
 0x9b1   : > { %v2282_v3 = vmax.f32 %v2280_v2, %v2281_v9 }
 0x9b3   : > { %v2283_v30 = vrot.slane %v2282_v3, 4 }
 0x9b5   : > { %v2284_v47 = vmax.f32 %v2282_v3, %v2283_v30 }
 0x9b7   : > { %v2285_v63 = vrot.slane %v2284_v47, 2 }
 0x9b9   : > { %v2286_v24 = vmax.f32 %v2284_v47, %v2285_v63 }
 0x9bb   : > { %v2287_v4 = vrot.slane %v2286_v24, 1 }
 0x9bd   : > { %v2288_v1 = vmax.f32 %v2286_v24, %v2287_v4 }
 0x9bf   : > { %v2289_v23 = vsub.f32 %v2277_v6, %v2288_v1  ;;  %v2290_v10 = vsub.f32 %v2278_v25, %v2288_v1 }
 0x9c1   : > { %v2291_v11 = vmul.f32 1.442695, %v2289_v23  ;;  %v2293_v27 = vmul.f32 1.442695, %v2290_v10 }
 0x9c3   : > { %5398 = vpow2.f32 %v2291_v11 }
 0x9c4   : > { %5400 = vpow2.f32 %v2293_v27 }
 0x9cd   : > { %v5399_v28 = vpop.eup %5398 }
 0x9ce   : > { %v5401_v29 = vpop.eup %5400  ;;  %v2295_v13 = vmul.f32 %v5399_v28, %v1913_v50 }
 0x9cf   : > { %v2296_v14 = vmul.f32 %v5401_v29, %v1914_v21 }
 0x9d0   : > { %v2297_v15 = vsel %vm2279_vm4, %v2295_v13, 0.0 }
 0x9d1   : > { %v2298_v16 = vsel %vm2279_vm4, %v2296_v14, 0.0 }
 0x9d2   : > { %v2299_v26 = vadd.f32 %v2298_v16, %v2297_v15 }
 0x9d4   : > { %v2300_v17 = vrot.slane %v2299_v26, 4 }
 0x9d6   : > { %v2301_v20 = vadd.f32 %v2300_v17, %v2299_v26 }
 0x9d8   : > { %v2302_v18 = vrot.slane %v2301_v20, 2 }
 0x9da   : > { %v2303_v19 = vadd.f32 %v2302_v18, %v2301_v20 }
 0x9dc   : > { %v2304_v31 = vrot.slane %v2303_v19, 1 }
 0x9de   : > { %v2305_v32 = vadd.f32 %v2304_v31, %v2303_v19 }
 0x9e0   : > { %v2306_v33 = vmax.f32 %v2305_v32, 1e-20 }
 0x9e2   : > { %5402 = vrcp.f32 %v2306_v33 }
 0x9ec   : > { %v5403_v34 = vpop.eup %5402 }
 0x9ed   : > { %v2309_v35 = vmul.f32 %v5403_v34, %v2296_v14  ;;  %v2308_v36 = vmul.f32 %v5403_v34, %v2295_v13 }
 0x9ef   : > { %v2313_v37 = vsel %vm2279_vm4, %v2309_v35, 0.0  ;;  %v2310_v38 = vsel %vm2279_vm4, %v2308_v36, 0.0 }
 0x9f0   : > { %2314 = vadd.xlane.f32.xlu1 %v2313_v37  ;;  %2311 = vadd.xlane.f32.xlu0 %v2310_v38 }
 0xa7d   : > { %v2315_v40 = vpop.xlane.xlu1 %2314  ;;  %v2312_v41 = vpop.xlane.xlu0 %2311 }
 0xa7e   : > { %v2318_v42 = vmul.f32 %v2315_v40, %v7045_v7  ;;  %v2317_v43 = vmul.f32 %v2312_v41, %v7043_v56 }
 0xa80   : > { %v5004_v44 = vpack.c.bf16 %v2318_v42, %v2317_v43 }
 0xa82   : > { %5005 = vmatpush3.bf16.msra.mxu1 %v5004_v44 }
 0xa85   : > { %4961 = vmatmul.mubr.msk.f32.vlgmr.msra.gmra.mrb[20].mxu1 %vm1041_vm1, %v2316_v48 }
 0xb53   : > { %2398 = sbr.rel (%p4553_p0) target bundleno = 4039 (0xfc7), region = 164 }
 0xb58   : > { %v7073_v49 = vpop.f32.mrb[20].mxu1 }
 0xb59   : > { %7960 = vst [vmem:[#allocation39_spill] sm:$0xff] %v7073_v49  ;;  %2394 = vst [vmem:[%s2393_s9] sm:$0xff] %v7073_v49  ;;  %v4962_v52 = vpop.f32.mrb[21].mxu1 }
 0xb5a   : > { %v7077_v53 = vld [vmem:[#allocation22 + $0x4] ss:$16 sps:$4 sm:$0xff]   ;;  %v7079_v7 = vld [vmem:[#allocation22 + $0xc] ss:$16 sps:$4 sm:$0xff]   ;;  %v7790_v56 = vmov 0   ;;  %vm6195_vm5 = vmmov 0  }
 0xb5b   : > { %2773 = vmatprep.mubr.bf16.mxu0 %v7790_v56  ;;  %2814 = vmatprep.mubr.bf16.mxu1 %v7790_v56  ;;  %v7084_v54 = vld [vmem:[#allocation22] ss:$16 sps:$4 sm:$0xff]   ;;  %v7086_v55 = vld [vmem:[#allocation22 + $0x8] ss:$16 sps:$4 sm:$0xff]   ;;  %v7089_v0 = vld [vmem:[#allocation22 + $0x24] ss:$16 sps:$4 sm:$0xff]  }
 0xb5c   : > { %2741 = vmatprep.subr.bf16.mxu0 %v7077_v53  ;;  %2782 = vmatprep.subr.bf16.mxu1 %v7079_v7  ;;  %v7093_v57 = vld [vmem:[#allocation22 + $0x2c] ss:$16 sps:$4 sm:$0xff]   ;;  %v7095_v58 = vld [vmem:[#allocation22 + $0x20] ss:$16 sps:$4 sm:$0xff]   ;;  %v7098_v59 = vld [vmem:[#allocation22 + $0x28] ss:$16 sps:$4 sm:$0xff]  }
 0xb5d   : > { %2742 = vmatpush1.bf16.msra.mxu0 %v7084_v54  ;;  %2783 = vmatpush1.bf16.msra.mxu1 %v7086_v55  ;;  %v7101_v60 = vld [vmem:[#allocation22 + $0x44] ss:$16 sps:$4 sm:$0xff]   ;;  %v7103_v46 = vld [vmem:[#allocation22 + $0x4c] ss:$16 sps:$4 sm:$0xff]   ;;  %v7105_v61 = vld [vmem:[#allocation22 + $0x40] ss:$16 sps:$4 sm:$0xff]  }
 0xb5e   : > { %2743 = vmatprep.subr.bf16.mxu0 %v7089_v0  ;;  %2784 = vmatprep.subr.bf16.mxu1 %v7093_v57  ;;  %v7107_v62 = vld [vmem:[#allocation22 + $0x48] ss:$16 sps:$4 sm:$0xff]   ;;  %v7111_v22 = vld [vmem:[#allocation22 + $0x64] ss:$16 sps:$4 sm:$0xff]   ;;  %v7115_v51 = vld [vmem:[#allocation22 + $0x6c] ss:$16 sps:$4 sm:$0xff]  }
 0xb5f   : > { %v7117_v5 = vld [vmem:[#allocation22 + $0x60] ss:$16 sps:$4 sm:$0xff]   ;;  %v7121_v45 = vld [vmem:[#allocation22 + $0x68] ss:$16 sps:$4 sm:$0xff]   ;;  %v7123_v50 = vld [vmem:[#allocation22 + $0x84] ss:$16 sps:$4 sm:$0xff]  }
 0xb60   : > { %v7127_v21 = vld [vmem:[#allocation22 + $0x8c] ss:$16 sps:$4 sm:$0xff]   ;;  %v7129_v12 = vld [vmem:[#allocation22 + $0x80] ss:$16 sps:$4 sm:$0xff]   ;;  %v7131_v6 = vld [vmem:[#allocation22 + $0x88] ss:$16 sps:$4 sm:$0xff]  }
 0xb61   : > { %2744 = vmatpush1.bf16.msra.mxu0 %v7095_v58  ;;  %2785 = vmatpush1.bf16.msra.mxu1 %v7098_v59  ;;  %v7135_v8 = vld [vmem:[#allocation22 + $0xa4] ss:$16 sps:$4 sm:$0xff]   ;;  %v7139_v25 = vld [vmem:[#allocation22 + $0xac] ss:$16 sps:$4 sm:$0xff]   ;;  %v7141_v2 = vld [vmem:[#allocation22 + $0xa0] ss:$16 sps:$4 sm:$0xff]  }
 0xb62   : > { %2745 = vmatprep.subr.bf16.mxu0 %v7101_v60  ;;  %2786 = vmatprep.subr.bf16.mxu1 %v7103_v46  ;;  %v7145_v9 = vld [vmem:[#allocation22 + $0xa8] ss:$16 sps:$4 sm:$0xff]   ;;  %v7147_v3 = vld [vmem:[#allocation22 + $0xc4] ss:$16 sps:$4 sm:$0xff]   ;;  %v7151_v30 = vld [vmem:[#allocation22 + $0xcc] ss:$16 sps:$4 sm:$0xff]  }
 0xb63   : > { %v7153_v47 = vld [vmem:[#allocation22 + $0xc0] ss:$16 sps:$4 sm:$0xff]   ;;  %v7155_v63 = vld [vmem:[#allocation22 + $0xc8] ss:$16 sps:$4 sm:$0xff]   ;;  %v7159_v24 = vld [vmem:[#allocation22 + $0xe4] ss:$16 sps:$4 sm:$0xff]  }
 0xb64   : > { %v7163_v4 = vld [vmem:[#allocation22 + $0xec] ss:$16 sps:$4 sm:$0xff]   ;;  %v7165_v1 = vld [vmem:[#allocation22 + $0xe0] ss:$16 sps:$4 sm:$0xff]   ;;  %v7167_v23 = vld [vmem:[#allocation22 + $0xe8] ss:$16 sps:$4 sm:$0xff]  }
 0xb65   : > { %2746 = vmatpush1.bf16.msra.mxu0 %v7105_v61  ;;  %2787 = vmatpush1.bf16.msra.mxu1 %v7107_v62  ;;  %v7171_v10 = vld [vmem:[#allocation21 + $0x4] ss:$16 sps:$4 sm:$0xff]   ;;  %v7175_v11 = vld [vmem:[#allocation21 + $0xc] ss:$16 sps:$4 sm:$0xff]   ;;  %v7177_v27 = vld [vmem:[#allocation21] ss:$16 sps:$4 sm:$0xff]  }
 0xb66   : > { %2747 = vmatprep.subr.bf16.mxu0 %v7111_v22  ;;  %2788 = vmatprep.subr.bf16.mxu1 %v7115_v51  ;;  %v7179_v28 = vld [vmem:[#allocation21 + $0x8] ss:$16 sps:$4 sm:$0xff]   ;;  %v7183_v29 = vld [vmem:[#allocation21 + $0x24] ss:$16 sps:$4 sm:$0xff]   ;;  %v7187_v13 = vld [vmem:[#allocation21 + $0x2c] ss:$16 sps:$4 sm:$0xff]  }
 0xb67   : > { %v7191_v14 = vld [vmem:[#allocation21 + $0x20] ss:$16 sps:$4 sm:$0xff]   ;;  %v7193_v15 = vld [vmem:[#allocation21 + $0x28] ss:$16 sps:$4 sm:$0xff]   ;;  %v7197_v16 = vld [vmem:[#allocation21 + $0x44] ss:$16 sps:$4 sm:$0xff]  }
 0xb68   : > { %7961 = vst [vmem:[#allocation54_spill] sm:$0xff] %v7193_v15  ;;  %7962 = vst [vmem:[#allocation55_spill] sm:$0xff] %v7197_v16  ;;  %v7201_v26 = vld [vmem:[#allocation21 + $0x4c] ss:$16 sps:$4 sm:$0xff]   ;;  %v7205_v17 = vld [vmem:[#allocation21 + $0x40] ss:$16 sps:$4 sm:$0xff]  }
 0xb69   : > { %2748 = vmatpush1.bf16.msra.mxu0 %v7117_v5  ;;  %2789 = vmatpush1.bf16.msra.mxu1 %v7121_v45  ;;  %7963 = vst [vmem:[#allocation56_spill] sm:$0xff] %v7201_v26  ;;  %7964 = vst [vmem:[#allocation57_spill] sm:$0xff] %v7205_v17  ;;  %v7207_v20 = vld [vmem:[#allocation21 + $0x48] ss:$16 sps:$4 sm:$0xff]   ;;  %v7211_v18 = vld [vmem:[#allocation21 + $0x64] ss:$16 sps:$4 sm:$0xff]  }
 0xb6a   : > { %2749 = vmatprep.subr.bf16.mxu0 %v7123_v50  ;;  %2790 = vmatprep.subr.bf16.mxu1 %v7127_v21  ;;  %7965 = vst [vmem:[#allocation58_spill] sm:$0xff] %v7207_v20  ;;  %7966 = vst [vmem:[#allocation59_spill] sm:$0xff] %v7211_v18  ;;  %v7215_v19 = vld [vmem:[#allocation21 + $0x6c] ss:$16 sps:$4 sm:$0xff]   ;;  %v7217_v31 = vld [vmem:[#allocation21 + $0x60] ss:$16 sps:$4 sm:$0xff]  }
 0xb6b   : > { %7967 = vst [vmem:[#allocation60_spill] sm:$0xff] %v7215_v19  ;;  %7968 = vst [vmem:[#allocation61_spill] sm:$0xff] %v7217_v31  ;;  %v7219_v32 = vld [vmem:[#allocation21 + $0x68] ss:$16 sps:$4 sm:$0xff]   ;;  %v7221_v33 = vld [vmem:[#allocation21 + $0x84] ss:$16 sps:$4 sm:$0xff]  }
 0xb6c   : > { %7969 = vst [vmem:[#allocation62_spill] sm:$0xff] %v7219_v32  ;;  %7970 = vst [vmem:[#allocation63_spill] sm:$0xff] %v7221_v33  ;;  %v7223_v34 = vld [vmem:[#allocation21 + $0x8c] ss:$16 sps:$4 sm:$0xff]   ;;  %v7229_v35 = vld [vmem:[#allocation21 + $0x80] ss:$16 sps:$4 sm:$0xff]  }
 0xb6d   : > { %2750 = vmatpush1.bf16.msra.mxu0 %v7129_v12  ;;  %2791 = vmatpush1.bf16.msra.mxu1 %v7131_v6  ;;  %7971 = vst [vmem:[#allocation64_spill] sm:$0xff] %v7223_v34  ;;  %7972 = vst [vmem:[#allocation65_spill] sm:$0xff] %v7229_v35  ;;  %v7231_v36 = vld [vmem:[#allocation21 + $0x88] ss:$16 sps:$4 sm:$0xff]   ;;  %v7233_v37 = vld [vmem:[#allocation21 + $0xa4] ss:$16 sps:$4 sm:$0xff]  }
 0xb6e   : > { %2751 = vmatprep.subr.bf16.mxu0 %v7135_v8  ;;  %2792 = vmatprep.subr.bf16.mxu1 %v7139_v25  ;;  %7973 = vst [vmem:[#allocation66_spill] sm:$0xff] %v7231_v36  ;;  %7974 = vst [vmem:[#allocation67_spill] sm:$0xff] %v7233_v37  ;;  %v7235_v38 = vld [vmem:[#allocation21 + $0xac] ss:$16 sps:$4 sm:$0xff]   ;;  %v7241_v39 = vld [vmem:[#allocation21 + $0xa0] ss:$16 sps:$4 sm:$0xff]  }
 0xb6f   : > { %7975 = vst [vmem:[#allocation68_spill] sm:$0xff] %v7235_v38  ;;  %7976 = vst [vmem:[#allocation69_spill] sm:$0xff] %v7241_v39  ;;  %v7243_v40 = vld [vmem:[#allocation21 + $0xa8] ss:$16 sps:$4 sm:$0xff]   ;;  %v7245_v41 = vld [vmem:[#allocation21 + $0xc4] ss:$16 sps:$4 sm:$0xff]  }
 0xb70   : > { %7977 = vst [vmem:[#allocation70_spill] sm:$0xff] %v7243_v40  ;;  %7978 = vst [vmem:[#allocation71_spill] sm:$0xff] %v7245_v41  ;;  %v7247_v42 = vld [vmem:[#allocation21 + $0xcc] ss:$16 sps:$4 sm:$0xff]   ;;  %v7253_v43 = vld [vmem:[#allocation21 + $0xc0] ss:$16 sps:$4 sm:$0xff]  }
 0xb71   : > { %2752 = vmatpush1.bf16.msra.mxu0 %v7141_v2  ;;  %2793 = vmatpush1.bf16.msra.mxu1 %v7145_v9  ;;  %7979 = vst [vmem:[#allocation72_spill] sm:$0xff] %v7247_v42  ;;  %7980 = vst [vmem:[#allocation73_spill] sm:$0xff] %v7253_v43  ;;  %v7255_v44 = vld [vmem:[#allocation21 + $0xc8] ss:$16 sps:$4 sm:$0xff]   ;;  %v7257_v48 = vld [vmem:[#allocation21 + $0xe4] ss:$16 sps:$4 sm:$0xff]  }
 0xb72   : > { %2753 = vmatprep.subr.bf16.mxu0 %v7147_v3  ;;  %2794 = vmatprep.subr.bf16.mxu1 %v7151_v30  ;;  %7981 = vst [vmem:[#allocation74_spill] sm:$0xff] %v7255_v44  ;;  %7982 = vst [vmem:[#allocation75_spill] sm:$0xff] %v7257_v48  ;;  %v7259_v52 = vld [vmem:[#allocation21 + $0xec] ss:$16 sps:$4 sm:$0xff]   ;;  %v7267_v49 = vld [vmem:[#allocation21 + $0xe8] ss:$16 sps:$4 sm:$0xff]  }
 0xb73   : > { %7983 = vst [vmem:[#allocation76_spill] sm:$0xff] %v7259_v52  ;;  %7985 = vst [vmem:[#allocation78_spill] sm:$0xff] %v7267_v49  ;;  %s8146_s9 = sld [smem:[#allocation152_spill]] }
 0xb75   : > { %2754 = vmatpush1.bf16.msra.mxu0 %v7153_v47  ;;  %2795 = vmatpush1.bf16.msra.mxu1 %v7155_v63 }
 0xb76   : > { %2755 = vmatprep.subr.bf16.mxu0 %v7159_v24  ;;  %2796 = vmatprep.subr.bf16.mxu1 %v7163_v4 }
 0xb79   : > { %2756 = vmatpush1.bf16.msra.mxu0 %v7165_v1  ;;  %2797 = vmatpush1.bf16.msra.mxu1 %v7167_v23 }
 0xb7a   : > { %2983 = vmatprep.subr.bf16.mxu0 %v7171_v10  ;;  %3024 = vmatprep.subr.bf16.mxu1 %v7175_v11 }
 0xb7c   : > { %2774 = vmatmul.mubr.bf16.vlgmr.msra.gmra.mrb[0].mxu0 %v7790_v56  ;;  %2815 = vmatmul.mubr.bf16.vlgmr.msra.gmra.mrb[0].mxu1 %v7790_v56 }
 0xb7d   : > { %2984 = vmatpush1.bf16.msra.mxu0 %v7177_v27  ;;  %3025 = vmatpush1.bf16.msra.mxu1 %v7179_v28 }
 0xb7e   : > { %2985 = vmatprep.subr.bf16.mxu0 %v7183_v29  ;;  %3026 = vmatprep.subr.bf16.mxu1 %v7187_v13 }
 0xb7f   : > { %3015 = vmatprep.mubr.bf16.mxu0 %v7790_v56  ;;  %3056 = vmatprep.mubr.bf16.mxu1 %v7790_v56  ;;  %v7265_v56 = vld [vmem:[#allocation21 + $0xe0] ss:$16 sps:$4 sm:$0xff]  }
 0xb80   : > { %7984 = vst [vmem:[#allocation77_spill] sm:$0xff] %v7265_v56 }
 0xb81   : > { %2986 = vmatpush1.bf16.msra.mxu0 %v7191_v14  ;;  %3027 = vmatpush1.bf16.msra.mxu1 %v7193_v15 }
 0xb82   : > { %2987 = vmatprep.subr.bf16.mxu0 %v7197_v16  ;;  %3028 = vmatprep.subr.bf16.mxu1 %v7201_v26 }
 0xb85   : > { %2988 = vmatpush1.bf16.msra.mxu0 %v7205_v17  ;;  %3029 = vmatpush1.bf16.msra.mxu1 %v7207_v20 }
 0xb86   : > { %2989 = vmatprep.subr.bf16.mxu0 %v7211_v18  ;;  %3030 = vmatprep.subr.bf16.mxu1 %v7215_v19 }
 0xb89   : > { %2990 = vmatpush1.bf16.msra.mxu0 %v7217_v31  ;;  %3031 = vmatpush1.bf16.msra.mxu1 %v7219_v32  ;;  %v8052_v32 = vld [vmem:[#allocation51_spill] sm:$0xff] }
 0xb8a   : > { %2991 = vmatprep.subr.bf16.mxu0 %v7221_v33  ;;  %3032 = vmatprep.subr.bf16.mxu1 %v7223_v34 }
 0xb8d   : > { %2992 = vmatpush1.bf16.msra.mxu0 %v7229_v35  ;;  %3033 = vmatpush1.bf16.msra.mxu1 %v7231_v36  ;;  %v2529_v36 = vld [vmem:[#allocation24] sm:$0xf]  ;;  %v2530_v35 = vld [vmem:[#allocation25] sm:$0xf] }
 0xb8e   : > { %2993 = vmatprep.subr.bf16.mxu0 %v7233_v37  ;;  %3034 = vmatprep.subr.bf16.mxu1 %v7235_v38  ;;  %v2579_v38 = vld [vmem:[#allocation2] sm:$0xff]  ;;  %v2531_v34 = vadd.f32 %v2530_v35, %v2529_v36 }
 0xb91   : > { %2994 = vmatpush1.bf16.msra.mxu0 %v7241_v39  ;;  %3035 = vmatpush1.bf16.msra.mxu1 %v7243_v40  ;;  %v2580_v39 = vpack.c.bf16 %v2579_v38, %v2579_v38  ;;  %v7288_v38 = vld [vmem:[#allocation22 + $0x12c] ss:$16 sps:$4 sm:$0xff]  }
 0xb92   : > { %2995 = vmatprep.subr.bf16.mxu0 %v7245_v41  ;;  %3036 = vmatprep.subr.bf16.mxu1 %v7247_v42  ;;  %v7986_v42 = vmov 0   ;;  %v7277_v41 = vld [vmem:[#allocation22 + $0x100] ss:$16 sps:$4 sm:$0xff]   ;;  %7992 = vst [vmem:[#allocation84_spill] sm:$0xff] %v7288_v38  ;;  %v7301_v40 = vld [vmem:[#allocation22 + $0x14c] ss:$16 sps:$4 sm:$0xff]  }
 0xb93   : > { %7987 = vst [vmem:[#allocation79_spill] sm:$0xff] %v7277_v41  ;;  %7996 = vst [vmem:[#allocation88_spill] sm:$0xff] %v7301_v40 }
 0xb95   : > { %2996 = vmatpush1.bf16.msra.mxu0 %v7253_v43  ;;  %3037 = vmatpush1.bf16.msra.mxu1 %v7255_v44  ;;  %v7279_v43 = vld [vmem:[#allocation22 + $0x104] ss:$16 sps:$4 sm:$0xff]   ;;  %v7281_v44 = vld [vmem:[#allocation22 + $0x108] ss:$16 sps:$4 sm:$0xff]  }
 0xb96   : > { %2997 = vmatprep.subr.bf16.mxu0 %v7257_v48  ;;  %3038 = vmatprep.subr.bf16.mxu1 %v7259_v52  ;;  %7988 = vst [vmem:[#allocation80_spill] sm:$0xff] %v7279_v43  ;;  %7989 = vst [vmem:[#allocation81_spill] sm:$0xff] %v7281_v44  ;;  %v7283_v48 = vld [vmem:[#allocation22 + $0x10c] ss:$16 sps:$4 sm:$0xff]   ;;  %v7285_v52 = vld [vmem:[#allocation22 + $0x124] ss:$16 sps:$4 sm:$0xff]  }
 0xb97   : > { %7990 = vst [vmem:[#allocation82_spill] sm:$0xff] %v7283_v48  ;;  %7991 = vst [vmem:[#allocation83_spill] sm:$0xff] %v7285_v52 }
 0xb99   : > { %2998 = vmatpush1.bf16.msra.mxu0 %v7265_v56  ;;  %3039 = vmatpush1.bf16.msra.mxu1 %v7267_v49  ;;  %v7296_v49 = vld [vmem:[#allocation22 + $0x128] ss:$16 sps:$4 sm:$0xff]   ;;  %v7298_v56 = vld [vmem:[#allocation22 + $0x144] ss:$16 sps:$4 sm:$0xff]  }
 0xb9a   : > { %3254 = vmatprep.subr.bf16.mxu0 %v7279_v43  ;;  %3295 = vmatprep.subr.bf16.mxu1 %v7283_v48  ;;  %7994 = vst [vmem:[#allocation86_spill] sm:$0xff] %v7296_v49  ;;  %7995 = vst [vmem:[#allocation87_spill] sm:$0xff] %v7298_v56  ;;  %v7304_v43 = vld [vmem:[#allocation22 + $0x140] ss:$16 sps:$4 sm:$0xff]   ;;  %v7448_v48 = vld [vmem:[#allocation21 + $0x1cc] ss:$16 sps:$4 sm:$0xff]  }
 0xb9b   : > { %7997 = vst [vmem:[#allocation89_spill] sm:$0xff] %v7304_v43  ;;  %8044 = vst [vmem:[#allocation136_spill] sm:$0xff] %v7448_v48 }
 0xb9c   : > { %3016 = vmatmul.mubr.bf16.vlgmr.msra.gmra.mrb[4].mxu0 %v2580_v39  ;;  %3057 = vmatmul.mubr.bf16.vlgmr.msra.gmra.mrb[4].mxu1 %v2580_v39  ;;  %v7292_v39 = vld [vmem:[#allocation22 + $0x120] ss:$16 sps:$4 sm:$0xff]  }
 0xb9d   : > { %3286 = vmatprep.mubr.bf16.mxu0 %v7986_v42  ;;  %3327 = vmatprep.mubr.bf16.mxu1 %v7986_v42  ;;  %7993 = vst [vmem:[#allocation85_spill] sm:$0xff] %v7292_v39 }
 0xb9e   : > { %3255 = vmatpush1.bf16.msra.mxu0 %v7277_v41  ;;  %3296 = vmatpush1.bf16.msra.mxu1 %v7281_v44  ;;  %v7308_v41 = vld [vmem:[#allocation22 + $0x148] ss:$16 sps:$4 sm:$0xff]   ;;  %v7310_v44 = vld [vmem:[#allocation22 + $0x164] ss:$16 sps:$4 sm:$0xff]  }
 0xb9f   : > { %3256 = vmatprep.subr.bf16.mxu0 %v7285_v52  ;;  %3297 = vmatprep.subr.bf16.mxu1 %v7288_v38  ;;  %7998 = vst [vmem:[#allocation90_spill] sm:$0xff] %v7308_v41  ;;  %7999 = vst [vmem:[#allocation91_spill] sm:$0xff] %v7310_v44  ;;  %v7313_v52 = vld [vmem:[#allocation22 + $0x16c] ss:$16 sps:$4 sm:$0xff]   ;;  %v7316_v38 = vld [vmem:[#allocation22 + $0x160] ss:$16 sps:$4 sm:$0xff]  }
 0xba0   : > { %8000 = vst [vmem:[#allocation92_spill] sm:$0xff] %v7313_v52  ;;  %8001 = vst [vmem:[#allocation93_spill] sm:$0xff] %v7316_v38 }
 0xba2   : > { %3257 = vmatpush1.bf16.msra.mxu0 %v7292_v39  ;;  %3298 = vmatpush1.bf16.msra.mxu1 %v7296_v49  ;;  %v7320_v39 = vld [vmem:[#allocation22 + $0x168] ss:$16 sps:$4 sm:$0xff]   ;;  %v7445_v49 = vld [vmem:[#allocation21 + $0x1c4] ss:$16 sps:$4 sm:$0xff]  }
 0xba3   : > { %3258 = vmatprep.subr.bf16.mxu0 %v7298_v56  ;;  %3299 = vmatprep.subr.bf16.mxu1 %v7301_v40  ;;  %8002 = vst [vmem:[#allocation94_spill] sm:$0xff] %v7320_v39  ;;  %v7325_v56 = vld [vmem:[#allocation22 + $0x184] ss:$16 sps:$4 sm:$0xff]   ;;  %v7327_v40 = vld [vmem:[#allocation22 + $0x180] ss:$16 sps:$4 sm:$0xff]   ;;  %8043 = vst [vmem:[#allocation135_spill] sm:$0xff] %v7445_v49 }
 0xba4   : > { %8003 = vst [vmem:[#allocation95_spill] sm:$0xff] %v7325_v56  ;;  %8004 = vst [vmem:[#allocation96_spill] sm:$0xff] %v7327_v40 }
 0xba6   : > { %3259 = vmatpush1.bf16.msra.mxu0 %v7304_v43  ;;  %3300 = vmatpush1.bf16.msra.mxu1 %v7308_v41  ;;  %v7331_v43 = vld [vmem:[#allocation22 + $0x18c] ss:$16 sps:$4 sm:$0xff]   ;;  %v7333_v41 = vld [vmem:[#allocation22 + $0x188] ss:$16 sps:$4 sm:$0xff]  }
 0xba7   : > { %3260 = vmatprep.subr.bf16.mxu0 %v7310_v44  ;;  %3301 = vmatprep.subr.bf16.mxu1 %v7313_v52  ;;  %8005 = vst [vmem:[#allocation97_spill] sm:$0xff] %v7331_v43  ;;  %8006 = vst [vmem:[#allocation98_spill] sm:$0xff] %v7333_v41  ;;  %v7336_v44 = vld [vmem:[#allocation22 + $0x1a4] ss:$16 sps:$4 sm:$0xff]   ;;  %v7380_v52 = vld [vmem:[#allocation21 + $0x108] ss:$16 sps:$4 sm:$0xff]  }
 0xba8   : > { %8007 = vst [vmem:[#allocation99_spill] sm:$0xff] %v7336_v44  ;;  %8022 = vst [vmem:[#allocation114_spill] sm:$0xff] %v7380_v52 }
 0xbaa   : > { %3261 = vmatpush1.bf16.msra.mxu0 %v7316_v38  ;;  %3302 = vmatpush1.bf16.msra.mxu1 %v7320_v39  ;;  %v7339_v38 = vld [vmem:[#allocation22 + $0x1a0] ss:$16 sps:$4 sm:$0xff]   ;;  %v7342_v39 = vld [vmem:[#allocation22 + $0x1ac] ss:$16 sps:$4 sm:$0xff]  }
 0xbab   : > { %3262 = vmatprep.subr.bf16.mxu0 %v7325_v56  ;;  %3303 = vmatprep.subr.bf16.mxu1 %v7331_v43  ;;  %8008 = vst [vmem:[#allocation100_spill] sm:$0xff] %v7339_v38  ;;  %8009 = vst [vmem:[#allocation101_spill] sm:$0xff] %v7342_v39  ;;  %v7345_v56 = vld [vmem:[#allocation22 + $0x1a8] ss:$16 sps:$4 sm:$0xff]   ;;  %v7351_v43 = vld [vmem:[#allocation22 + $0x1c0] ss:$16 sps:$4 sm:$0xff]  }
 0xbac   : > { %8010 = vst [vmem:[#allocation102_spill] sm:$0xff] %v7345_v56  ;;  %8012 = vst [vmem:[#allocation104_spill] sm:$0xff] %v7351_v43 }
 0xbae   : > { %3263 = vmatpush1.bf16.msra.mxu0 %v7327_v40  ;;  %3304 = vmatpush1.bf16.msra.mxu1 %v7333_v41  ;;  %v7348_v40 = vld [vmem:[#allocation22 + $0x1c4] ss:$16 sps:$4 sm:$0xff]   ;;  %v7354_v41 = vld [vmem:[#allocation22 + $0x1cc] ss:$16 sps:$4 sm:$0xff]  }
 0xbaf   : > { %3264 = vmatprep.subr.bf16.mxu0 %v7336_v44  ;;  %3305 = vmatprep.subr.bf16.mxu1 %v7342_v39  ;;  %8011 = vst [vmem:[#allocation103_spill] sm:$0xff] %v7348_v40  ;;  %8013 = vst [vmem:[#allocation105_spill] sm:$0xff] %v7354_v41  ;;  %v7357_v44 = vld [vmem:[#allocation22 + $0x1c8] ss:$16 sps:$4 sm:$0xff]   ;;  %v7363_v39 = vld [vmem:[#allocation22 + $0x1e0] ss:$16 sps:$4 sm:$0xff]  }
 0xbb0   : > { %8014 = vst [vmem:[#allocation106_spill] sm:$0xff] %v7357_v44  ;;  %8016 = vst [vmem:[#allocation108_spill] sm:$0xff] %v7363_v39 }
 0xbb2   : > { %3265 = vmatpush1.bf16.msra.mxu0 %v7339_v38  ;;  %3306 = vmatpush1.bf16.msra.mxu1 %v7345_v56  ;;  %v7360_v38 = vld [vmem:[#allocation22 + $0x1e4] ss:$16 sps:$4 sm:$0xff]   ;;  %v7366_v56 = vld [vmem:[#allocation22 + $0x1ec] ss:$16 sps:$4 sm:$0xff]  }
 0xbb3   : > { %3266 = vmatprep.subr.bf16.mxu0 %v7348_v40  ;;  %3307 = vmatprep.subr.bf16.mxu1 %v7354_v41  ;;  %8015 = vst [vmem:[#allocation107_spill] sm:$0xff] %v7360_v38  ;;  %8017 = vst [vmem:[#allocation109_spill] sm:$0xff] %v7366_v56  ;;  %v7369_v40 = vld [vmem:[#allocation22 + $0x1e8] ss:$16 sps:$4 sm:$0xff]   ;;  %v7376_v41 = vld [vmem:[#allocation21 + $0x10c] ss:$16 sps:$4 sm:$0xff]  }
 0xbb4   : > { %8018 = vst [vmem:[#allocation110_spill] sm:$0xff] %v7369_v40  ;;  %8020 = vst [vmem:[#allocation112_spill] sm:$0xff] %v7376_v41 }
 0xbb6   : > { %3267 = vmatpush1.bf16.msra.mxu0 %v7351_v43  ;;  %3308 = vmatpush1.bf16.msra.mxu1 %v7357_v44  ;;  %v7374_v43 = vld [vmem:[#allocation21 + $0x104] ss:$16 sps:$4 sm:$0xff]   ;;  %v7378_v44 = vld [vmem:[#allocation21 + $0x100] ss:$16 sps:$4 sm:$0xff]  }
 0xbb7   : > { %3268 = vmatprep.subr.bf16.mxu0 %v7360_v38  ;;  %3309 = vmatprep.subr.bf16.mxu1 %v7366_v56  ;;  %8019 = vst [vmem:[#allocation111_spill] sm:$0xff] %v7374_v43  ;;  %8021 = vst [vmem:[#allocation113_spill] sm:$0xff] %v7378_v44  ;;  %v7393_v56 = vld [vmem:[#allocation21 + $0x120] ss:$16 sps:$4 sm:$0xff]   ;;  %v7395_v38 = vld [vmem:[#allocation21 + $0x128] ss:$16 sps:$4 sm:$0xff]  }
 0xbb8   : > { %8025 = vst [vmem:[#allocation117_spill] sm:$0xff] %v7393_v56  ;;  %8026 = vst [vmem:[#allocation118_spill] sm:$0xff] %v7395_v38 }
 0xbba   : > { %3269 = vmatpush1.bf16.msra.mxu0 %v7363_v39  ;;  %3310 = vmatpush1.bf16.msra.mxu1 %v7369_v40  ;;  %v7388_v40 = vld [vmem:[#allocation21 + $0x124] ss:$16 sps:$4 sm:$0xff]   ;;  %v7390_v39 = vld [vmem:[#allocation21 + $0x12c] ss:$16 sps:$4 sm:$0xff]  }
 0xbbb   : > { %3496 = vmatprep.subr.bf16.mxu0 %v7374_v43  ;;  %3537 = vmatprep.subr.bf16.mxu1 %v7376_v41  ;;  %8023 = vst [vmem:[#allocation115_spill] sm:$0xff] %v7388_v40  ;;  %8024 = vst [vmem:[#allocation116_spill] sm:$0xff] %v7390_v39  ;;  %v7405_v41 = vld [vmem:[#allocation21 + $0x140] ss:$16 sps:$4 sm:$0xff]   ;;  %v7407_v43 = vld [vmem:[#allocation21 + $0x148] ss:$16 sps:$4 sm:$0xff]  }
 0xbbc   : > { %8029 = vst [vmem:[#allocation121_spill] sm:$0xff] %v7405_v41  ;;  %8030 = vst [vmem:[#allocation122_spill] sm:$0xff] %v7407_v43 }
 0xbbd   : > { %3287 = vmatmul.mubr.bf16.vlgmr.msra.gmra.mrb[8].mxu0 %v7986_v42  ;;  %3328 = vmatmul.mubr.bf16.vlgmr.msra.gmra.mrb[8].mxu1 %v7986_v42 }
 0xbbe   : > { %3528 = vmatprep.mubr.bf16.mxu0 %v7986_v42  ;;  %3497 = vmatpush1.bf16.msra.mxu0 %v7378_v44  ;;  %v7401_v44 = vld [vmem:[#allocation21 + $0x144] ss:$16 sps:$4 sm:$0xff]  }
 0xbbf   : > { %3538 = vmatpush1.bf16.msra.mxu1 %v7380_v52  ;;  %3569 = vmatprep.mubr.bf16.mxu1 %v7986_v42  ;;  %8027 = vst [vmem:[#allocation119_spill] sm:$0xff] %v7401_v44  ;;  %v7403_v52 = vld [vmem:[#allocation21 + $0x14c] ss:$16 sps:$4 sm:$0xff]  }
 0xbc0   : > { %3498 = vmatprep.subr.bf16.mxu0 %v7388_v40  ;;  %3539 = vmatprep.subr.bf16.mxu1 %v7390_v39  ;;  %8028 = vst [vmem:[#allocation120_spill] sm:$0xff] %v7403_v52  ;;  %v7413_v39 = vld [vmem:[#allocation21 + $0x164] ss:$16 sps:$4 sm:$0xff]   ;;  %v7419_v40 = vld [vmem:[#allocation21 + $0x168] ss:$16 sps:$4 sm:$0xff]  }
 0xbc1   : > { %8031 = vst [vmem:[#allocation123_spill] sm:$0xff] %v7413_v39  ;;  %8034 = vst [vmem:[#allocation126_spill] sm:$0xff] %v7419_v40 }
 0xbc2   : > { %3499 = vmatpush1.bf16.msra.mxu0 %v7393_v56  ;;  %v7415_v56 = vld [vmem:[#allocation21 + $0x16c] ss:$16 sps:$4 sm:$0xff]  }
 0xbc3   : > { %3540 = vmatpush1.bf16.msra.mxu1 %v7395_v38  ;;  %3500 = vmatprep.subr.bf16.mxu0 %v7401_v44  ;;  %8032 = vst [vmem:[#allocation124_spill] sm:$0xff] %v7415_v56  ;;  %v7417_v38 = vld [vmem:[#allocation21 + $0x160] ss:$16 sps:$4 sm:$0xff]   ;;  %v7431_v44 = vld [vmem:[#allocation21 + $0x188] ss:$16 sps:$4 sm:$0xff]  }
 0xbc4   : > { %3541 = vmatprep.subr.bf16.mxu1 %v7403_v52  ;;  %8033 = vst [vmem:[#allocation125_spill] sm:$0xff] %v7417_v38  ;;  %v7425_v52 = vld [vmem:[#allocation21 + $0x184] ss:$16 sps:$4 sm:$0xff]   ;;  %8038 = vst [vmem:[#allocation130_spill] sm:$0xff] %v7431_v44 }
 0xbc5   : > { %8035 = vst [vmem:[#allocation127_spill] sm:$0xff] %v7425_v52 }
 0xbc6   : > { %3501 = vmatpush1.bf16.msra.mxu0 %v7405_v41  ;;  %v7427_v41 = vld [vmem:[#allocation21 + $0x18c] ss:$16 sps:$4 sm:$0xff]  }
 0xbc7   : > { %3542 = vmatpush1.bf16.msra.mxu1 %v7407_v43  ;;  %3502 = vmatprep.subr.bf16.mxu0 %v7413_v39  ;;  %8036 = vst [vmem:[#allocation128_spill] sm:$0xff] %v7427_v41  ;;  %v7429_v43 = vld [vmem:[#allocation21 + $0x180] ss:$16 sps:$4 sm:$0xff]  }
 0xbc8   : > { %3543 = vmatprep.subr.bf16.mxu1 %v7415_v56  ;;  %8037 = vst [vmem:[#allocation129_spill] sm:$0xff] %v7429_v43  ;;  %v7436_v39 = vld [vmem:[#allocation21 + $0x1a0] ss:$16 sps:$4 sm:$0xff]   ;;  %v7438_v56 = vld [vmem:[#allocation21 + $0x1a4] ss:$16 sps:$4 sm:$0xff]  }
 0xbc9   : > { %8039 = vst [vmem:[#allocation131_spill] sm:$0xff] %v7436_v39  ;;  %8040 = vst [vmem:[#allocation132_spill] sm:$0xff] %v7438_v56 }
 0xbca   : > { %3503 = vmatpush1.bf16.msra.mxu0 %v7417_v38  ;;  %v7443_v38 = vld [vmem:[#allocation21 + $0x1ac] ss:$16 sps:$4 sm:$0xff]  }
 0xbcb   : > { %3544 = vmatpush1.bf16.msra.mxu1 %v7419_v40  ;;  %3504 = vmatprep.subr.bf16.mxu0 %v7425_v52  ;;  %v7441_v40 = vld [vmem:[#allocation21 + $0x1a8] ss:$16 sps:$4 sm:$0xff]   ;;  %8042 = vst [vmem:[#allocation134_spill] sm:$0xff] %v7443_v38  ;;  %v7461_v52 = vld [vmem:[#allocation21 + $0x1ec] ss:$16 sps:$4 sm:$0xff]  }
 0xbcc   : > { %3545 = vmatprep.subr.bf16.mxu1 %v7427_v41  ;;  %8041 = vst [vmem:[#allocation133_spill] sm:$0xff] %v7441_v40  ;;  %v7458_v41 = vld [vmem:[#allocation21 + $0x1e4] ss:$16 sps:$4 sm:$0xff]   ;;  %8048 = vst [vmem:[#allocation140_spill] sm:$0xff] %v7461_v52 }
 0xbcd   : > { %8047 = vst [vmem:[#allocation139_spill] sm:$0xff] %v7458_v41 }
 0xbce   : > { %3505 = vmatpush1.bf16.msra.mxu0 %v7429_v43  ;;  %v7452_v43 = vld [vmem:[#allocation21 + $0x1c0] ss:$16 sps:$4 sm:$0xff]  }
 0xbcf   : > { %3546 = vmatpush1.bf16.msra.mxu1 %v7431_v44  ;;  %3506 = vmatprep.subr.bf16.mxu0 %v7438_v56  ;;  %8045 = vst [vmem:[#allocation137_spill] sm:$0xff] %v7452_v43  ;;  %v7456_v44 = vld [vmem:[#allocation21 + $0x1c8] ss:$16 sps:$4 sm:$0xff]   ;;  %v7464_v56 = vld [vmem:[#allocation21 + $0x1e0] ss:$16 sps:$4 sm:$0xff]  }
 0xbd0   : > { %3547 = vmatprep.subr.bf16.mxu1 %v7443_v38  ;;  %8046 = vst [vmem:[#allocation138_spill] sm:$0xff] %v7456_v44  ;;  %8049 = vst [vmem:[#allocation141_spill] sm:$0xff] %v7464_v56 }
 0xbd2   : > { %3507 = vmatpush1.bf16.msra.mxu0 %v7436_v39  ;;  %v7468_v39 = vld [vmem:[#allocation21 + $0x1e8] ss:$16 sps:$4 sm:$0xff]  }
 0xbd3   : > { %3548 = vmatpush1.bf16.msra.mxu1 %v7441_v40  ;;  %3508 = vmatprep.subr.bf16.mxu0 %v7445_v49  ;;  %8050 = vst [vmem:[#allocation142_spill] sm:$0xff] %v7468_v39 }
 0xbd4   : > { %3549 = vmatprep.subr.bf16.mxu1 %v7448_v48 }
 0xbd6   : > { %3509 = vmatpush1.bf16.msra.mxu0 %v7452_v43 }
 0xbd7   : > { %3550 = vmatpush1.bf16.msra.mxu1 %v7456_v44  ;;  %3510 = vmatprep.subr.bf16.mxu0 %v7458_v41 }
 0xbd8   : > { %3551 = vmatprep.subr.bf16.mxu1 %v7461_v52  ;;  %v8051_v52 = vld [vmem:[#allocation50_spill] sm:$0xff] }
 0xbd9   : > { %v7476_v33 = vrot.slane %v2531_v34, %v8051_v52 }
 0xbda   : > { %3511 = vmatpush1.bf16.msra.mxu0 %v7464_v56 }
 0xbdb   : > { %3552 = vmatpush1.bf16.msra.mxu1 %v7468_v39  ;;  %3609 = vmatprep.subr.bf16.mxu0 %v7077_v53  ;;  %v7479_v53 = vrot.slane %v2531_v34, %v8052_v32 }
 0xbdc   : > { %3650 = vmatprep.subr.bf16.mxu1 %v7079_v7 }
 0xc4f   : > { %v2775_v48 = vpop.f32.mrb[0].mxu0  ;;  %v2816_v43 = vpop.f32.mrb[0].mxu1 }
 0xc50   : > { %v2777_v49 = vpop.f32.mrb[1].mxu0  ;;  %v2818_v40 = vpop.f32.mrb[1].mxu1 }
 0xc51   : > { %v2779_v38 = vpop.f32.mrb[2].mxu0  ;;  %v2820_v44 = vpop.f32.mrb[2].mxu1 }
 0xc52   : > { %v2780_v37 = vpop.f32.mrb[3].mxu0  ;;  %v2821_v41 = vpop.f32.mrb[3].mxu1  ;;  %v8053_v38 = vld [vmem:[#allocation49_spill] sm:$0xff] }
 0xc53   : > { %v2547_v44 = vsub.s32 3, %v8053_v38 }
 0xc6f   : > { %v3017_v56 = vpop.f32.mrb[4].mxu0  ;;  %v3058_v39 = vpop.f32.mrb[4].mxu1 }
 0xc70   : > { %v3018_v7 = vadd.f32 %v3017_v56, %v2775_v48  ;;  %v3059_v31 = vadd.f32 %v3058_v39, %v2816_v43  ;;  %v3019_v19 = vpop.f32.mrb[5].mxu0  ;;  %v3060_v18 = vpop.f32.mrb[5].mxu1  ;;  %v7486_v56 = vrot.slane %v2531_v34, %v2547_v44 }
 0xc71   : > { %v3020_v20 = vadd.f32 %v3019_v19, %v2777_v49  ;;  %v3061_v37 = vadd.f32 %v3060_v18, %v2818_v40  ;;  %v3021_v41 = vpop.f32.mrb[6].mxu0  ;;  %v3062_v17 = vpop.f32.mrb[6].mxu1  ;;  %v8054_v19 = vld [vmem:[#allocation53_spill] sm:$0xff] }
 0xc72   : > { %v3065_v35 = vadd.f32 %v3018_v7, %v7476_v33  ;;  %v3022_v36 = vpop.f32.mrb[7].mxu0  ;;  %v3063_v52 = vpop.f32.mrb[7].mxu1  ;;  %v7490_v18 = vrot.slane %v2531_v34, %v8054_v19 }
 0xc73   : > { %v3066_v26 = vadd.f32 %v3020_v20, %v7479_v53  ;;  %v3068_v49 = vadd.f32 %v3061_v37, %v7486_v56 }
 0xc74   : > { %v4618_v16 = vmul.f32 -1.442695, %v3065_v35  ;;  %v3067_v40 = vadd.f32 %v3059_v31, %v7490_v18 }
 0xc75   : > { %v4619_v15 = vmul.f32 -1.442695, %v3066_v26  ;;  %v4620_v17 = vmul.f32 -1.442695, %v3068_v49 }
 0xc76   : > { %5612 = vpow2.f32 %v4618_v16 }
 0xc77   : > { %5614 = vpow2.f32 %v4619_v15 }
 0xc78   : > { %5616 = vpow2.f32 %v4620_v17  ;;  %v8082_v17 = vld [vmem:[#allocation79_spill] sm:$0xff] }
 0xc79   : > { %5618 = vtanh.f32 %v3067_v40  ;;  %v8083_v40 = vld [vmem:[#allocation81_spill] sm:$0xff] }
 0xc80   : > { %v5613_v43 = vpop.eup %5612 }
 0xc81   : > { %v5615_v48 = vpop.eup %5614  ;;  %v3072_v52 = vadd.f32 1.0, %v5613_v43  ;;  %v8084_v43 = vld [vmem:[#allocation83_spill] sm:$0xff] }
 0xc82   : > { %v3078_v26 = vadd.f32 1.0, %v5615_v48  ;;  %v5617_v20 = vpop.eup %5616  ;;  %v8085_v48 = vld [vmem:[#allocation84_spill] sm:$0xff] }
 0xc83   : > { %5620 = vrcp.f32 %v3072_v52  ;;  %v5619_v39 = vpop.eup %5618  ;;  %v3085_v37 = vadd.f32 1.0, %v5617_v20  ;;  %v8086_v52 = vld [vmem:[#allocation85_spill] sm:$0xff]  ;;  %v8088_v20 = vld [vmem:[#allocation87_spill] sm:$0xff] }
 0xc84   : > { %5622 = vrcp.f32 %v3078_v26  ;;  %v8087_v26 = vld [vmem:[#allocation86_spill] sm:$0xff] }
 0xc85   : > { %5624 = vrcp.f32 %v3085_v37  ;;  %v8093_v37 = vld [vmem:[#allocation92_spill] sm:$0xff] }
 0xc8d   : > { %v5621_v16 = vpop.eup %5620 }
 0xc8e   : > { %v5623_v15 = vpop.eup %5622  ;;  %v3089_v7 = vmul.f32 %v5621_v16, %v5619_v39  ;;  %v8089_v39 = vld [vmem:[#allocation88_spill] sm:$0xff]  ;;  %v8090_v16 = vld [vmem:[#allocation89_spill] sm:$0xff] }
 0xc8f   : > { %v3088_v41 = vmul.f32 0.0, %v5623_v15  ;;  %v5625_v31 = vpop.eup %5624  ;;  %v8091_v15 = vld [vmem:[#allocation90_spill] sm:$0xff] }
 0xc91   : > { %v7493_v34 = vadd.f32 %v3089_v7, %v3088_v41  ;;  %v8092_v7 = vld [vmem:[#allocation91_spill] sm:$0xff]  ;;  %v8094_v41 = vld [vmem:[#allocation93_spill] sm:$0xff] }
 0xc93   : > { %5626 = vtanh.f32 %v7493_v34 }
 0xc9d   : > { %v5627_v35 = vpop.eup %5626 }
 0xc9e   : > { %v3092_v36 = vmul.f32 %v5627_v35, %v5625_v31  ;;  %v8095_v31 = vld [vmem:[#allocation94_spill] sm:$0xff]  ;;  %v8096_v35 = vld [vmem:[#allocation95_spill] sm:$0xff] }
 0xca0   : > { %v3093_v49 = vpack.c.bf16 %v3092_v36, %v3092_v36  ;;  %v8097_v36 = vld [vmem:[#allocation97_spill] sm:$0xff] }
 0xca2   : > { %3529 = vmatmul.mubr.bf16.vlgmr.msra.gmra.mrb[12].mxu0 %v3093_v49  ;;  %3570 = vmatmul.mubr.bf16.vlgmr.msra.gmra.mrb[12].mxu1 %v3093_v49 }
 0xca3   : > { %3610 = vmatpush1.bf16.msra.mxu0 %v7084_v54  ;;  %3651 = vmatpush1.bf16.msra.mxu1 %v7086_v55  ;;  %v8055_v54 = vld [vmem:[#allocation54_spill] sm:$0xff]  ;;  %v8056_v55 = vld [vmem:[#allocation55_spill] sm:$0xff] }
 0xca4   : > { %3611 = vmatprep.subr.bf16.mxu0 %v7089_v0  ;;  %3652 = vmatprep.subr.bf16.mxu1 %v7093_v57  ;;  %v8057_v0 = vld [vmem:[#allocation56_spill] sm:$0xff]  ;;  %v8058_v57 = vld [vmem:[#allocation57_spill] sm:$0xff] }
 0xca5   : > { %3641 = vmatprep.mubr.bf16.mxu0 %v7986_v42  ;;  %3682 = vmatprep.mubr.bf16.mxu1 %v7986_v42 }
 0xca7   : > { %3612 = vmatpush1.bf16.msra.mxu0 %v7095_v58  ;;  %3653 = vmatpush1.bf16.msra.mxu1 %v7098_v59  ;;  %v8059_v58 = vld [vmem:[#allocation58_spill] sm:$0xff]  ;;  %v8060_v59 = vld [vmem:[#allocation59_spill] sm:$0xff] }
 0xca8   : > { %3613 = vmatprep.subr.bf16.mxu0 %v7101_v60  ;;  %3654 = vmatprep.subr.bf16.mxu1 %v7103_v46  ;;  %v8061_v60 = vld [vmem:[#allocation60_spill] sm:$0xff]  ;;  %v8062_v46 = vld [vmem:[#allocation61_spill] sm:$0xff] }
 0xcab   : > { %3614 = vmatpush1.bf16.msra.mxu0 %v7105_v61  ;;  %3655 = vmatpush1.bf16.msra.mxu1 %v7107_v62  ;;  %v8063_v61 = vld [vmem:[#allocation62_spill] sm:$0xff]  ;;  %v8064_v62 = vld [vmem:[#allocation63_spill] sm:$0xff] }
 0xcac   : > { %3615 = vmatprep.subr.bf16.mxu0 %v7111_v22  ;;  %3656 = vmatprep.subr.bf16.mxu1 %v7115_v51  ;;  %v8065_v22 = vld [vmem:[#allocation64_spill] sm:$0xff]  ;;  %v8066_v51 = vld [vmem:[#allocation65_spill] sm:$0xff] }
 0xcaf   : > { %3616 = vmatpush1.bf16.msra.mxu0 %v7117_v5  ;;  %3657 = vmatpush1.bf16.msra.mxu1 %v7121_v45  ;;  %v8067_v5 = vld [vmem:[#allocation66_spill] sm:$0xff]  ;;  %v7550_v45 = vpop.f32.mrb[8].mxu0 }
 0xcb0   : > { %3617 = vmatprep.subr.bf16.mxu0 %v7123_v50  ;;  %3658 = vmatprep.subr.bf16.mxu1 %v7127_v21  ;;  %v8068_v50 = vld [vmem:[#allocation67_spill] sm:$0xff]  ;;  %v8069_v21 = vld [vmem:[#allocation68_spill] sm:$0xff] }
 0xcb3   : > { %3618 = vmatpush1.bf16.msra.mxu0 %v7129_v12  ;;  %3659 = vmatpush1.bf16.msra.mxu1 %v7131_v6  ;;  %v7554_v12 = vpop.f32.mrb[9].mxu0 }
 0xcb4   : > { %3619 = vmatprep.subr.bf16.mxu0 %v7135_v8  ;;  %3660 = vmatprep.subr.bf16.mxu1 %v7139_v25  ;;  %v3292_v6 = vpop.f32.mrb[10].mxu0  ;;  %v3329_v25 = vpop.f32.mrb[8].mxu1 }
 0xcb5   : > { %v3293_v8 = vpop.f32.mrb[11].mxu0  ;;  %v2554_v6 = vld [vmem:[#allocation24 + $0x4] sm:$0xf] }
 0xcb6   : > { %v2556_v8 = vld [vmem:[#allocation25 + $0x4] sm:$0xf] }
 0xcb7   : > { %3620 = vmatpush1.bf16.msra.mxu0 %v7141_v2  ;;  %3661 = vmatpush1.bf16.msra.mxu1 %v7145_v9  ;;  %v8070_v2 = vld [vmem:[#allocation69_spill] sm:$0xff]  ;;  %v8071_v9 = vld [vmem:[#allocation70_spill] sm:$0xff] }
 0xcb8   : > { %3621 = vmatprep.subr.bf16.mxu0 %v7147_v3  ;;  %3662 = vmatprep.subr.bf16.mxu1 %v7151_v30  ;;  %v7558_v3 = vpop.f32.mrb[9].mxu1  ;;  %v8072_v30 = vld [vmem:[#allocation71_spill] sm:$0xff] }
 0xcbb   : > { %3622 = vmatpush1.bf16.msra.mxu0 %v7153_v47  ;;  %3663 = vmatpush1.bf16.msra.mxu1 %v7155_v63  ;;  %v8073_v47 = vld [vmem:[#allocation72_spill] sm:$0xff]  ;;  %v3333_v63 = vpop.f32.mrb[10].mxu1 }
 0xcbc   : > { %3623 = vmatprep.subr.bf16.mxu0 %v7159_v24  ;;  %3664 = vmatprep.subr.bf16.mxu1 %v7163_v4  ;;  %v3334_v24 = vpop.f32.mrb[11].mxu1  ;;  %v8074_v4 = vld [vmem:[#allocation73_spill] sm:$0xff] }
 0xcbf   : > { %3624 = vmatpush1.bf16.msra.mxu0 %v7165_v1  ;;  %3665 = vmatpush1.bf16.msra.mxu1 %v7167_v23  ;;  %v8075_v1 = vld [vmem:[#allocation74_spill] sm:$0xff]  ;;  %v3607_v23 = vld [vmem:[#allocation2 + $0x8] sm:$0xff] }
 0xcc0   : > { %3691 = vmatprep.subr.bf16.mxu0 %v7171_v10  ;;  %3732 = vmatprep.subr.bf16.mxu1 %v7175_v11  ;;  %v8076_v10 = vld [vmem:[#allocation75_spill] sm:$0xff]  ;;  %v8077_v11 = vld [vmem:[#allocation76_spill] sm:$0xff] }
 0xcc2   : > { %3642 = vmatmul.mubr.bf16.vlgmr.msra.gmra.mrb[16].mxu0 %v3093_v49  ;;  %3683 = vmatmul.mubr.bf16.vlgmr.msra.gmra.mrb[16].mxu1 %v3093_v49  ;;  %v8098_v49 = vld [vmem:[#allocation96_spill] sm:$0xff] }
 0xcc3   : > { %3692 = vmatpush1.bf16.msra.mxu0 %v7177_v27  ;;  %3733 = vmatpush1.bf16.msra.mxu1 %v7179_v28  ;;  %v3608_v27 = vpack.c.bf16 %v3607_v23, %v3607_v23  ;;  %v8078_v28 = vld [vmem:[#allocation77_spill] sm:$0xff] }
 0xcc4   : > { %3693 = vmatprep.subr.bf16.mxu0 %v7183_v29  ;;  %3734 = vmatprep.subr.bf16.mxu1 %v7187_v13  ;;  %v8079_v29 = vld [vmem:[#allocation78_spill] sm:$0xff]  ;;  %v8080_v13 = vld [vmem:[#allocation80_spill] sm:$0xff] }
 0xcc5   : > { %3723 = vmatprep.mubr.bf16.mxu0 %v7986_v42  ;;  %3764 = vmatprep.mubr.bf16.mxu1 %v7986_v42 }
 0xcc7   : > { %3694 = vmatpush1.bf16.msra.mxu0 %v7191_v14  ;;  %3735 = vmatpush1.bf16.msra.mxu1 %v8055_v54  ;;  %v8081_v14 = vld [vmem:[#allocation82_spill] sm:$0xff] }
 0xcc8   : > { %3695 = vmatprep.subr.bf16.mxu0 %v8056_v55  ;;  %3736 = vmatprep.subr.bf16.mxu1 %v8057_v0  ;;  %v8099_v54 = vld [vmem:[#allocation98_spill] sm:$0xff]  ;;  %v8100_v55 = vld [vmem:[#allocation99_spill] sm:$0xff]  ;;  %v8101_v0 = vld [vmem:[#allocation101_spill] sm:$0xff] }
 0xccb   : > { %3696 = vmatpush1.bf16.msra.mxu0 %v8058_v57  ;;  %3737 = vmatpush1.bf16.msra.mxu1 %v8059_v58  ;;  %v8102_v57 = vld [vmem:[#allocation100_spill] sm:$0xff]  ;;  %v8103_v58 = vld [vmem:[#allocation102_spill] sm:$0xff] }
 0xccc   : > { %3697 = vmatprep.subr.bf16.mxu0 %v8060_v59  ;;  %3738 = vmatprep.subr.bf16.mxu1 %v8061_v60  ;;  %v8104_v59 = vld [vmem:[#allocation103_spill] sm:$0xff]  ;;  %v8105_v60 = vld [vmem:[#allocation105_spill] sm:$0xff] }
 0xccf   : > { %3698 = vmatpush1.bf16.msra.mxu0 %v8062_v46  ;;  %3739 = vmatpush1.bf16.msra.mxu1 %v8063_v61  ;;  %v8106_v46 = vld [vmem:[#allocation104_spill] sm:$0xff]  ;;  %v8107_v61 = vld [vmem:[#allocation106_spill] sm:$0xff] }
 0xcd0   : > { %3699 = vmatprep.subr.bf16.mxu0 %v8064_v62  ;;  %3740 = vmatprep.subr.bf16.mxu1 %v8065_v22  ;;  %v8108_v62 = vld [vmem:[#allocation107_spill] sm:$0xff]  ;;  %v8109_v22 = vld [vmem:[#allocation109_spill] sm:$0xff] }
 0xcd3   : > { %3700 = vmatpush1.bf16.msra.mxu0 %v8066_v51  ;;  %3741 = vmatpush1.bf16.msra.mxu1 %v8067_v5  ;;  %v8110_v51 = vld [vmem:[#allocation108_spill] sm:$0xff]  ;;  %v8111_v5 = vld [vmem:[#allocation110_spill] sm:$0xff] }
 0xcd4   : > { %3701 = vmatprep.subr.bf16.mxu0 %v8068_v50  ;;  %3742 = vmatprep.subr.bf16.mxu1 %v8069_v21  ;;  %v8112_v50 = vld [vmem:[#allocation111_spill] sm:$0xff]  ;;  %v8113_v21 = vld [vmem:[#allocation112_spill] sm:$0xff] }
 0xcd7   : > { %3702 = vmatpush1.bf16.msra.mxu0 %v8070_v2  ;;  %3743 = vmatpush1.bf16.msra.mxu1 %v8071_v9  ;;  %v2557_v2 = vadd.f32 %v2556_v8, %v2554_v6  ;;  %v8114_v9 = vld [vmem:[#allocation50_spill] sm:$0xff]  ;;  %v8122_v6 = vld [vmem:[#allocation120_spill] sm:$0xff]  ;;  %v8123_v8 = vld [vmem:[#allocation121_spill] sm:$0xff] }
 0xcd8   : > { %3703 = vmatprep.subr.bf16.mxu0 %v8072_v30  ;;  %3744 = vmatprep.subr.bf16.mxu1 %v8073_v47 }
 0xcd9   : > { %v7605_v30 = vrot.slane %v2557_v2, %v8114_v9  ;;  %v7608_v24 = vrot.slane %v2557_v2, %v8052_v32  ;;  %v8125_v9 = vld [vmem:[#allocation123_spill] sm:$0xff] }
 0xcdb   : > { %3704 = vmatpush1.bf16.msra.mxu0 %v8074_v4  ;;  %3745 = vmatpush1.bf16.msra.mxu1 %v8075_v1 }
 0xcdc   : > { %3705 = vmatprep.subr.bf16.mxu0 %v8076_v10  ;;  %3746 = vmatprep.subr.bf16.mxu1 %v8077_v11 }
 0xcdf   : > { %3706 = vmatpush1.bf16.msra.mxu0 %v8078_v28  ;;  %3747 = vmatpush1.bf16.msra.mxu1 %v8079_v29 }
 0xce0   : > { %3803 = vmatprep.subr.bf16.mxu0 %v8080_v13  ;;  %3844 = vmatprep.subr.bf16.mxu1 %v8081_v14 }
 0xce2   : > { %3724 = vmatmul.mubr.bf16.vlgmr.msra.gmra.mrb[20].mxu0 %v3608_v27  ;;  %3765 = vmatmul.mubr.bf16.vlgmr.msra.gmra.mrb[20].mxu1 %v3608_v27 }
 0xce3   : > { %3804 = vmatpush1.bf16.msra.mxu0 %v8082_v17  ;;  %3845 = vmatpush1.bf16.msra.mxu1 %v8083_v40 }
 0xce4   : > { %3805 = vmatprep.subr.bf16.mxu0 %v8084_v43  ;;  %3846 = vmatprep.subr.bf16.mxu1 %v8085_v48 }
 0xce5   : > { %3835 = vmatprep.mubr.bf16.mxu0 %v7986_v42  ;;  %3876 = vmatprep.mubr.bf16.mxu1 %v7986_v42 }
 0xce7   : > { %3806 = vmatpush1.bf16.msra.mxu0 %v8086_v52  ;;  %3847 = vmatpush1.bf16.msra.mxu1 %v8087_v26 }
 0xce8   : > { %3807 = vmatprep.subr.bf16.mxu0 %v8088_v20  ;;  %3848 = vmatprep.subr.bf16.mxu1 %v8089_v39 }
 0xceb   : > { %3808 = vmatpush1.bf16.msra.mxu0 %v8090_v16  ;;  %3849 = vmatpush1.bf16.msra.mxu1 %v8091_v15 }
 0xcec   : > { %3809 = vmatprep.subr.bf16.mxu0 %v8092_v7  ;;  %3850 = vmatprep.subr.bf16.mxu1 %v8093_v37 }
 0xcef   : > { %3810 = vmatpush1.bf16.msra.mxu0 %v8094_v41  ;;  %3851 = vmatpush1.bf16.msra.mxu1 %v8095_v31 }
 0xcf0   : > { %3811 = vmatprep.subr.bf16.mxu0 %v8096_v35  ;;  %3852 = vmatprep.subr.bf16.mxu1 %v8097_v36 }
 0xcf3   : > { %3812 = vmatpush1.bf16.msra.mxu0 %v8098_v49  ;;  %3853 = vmatpush1.bf16.msra.mxu1 %v8099_v54 }
 0xcf4   : > { %3813 = vmatprep.subr.bf16.mxu0 %v8100_v55  ;;  %3854 = vmatprep.subr.bf16.mxu1 %v8101_v0 }
 0xcf7   : > { %3814 = vmatpush1.bf16.msra.mxu0 %v8102_v57  ;;  %3855 = vmatpush1.bf16.msra.mxu1 %v8103_v58 }
 0xcf8   : > { %3815 = vmatprep.subr.bf16.mxu0 %v8104_v59  ;;  %3856 = vmatprep.subr.bf16.mxu1 %v8105_v60 }
 0xcfb   : > { %3816 = vmatpush1.bf16.msra.mxu0 %v8106_v46  ;;  %3857 = vmatpush1.bf16.msra.mxu1 %v8107_v61  ;;  %v8115_v61 = vld [vmem:[#allocation113_spill] sm:$0xff] }
 0xcfc   : > { %3817 = vmatprep.subr.bf16.mxu0 %v8108_v62  ;;  %3858 = vmatprep.subr.bf16.mxu1 %v8109_v22  ;;  %v8116_v62 = vld [vmem:[#allocation114_spill] sm:$0xff]  ;;  %v8117_v22 = vld [vmem:[#allocation115_spill] sm:$0xff] }
 0xcff   : > { %3818 = vmatpush1.bf16.msra.mxu0 %v8110_v51  ;;  %3859 = vmatpush1.bf16.msra.mxu1 %v8111_v5  ;;  %v8118_v51 = vld [vmem:[#allocation116_spill] sm:$0xff]  ;;  %v8119_v5 = vld [vmem:[#allocation117_spill] sm:$0xff] }
 0xd00   : > { %3885 = vmatprep.subr.bf16.mxu0 %v8112_v50  ;;  %3926 = vmatprep.subr.bf16.mxu1 %v8113_v21  ;;  %v8120_v50 = vld [vmem:[#allocation118_spill] sm:$0xff]  ;;  %v8121_v21 = vld [vmem:[#allocation119_spill] sm:$0xff] }
 0xd75   : > { %v3530_v47 = vpop.f32.mrb[12].mxu0  ;;  %v3571_v63 = vpop.f32.mrb[12].mxu1 }
 0xd76   : > { %v3531_v4 = vadd.f32 %v3530_v47, %v7550_v45  ;;  %v3572_v1 = vadd.f32 %v3571_v63, %v3329_v25  ;;  %v3532_v23 = vpop.f32.mrb[13].mxu0  ;;  %v3573_v10 = vpop.f32.mrb[13].mxu1  ;;  %v7617_v45 = vrot.slane %v2557_v2, %v2547_v44  ;;  %v7621_v25 = vrot.slane %v2557_v2, %v8054_v19  ;;  %v8124_v2 = vld [vmem:[#allocation122_spill] sm:$0xff]  ;;  %v8126_v47 = vld [vmem:[#allocation124_spill] sm:$0xff] }
 0xd77   : > { %v3533_v11 = vadd.f32 %v3532_v23, %v7554_v12  ;;  %v3574_v27 = vadd.f32 %v3573_v10, %v7558_v3  ;;  %v3534_v28 = vpop.f32.mrb[14].mxu0  ;;  %v3575_v29 = vpop.f32.mrb[14].mxu1 }
 0xd78   : > { %v3578_v13 = vadd.f32 %v3531_v4, %v7605_v30  ;;  %v3535_v14 = vpop.f32.mrb[15].mxu0  ;;  %v3576_v17 = vpop.f32.mrb[15].mxu1  ;;  %v3580_v48 = vadd.f32 %v3572_v1, %v7621_v25  ;;  %v8127_v1 = vld [vmem:[#allocation125_spill] sm:$0xff]  ;;  %v8129_v28 = vld [vmem:[#allocation127_spill] sm:$0xff]  ;;  %v8130_v29 = vld [vmem:[#allocation128_spill] sm:$0xff] }
 0xd79   : > { %v3579_v40 = vadd.f32 %v3533_v11, %v7608_v24  ;;  %v3581_v12 = vadd.f32 %v3574_v27, %v7617_v45 }
 0xd7a   : > { %v4685_v43 = vmul.f32 -1.442695, %v3578_v13 }
 0xd7b   : > { %v4686_v32 = vmul.f32 -1.442695, %v3579_v40  ;;  %v4687_v3 = vmul.f32 -1.442695, %v3581_v12 }
 0xd7c   : > { %5628 = vpow2.f32 %v4685_v43 }
 0xd7d   : > { %5630 = vpow2.f32 %v4686_v32 }
 0xd7e   : > { %5632 = vpow2.f32 %v4687_v3 }
 0xd7f   : > { %5634 = vtanh.f32 %v3580_v48  ;;  %v8131_v48 = vld [vmem:[#allocation129_spill] sm:$0xff] }
 0xd86   : > { %v5629_v52 = vpop.eup %5628 }
 0xd87   : > { %v5631_v26 = vpop.eup %5630  ;;  %v3585_v20 = vadd.f32 1.0, %v5629_v52  ;;  %v8132_v52 = vld [vmem:[#allocation130_spill] sm:$0xff] }
 0xd88   : > { %v3591_v39 = vadd.f32 1.0, %v5631_v26  ;;  %v5633_v38 = vpop.eup %5632 }
 0xd89   : > { %5636 = vrcp.f32 %v3585_v20  ;;  %v5635_v44 = vpop.eup %5634  ;;  %v3598_v37 = vadd.f32 1.0, %v5633_v38  ;;  %v8133_v20 = vld [vmem:[#allocation132_spill] sm:$0xff] }
 0xd8a   : > { %5638 = vrcp.f32 %v3591_v39  ;;  %v8134_v39 = vld [vmem:[#allocation134_spill] sm:$0xff] }
 0xd8b   : > { %5640 = vrcp.f32 %v3598_v37  ;;  %v8140_v37 = vld [vmem:[#allocation138_spill] sm:$0xff] }
 0xd93   : > { %v5637_v16 = vpop.eup %5636 }
 0xd94   : > { %v5639_v15 = vpop.eup %5638  ;;  %v3602_v7 = vmul.f32 %v5637_v16, %v5635_v44  ;;  %v8135_v44 = vld [vmem:[#allocation131_spill] sm:$0xff]  ;;  %v8136_v16 = vld [vmem:[#allocation133_spill] sm:$0xff] }
 0xd95   : > { %v3601_v41 = vmul.f32 0.0, %v5639_v15  ;;  %v3643_v19 = vpop.f32.mrb[16].mxu0  ;;  %v3684_v31 = vpop.f32.mrb[16].mxu1  ;;  %v8138_v15 = vld [vmem:[#allocation136_spill] sm:$0xff] }
 0xd96   : > { %v3645_v35 = vpop.f32.mrb[17].mxu0  ;;  %v3686_v36 = vpop.f32.mrb[17].mxu1 }
 0xd97   : > { %v7624_v49 = vadd.f32 %v3602_v7, %v3601_v41  ;;  %v3647_v54 = vpop.f32.mrb[18].mxu0  ;;  %v3688_v55 = vpop.f32.mrb[18].mxu1  ;;  %v8139_v7 = vld [vmem:[#allocation137_spill] sm:$0xff]  ;;  %v8141_v41 = vld [vmem:[#allocation139_spill] sm:$0xff] }
 0xd98   : > { %v3648_v0 = vpop.f32.mrb[19].mxu0  ;;  %v3689_v57 = vpop.f32.mrb[19].mxu1  ;;  %v8144_v54 = vld [vmem:[#allocation142_spill] sm:$0xff] }
 0xd99   : > { %5642 = vtanh.f32 %v7624_v49  ;;  %v5641_v58 = vpop.eup %5640 }
 0xda3   : > { %v5643_v59 = vpop.eup %5642 }
 0xda4   : > { %v3605_v60 = vmul.f32 %v5643_v59, %v5641_v58 }
 0xda6   : > { %v3802_v46 = vpack.c.bf16 %v3605_v60, %v3605_v60 }
 0xda8   : > { %3836 = vmatmul.mubr.bf16.vlgmr.msra.gmra.mrb[24].mxu0 %v3802_v46  ;;  %3877 = vmatmul.mubr.bf16.vlgmr.msra.gmra.mrb[24].mxu1 %v3802_v46 }
 0xda9   : > { %3886 = vmatpush1.bf16.msra.mxu0 %v8115_v61  ;;  %3927 = vmatpush1.bf16.msra.mxu1 %v8116_v62 }
 0xdaa   : > { %3887 = vmatprep.subr.bf16.mxu0 %v8117_v22  ;;  %3928 = vmatprep.subr.bf16.mxu1 %v8118_v51 }
 0xdab   : > { %3917 = vmatprep.mubr.bf16.mxu0 %v7986_v42  ;;  %3958 = vmatprep.mubr.bf16.mxu1 %v7986_v42  ;;  %v8128_v42 = vld [vmem:[#allocation126_spill] sm:$0xff] }
 0xdad   : > { %3888 = vmatpush1.bf16.msra.mxu0 %v8119_v5  ;;  %3929 = vmatpush1.bf16.msra.mxu1 %v8120_v50 }
 0xdae   : > { %3889 = vmatprep.subr.bf16.mxu0 %v8121_v21  ;;  %3930 = vmatprep.subr.bf16.mxu1 %v8122_v6  ;;  %v5596_v6 = vld [vmem:[#allocation27] sm:$0xff]  }
 0xdb1   : > { %3890 = vmatpush1.bf16.msra.mxu0 %v8123_v8  ;;  %3931 = vmatpush1.bf16.msra.mxu1 %v8124_v2  ;;  %v6194_v8 = vmov 0.0   ;;  %v5597_v2 = vld [vmem:[%s7741_s17] sm:$0xff]  }
 0xdb2   : > { %3891 = vmatprep.subr.bf16.mxu0 %v8125_v9  ;;  %3932 = vmatprep.subr.bf16.mxu1 %v8126_v47  ;;  %v5599_v9 = vld [vmem:[%s7741_s17 + $0x8] sm:$0xff]  }
 0xdb3   : > { %v5600_v47 = vld [vmem:[#allocation27 + $0x10] sm:$0xff]  }
 0xdb5   : > { %v3725_v63 = vpop.f32.mrb[20].mxu0  ;;  %v3766_v4 = vpop.f32.mrb[20].mxu1  ;;  %3892 = vmatpush1.bf16.msra.mxu0 %v8127_v1  ;;  %3933 = vmatpush1.bf16.msra.mxu1 %v8128_v42  ;;  %v5603_v1 = vld [vmem:[%s7741_s17 + $0x18] sm:$0xff]  }
 0xdb6   : > { %v3726_v23 = vadd.f32 %v3725_v63, %v3643_v19  ;;  %v3767_v10 = vadd.f32 %v3766_v4, %v3684_v31  ;;  %v3727_v11 = vpop.f32.mrb[21].mxu0  ;;  %v3768_v27 = vpop.f32.mrb[21].mxu1  ;;  %3893 = vmatprep.subr.bf16.mxu0 %v8129_v28  ;;  %3934 = vmatprep.subr.bf16.mxu1 %v8130_v29  ;;  %v8142_v19 = vld [vmem:[#allocation140_spill] sm:$0xff]  ;;  %v5601_v63 = vld [vmem:[%s7741_s17 + $0x10] sm:$0xff]  }
 0xdb7   : > { %v3728_v13 = vadd.f32 %v3727_v11, %v3645_v35  ;;  %v3769_v14 = vadd.f32 %v3768_v27, %v3686_v36  ;;  %v3729_v17 = vpop.f32.mrb[22].mxu0  ;;  %v3770_v40 = vpop.f32.mrb[22].mxu1  ;;  %v8143_v36 = vld [vmem:[#allocation141_spill] sm:$0xff]  ;;  %v5604_v42 = vld [vmem:[#allocation27 + $0x20] sm:$0xff]   ;;  %v5608_v27 = vld [vmem:[#allocation27 + $0x30] sm:$0xff]  }
 0xdb8   : > { %v3773_v43 = vadd.f32 %v3726_v23, %v7476_v33  ;;  %v3730_v32 = vpop.f32.mrb[23].mxu0  ;;  %v3771_v12 = vpop.f32.mrb[23].mxu1  ;;  %v8137_v33 = vld [vmem:[#allocation135_spill] sm:$0xff]  ;;  %v3775_v35 = vadd.f32 %v3767_v10, %v7490_v18  ;;  %v5602_v4 = vld [vmem:[#allocation27 + $0x18] sm:$0xff]  }
 0xdb9   : > { %v3774_v3 = vadd.f32 %v3728_v13, %v7479_v53  ;;  %3894 = vmatpush1.bf16.msra.mxu0 %v8131_v48  ;;  %3935 = vmatpush1.bf16.msra.mxu1 %v8132_v52  ;;  %v3776_v53 = vadd.f32 %v3769_v14, %v7486_v56  ;;  %v5605_v23 = vld [vmem:[%s7741_s17 + $0x20] sm:$0xff]   ;;  %v5607_v11 = vld [vmem:[%s7741_s17 + $0x28] sm:$0xff]   ;;  %v5609_v28 = vld [vmem:[%s7741_s17 + $0x30] sm:$0xff]  }
 0xdba   : > { %v4688_v26 = vmul.f32 -1.442695, %v3773_v43  ;;  %3895 = vmatprep.subr.bf16.mxu0 %v8133_v20  ;;  %3936 = vmatprep.subr.bf16.mxu1 %v8134_v39  ;;  %v5606_v10 = vld [vmem:[#allocation27 + $0x28] sm:$0xff]   ;;  %v5610_v29 = vld [vmem:[#allocation27 + $0x38] sm:$0xff]  }
 0xdbb   : > { %v4689_v38 = vmul.f32 -1.442695, %v3774_v3  ;;  %v4690_v31 = vmul.f32 -1.442695, %v3776_v53  ;;  %v8145_v13 = vld [vmem:[#allocation39_spill] sm:$0xff] }
 0xdbc   : > { %5644 = vpow2.f32 %v4688_v26  ;;  %v4012_v14 = vpack.c.bf16 %v8145_v13, %v8145_v13  ;;  %v5611_v17 = vld [vmem:[%s7741_s17 + $0x38] sm:$0xff]  }
 0xdbd   : > { %5646 = vpow2.f32 %v4689_v38  ;;  %3896 = vmatpush1.bf16.msra.mxu0 %v8135_v44  ;;  %3937 = vmatpush1.bf16.msra.mxu1 %v8136_v16 }
 0xdbe   : > { %3897 = vmatprep.subr.bf16.mxu0 %v8137_v33  ;;  %3938 = vmatprep.subr.bf16.mxu1 %v8138_v15  ;;  %5648 = vpow2.f32 %v4690_v31 }
 0xdbf   : > { %5650 = vtanh.f32 %v3775_v35 }
 0xdc1   : > { %3898 = vmatpush1.bf16.msra.mxu0 %v8139_v7  ;;  %3939 = vmatpush1.bf16.msra.mxu1 %v8140_v37 }
 0xdc2   : > { %3899 = vmatprep.subr.bf16.mxu0 %v8141_v41  ;;  %3940 = vmatprep.subr.bf16.mxu1 %v8142_v19 }
 0xdc5   : > { %3900 = vmatpush1.bf16.msra.mxu0 %v8143_v36  ;;  %3941 = vmatpush1.bf16.msra.mxu1 %v8144_v54 }
 0xdc6   : > { %v5645_v55 = vpop.eup %5644  ;;  %4963 = vmatprep.subr.bf16.mxu0 %v6194_v8  ;;  %4983 = vmatprep.subr.bf16.mxu1 %v6194_v8 }
 0xdc7   : > { %v5647_v0 = vpop.eup %5646  ;;  %v3780_v57 = vadd.f32 1.0, %v5645_v55 }
 0xdc8   : > { %v3786_v56 = vadd.f32 1.0, %v5647_v0  ;;  %v5649_v58 = vpop.eup %5648 }
 0xdc9   : > { %5652 = vrcp.f32 %v3780_v57  ;;  %v5651_v59 = vpop.eup %5650  ;;  %v3793_v62 = vadd.f32 1.0, %v5649_v58 }
 0xdca   : > { %5654 = vrcp.f32 %v3786_v56 }
 0xdcb   : > { %5656 = vrcp.f32 %v3793_v62 }
 0xdd3   : > { %v5653_v60 = vpop.eup %5652 }
 0xdd4   : > { %v5655_v46 = vpop.eup %5654  ;;  %v3797_v61 = vmul.f32 %v5653_v60, %v5651_v59 }
 0xdd5   : > { %v3796_v18 = vmul.f32 %v5655_v46, %v7493_v34  ;;  %v5657_v51 = vpop.eup %5656  ;;  %v5598_v34 = vld [vmem:[#allocation27 + $0x8] sm:$0xff]  }
 0xdd7   : > { %v3798_v22 = vadd.f32 %v3797_v61, %v3796_v18 }
 0xdd9   : > { %5658 = vtanh.f32 %v3798_v22 }
 0xde3   : > { %v5659_v5 = vpop.eup %5658 }
 0xde4   : > { %v3800_v50 = vmul.f32 %v5659_v5, %v5657_v51 }
 0xde6   : > { %v3801_v21 = vpack.c.bf16 %v3800_v50, %v3800_v50 }
 0xde8   : > { %3918 = vmatmul.mubr.bf16.vlgmr.msra.gmra.mrb[28].mxu0 %v3801_v21  ;;  %3959 = vmatmul.mubr.bf16.vlgmr.msra.gmra.mrb[28].mxu1 %v3801_v21 }
 0xde9   : > { %4964 = vmatpush3.bf16.msra.mxu0 %v5596_v6  ;;  %4984 = vmatpush3.bf16.msra.mxu1 %v5597_v2 }
 0xdea   : > { %4965 = vmatprep.subr.bf16.mxu0 %v6194_v8  ;;  %4985 = vmatprep.subr.bf16.mxu1 %v6194_v8 }
 0xdeb   : > { %4979 = vmatprep.mubr.msk.bf16.mxu0 %vm6195_vm5, %v6194_v8  ;;  %4999 = vmatprep.mubr.msk.bf16.mxu1 %vm6195_vm5, %v6194_v8 }
 0xded   : > { %4966 = vmatpush3.bf16.msra.mxu0 %v5598_v34  ;;  %4986 = vmatpush3.bf16.msra.mxu1 %v5599_v9  ;;  %v4710_v9 = vld [vmem:[%s8146_s9] ss:$0 sm:$0xff] }
 0xdee   : > { %4967 = vmatprep.subr.bf16.mxu0 %v6194_v8  ;;  %4987 = vmatprep.subr.bf16.mxu1 %v6194_v8 }
 0xdf1   : > { %4968 = vmatpush3.bf16.msra.mxu0 %v5600_v47  ;;  %4988 = vmatpush3.bf16.msra.mxu1 %v5601_v63 }
 0xdf2   : > { %4969 = vmatprep.subr.bf16.mxu0 %v6194_v8  ;;  %4989 = vmatprep.subr.bf16.mxu1 %v6194_v8 }
 0xdf5   : > { %4970 = vmatpush3.bf16.msra.mxu0 %v5602_v4  ;;  %4990 = vmatpush3.bf16.msra.mxu1 %v5603_v1 }
 0xdf6   : > { %4971 = vmatprep.subr.bf16.mxu0 %v6194_v8  ;;  %4991 = vmatprep.subr.bf16.mxu1 %v6194_v8 }
 0xdf9   : > { %4972 = vmatpush3.bf16.msra.mxu0 %v5604_v42  ;;  %4992 = vmatpush3.bf16.msra.mxu1 %v5605_v23 }
 0xdfa   : > { %4973 = vmatprep.subr.bf16.mxu0 %v6194_v8  ;;  %4993 = vmatprep.subr.bf16.mxu1 %v6194_v8 }
 0xdfd   : > { %4974 = vmatpush3.bf16.msra.mxu0 %v5606_v10  ;;  %4994 = vmatpush3.bf16.msra.mxu1 %v5607_v11 }
 0xdfe   : > { %4975 = vmatprep.subr.bf16.mxu0 %v6194_v8  ;;  %4995 = vmatprep.subr.bf16.mxu1 %v6194_v8 }
 0xe01   : > { %4976 = vmatpush3.bf16.msra.mxu0 %v5608_v27  ;;  %4996 = vmatpush3.bf16.msra.mxu1 %v5609_v28 }
 0xe02   : > { %4977 = vmatprep.subr.bf16.mxu0 %v6194_v8  ;;  %4997 = vmatprep.subr.bf16.mxu1 %v6194_v8 }
 0xe05   : > { %4978 = vmatpush3.bf16.msra.mxu0 %v5610_v29  ;;  %4998 = vmatpush3.bf16.msra.mxu1 %v5611_v17 }
 0xe08   : > { %4980 = vmatmul.mubr.bf16.vlgmr.msra.gmra.mrb[32].mxu0 %v4012_v14 }
 0xe7b   : > { %v3837_v40 = vpop.f32.mrb[24].mxu0  ;;  %v3878_v43 = vpop.f32.mrb[24].mxu1 }
 0xe7c   : > { %v3839_v32 = vpop.f32.mrb[25].mxu0  ;;  %v3880_v12 = vpop.f32.mrb[25].mxu1 }
 0xe7d   : > { %v3841_v3 = vpop.f32.mrb[26].mxu0  ;;  %v3882_v48 = vpop.f32.mrb[26].mxu1 }
 0xe7e   : > { %v3842_v52 = vpop.f32.mrb[27].mxu0  ;;  %v3883_v26 = vpop.f32.mrb[27].mxu1 }
 0xebb   : > { %v3919_v20 = vpop.f32.mrb[28].mxu0  ;;  %v3960_v39 = vpop.f32.mrb[28].mxu1 }
 0xebc   : > { %v3920_v38 = vadd.f32 %v3919_v20, %v3837_v40  ;;  %v3961_v44 = vadd.f32 %v3960_v39, %v3878_v43  ;;  %v3921_v16 = vpop.f32.mrb[29].mxu0  ;;  %v3962_v33 = vpop.f32.mrb[29].mxu1 }
 0xebd   : > { %v3922_v15 = vadd.f32 %v3921_v16, %v3839_v32  ;;  %v3963_v53 = vadd.f32 %v3962_v33, %v3880_v12  ;;  %v3923_v7 = vpop.f32.mrb[30].mxu0  ;;  %v3964_v37 = vpop.f32.mrb[30].mxu1 }
 0xebe   : > { %v3967_v41 = vadd.f32 %v3920_v38, %v7605_v30  ;;  %v3924_v19 = vpop.f32.mrb[31].mxu0  ;;  %v3965_v31 = vpop.f32.mrb[31].mxu1  ;;  %v3969_v57 = vadd.f32 %v3961_v44, %v7621_v25 }
 0xebf   : > { %v3968_v35 = vadd.f32 %v3922_v15, %v7608_v24  ;;  %v3970_v55 = vadd.f32 %v3963_v53, %v7617_v45 }
 0xec0   : > { %v4691_v36 = vmul.f32 -1.442695, %v3967_v41 }
 0xec1   : > { %v4692_v54 = vmul.f32 -1.442695, %v3968_v35  ;;  %v4693_v0 = vmul.f32 -1.442695, %v3970_v55 }
 0xec2   : > { %5660 = vpow2.f32 %v4691_v36 }
 0xec3   : > { %5662 = vpow2.f32 %v4692_v54 }
 0xec4   : > { %5664 = vpow2.f32 %v4693_v0 }
 0xec5   : > { %5666 = vtanh.f32 %v3969_v57 }
 0xecc   : > { %v5661_v56 = vpop.eup %5660 }
 0xecd   : > { %v5663_v58 = vpop.eup %5662  ;;  %v3974_v59 = vadd.f32 1.0, %v5661_v56 }
 0xece   : > { %v3980_v60 = vadd.f32 1.0, %v5663_v58  ;;  %v5665_v30 = vpop.eup %5664 }
 0xecf   : > { %5668 = vrcp.f32 %v3974_v59  ;;  %v5667_v46 = vpop.eup %5666  ;;  %v3987_v18 = vadd.f32 1.0, %v5665_v30 }
 0xed0   : > { %5670 = vrcp.f32 %v3980_v60 }
 0xed1   : > { %5672 = vrcp.f32 %v3987_v18 }
 0xed9   : > { %v5669_v24 = vpop.eup %5668 }
 0xeda   : > { %v5671_v61 = vpop.eup %5670  ;;  %v3991_v62 = vmul.f32 %v5669_v24, %v5667_v46 }
 0xedb   : > { %v3990_v22 = vmul.f32 %v5671_v61, %v7624_v49  ;;  %v5673_v25 = vpop.eup %5672  ;;  %v4111_v21 = vpop.f32.mrb[32].mxu0 }
 0xedc   : > { %v4981_v6 = vpop.f32.mrb[33].mxu0 }
 0xedd   : > { %v3992_v45 = vadd.f32 %v3991_v62, %v3990_v22  ;;  %v4114_v8 = vpop.f32.mrb[34].mxu0 }
 0xede   : > { %v4982_v2 = vpop.f32.mrb[35].mxu0 }
 0xedf   : > { %5674 = vtanh.f32 %v3992_v45 }
 0xee9   : > { %v5675_v51 = vpop.eup %5674 }
 0xeea   : > { %v3994_v5 = vmul.f32 %v5675_v51, %v5673_v25 }
 0xeec   : > { %v3995_v50 = vpack.c.bf16 %v3994_v5, %v3994_v5 }
 0xeee   : > { %5000 = vmatmul.mubr.bf16.vlgmr.msra.gmra.mrb[32].mxu1 %v3995_v50 }
 0xfc1   : > { %v4199_v34 = vpop.f32.mrb[32].mxu1 }
 0xfc2   : > { %v4200_v47 = vadd.f32 %v4199_v34, %v4111_v21  ;;  %v5001_v63 = vpop.f32.mrb[33].mxu1 }
 0xfc3   : > { %v4202_v49 = vpop.f32.mrb[34].mxu1 }
 0xfc4   : > { %v4212_v4 = vadd.f32 %v4710_v9, %v4200_v47  ;;  %v5002_v1 = vpop.f32.mrb[35].mxu1 }
 0xfc6   : > { %4213 = vst [vmem:[#allocation28] sm:$0xff] %v4212_v4 }
 0xfc7 PF: > { %p5170_p1 = scmp.eq.s32.totalorder %s6311_s2, 2  ;;  %s6196_s11 = smov [#allocation28]  }
 0xfc8   : > { %s4221_s19 = sshll.u32 %s6196_s11, 4  ;;  %s4222_s19 = int_to_ptr.vmem [resolvable:$true] %s4221_s19 }
 0xfc9   : > { %s6096_s7 = scalar_lea.vmem %s4222_s19, 128  ;;  %p6103_p8 = scmp.lt.s32.totalorder %s4222_s19, %s4222_s19 }
 0xfca   : > { %p6097_p5 = scmp.ne.s32.totalorder %s4222_s19, %s6096_s7  ;;  %p6104_p9 = scmp.lt.s32.totalorder %s6096_s7, %s6096_s7 }
 0xfcc   : > { %p6098_p4 = pnand %p6097_p5, %p5170_p1  ;;  %p6105_p10 = por %p6104_p9, %p6103_p8 }
 0xfce   : > { %p6099_p6 = pneg %p6098_p4 }
 0xfd0   : > { %p6106_p11 = pnand %p6105_p10, %p6099_p6 }
 0xfd2   : > { %6109 = shalt.err (!%p6106_p11)
}
 0xfd3   : > { %s8147_s29 = sld [smem:[#allocation153_spill]] }
 0xfd9   : > { %s6110_s26 = scalar_lea.hbm %s8147_s29, 128 }
 0xfda   : > { %p6111_p12 = scmp.ne.s32.totalorder %s8147_s29, %s6110_s26  ;;  %p6116_p3 = scmp.lt.u32.totalorder %s6110_s26, %s8147_s29 }
 0xfdc   : > { %p6112_p2 = pnand %p6111_p12, %p5170_p1 }
 0xfde   : > { %p6113_p7 = pneg %p6112_p2 }
 0xfe0   : > { %p6118_p13 = pnand %p6116_p3, %p6113_p7 }
 0xfe2   : > { %6121 = shalt.err (!%p6118_p13)
}
 0xfe3   : > { %5091 = dma.vmem_to_hbm [thread:$0]  (%p5170_p1), %s4222_s19, 128, %s8147_s29, [#allocation6]  }
 0xfe4   : > { %6159 = dma.done.wait (%p5170_p1), [#allocation6], 128  }
 0xfe5   : > { %6161 = vsyncadd (%p5170_p1), [#allocation6], 4294967168 }
 0xfe6 PF: > { %s8148_s28 = sld [smem:[#allocation38_spill]] }
 0xfec   : > { %s41_s23 = sadd.s32 1, %s8148_s28  }
 0xfed   : > { %p38_p0 = scmp.ge.s32.totalorder %s41_s23, 5  }
 0xfef   :  { %40 = sbr.rel (!%p38_p0) target bundleno = 21 (0x15), region = 199 }
 0xff6   :  { %4234 = vsyncpa [#allocation5], 1 }
 0xff7   :  { %4236 = vsyncpa [#allocation5 + $0x1], 1 }
 0xff8   :  { %4237 = vsyncpa [#allocation8], 1 }
 0xff9   :  { %4238 = vsyncpa [#allocation11], 1 }
 0xffa   :  { %4239 = vsyncpa [#allocation14], 1 }
 0xffb   :  { %4240 = vsyncpa [#allocation17], 1 }
 0xffc   :  { %4241 = vsyncpa [#allocation20], 1 }
 0xffd   :  { %4242 = vsyncpa [#allocation23], 1 }
 0xffe   :  { %4243 = vsyncpa [#allocation26], 1 }
 0xfff   :  { %4244 = vsyncpa [#allocation6], 1 }
0x1000   :  { %4246 = vsyncpa [#allocation6 + $0x1], 1 }

</bundles_post_ra>
